<compile_context>
chip_gen: v7x
topology: tpu7x:2x2x1
jax: 0.10.0
libtpu: 0.0.40
codegen_flags: <defaults>
</compile_context>

<pallas_src>
import jax
import jax.numpy as jnp
from jax import lax
from jax.experimental import pallas as pl
from jax.experimental.pallas import tpu as pltpu


def _stock_lstm_kernel(x_ref, w_ih1_ref, b1_ref, w2_ref, b2_ref,
                       fc_w_ref, fc_b_ref, out_ref):
    B, O = out_ref.shape
    H = w2_ref.shape[0] // 2          # w2_big is (2H, 8H)
    G = 4 * H
    T = x_ref.shape[0] // B           # x rows are time-major: row = t*B + b

    # --- Layer-1 input projection for ALL timesteps in one MXU op, bias folded in. ---
    # Rows stay time-major, so each step below reads a contiguous static row-slice.
    proj2d = (jnp.dot(x_ref[...], w_ih1_ref[...],
                      preferred_element_type=jnp.float32)
              + b1_ref[...])                           # (T*B, 4H) f32

    w2 = w2_ref[...]                                   # (2H, 8H) bf16: [[W_ih2|W_hh1],[W_hh2|0]]
    b2 = jnp.broadcast_to(b2_ref[...], (B, G))         # hoisted: one broadcast, not T

    def act(gates, c):
        # Gate column order (permuted at init time): (i, f, o, g)
        # -> one sigmoid over a contiguous (B, 3H) slab + one tanh.
        s = jax.nn.sigmoid(gates[:, :3 * H])
        i = s[:, 0 * H:1 * H]
        f = s[:, 1 * H:2 * H]
        o = s[:, 2 * H:3 * H]
        g = jnp.tanh(gates[:, 3 * H:])
        c_new = f * c + i * g
        h_new = o * jnp.tanh(c_new)
        return h_new, c_new

    zeros = jnp.zeros((B, H), jnp.float32)
    c1 = c2 = h2 = zeros
    h2_bf = zeros.astype(jnp.bfloat16)
    rec1 = jnp.zeros((B, G), jnp.float32)   # h1(t-1) @ W_hh1, produced by previous step's dot

    # T=8 is tiny and static: straight-line unroll, so every slice/offset is static and
    # the scheduler can hoist the proj slices off the recurrent critical path.
    for t in range(T):
        # Layer 1: recurrent contribution was already produced by the previous step's
        # fused dot; this step only adds it to the precomputed projection rows.
        h1, c1 = act(proj2d[t * B:(t + 1) * B, :] + rec1, c1)
        # Fused layer-2 + next-step layer-1 recurrence (single K=2H MXU issue):
        #   [h1(t) ; h2(t-1)] @ [[W_ih2 | W_hh1], [W_hh2 | 0]] -> [g2(t)_pre | rec1(t+1)]
        hcat = jnp.concatenate([h1.astype(jnp.bfloat16), h2_bf], axis=-1)   # (B, 2H) bf16
        big = jnp.dot(hcat, w2, preferred_element_type=jnp.float32)         # (B, 8H) f32
        rec1 = big[:, G:]
        h2, c2 = act(big[:, :G] + b2, c2)
        h2_bf = h2.astype(jnp.bfloat16)
        # TODO(synk): PyTorch applies inter-layer dropout only in training; eval = identity.

    # Dropout(p=0.2) is identity in eval mode.
    # Linear(H -> 1): VPU multiply + lane reduction instead of an N=1 MXU pass.
    if O == 1:
        out = jnp.sum(h2 * fc_w_ref[...], axis=-1, keepdims=True)
    else:
        out = lax.dot_general(h2, fc_w_ref[...], (((1,), (1,)), ((), ())),
                              preferred_element_type=jnp.float32)
    out_ref[...] = out + fc_b_ref[...]


@jax.jit
def stock_lstm_forward(x, params):
    B, T, D = x.shape
    O = params["fc_w"].shape[0]
    # Time-major slab (row = t*B + b): each timestep's rows are contiguous, so the
    # kernel's per-step access is a static, contiguous row-slice (no dynamic gather).
    x2d = jnp.transpose(x, (1, 0, 2)).reshape(T * B, D).astype(jnp.bfloat16)
    vmem = pl.BlockSpec(memory_space=pltpu.MemorySpace.VMEM)
    # ~0.8 MiB of weights + tiny activations: everything fits VMEM on v5e/v6e/v7x.
    return pl.pallas_call(
        _stock_lstm_kernel,
        out_shape=jax.ShapeDtypeStruct((B, O), jnp.float32),
        in_specs=[vmem] * 7,
        out_specs=vmem,
    )(x2d, params["w_ih1_t"], params["b1"], params["w2_big"], params["b2"],
      params["fc_w"], params["fc_b"])


def init_params(key, input_size=8, hidden_size=128, output_size=1):
    H = hidden_size
    k = 1.0 / jnp.sqrt(jnp.float32(H))
    keys = jax.random.split(key, 10)
    u = lambda kk, shape: jax.random.uniform(kk, shape, jnp.float32, -k, k)

    # PyTorch shapes: weight_ih_l0 (4H, D), weight_hh_l0 (4H, H), biases (4H,)
    w_ih_l0 = u(keys[0], (4 * H, input_size))
    w_hh_l0 = u(keys[1], (4 * H, H))
    b_ih_l0 = u(keys[2], (4 * H,))
    b_hh_l0 = u(keys[3], (4 * H,))
    w_ih_l1 = u(keys[4], (4 * H, H))
    w_hh_l1 = u(keys[5], (4 * H, H))
    b_ih_l1 = u(keys[6], (4 * H,))
    b_hh_l1 = u(keys[7], (4 * H,))
    fc_w = u(keys[8], (output_size, H))
    fc_b = u(keys[9], (output_size,))

    def reorder(a):
        # PyTorch gate order (i, f, g, o) -> kernel order (i, f, o, g) along last axis.
        return jnp.concatenate([a[..., :2 * H], a[..., 3 * H:], a[..., 2 * H:3 * H]],
                               axis=-1)

    w_ih1_t = reorder(w_ih_l0.T)                                   # (D, 4H)
    w_hh1_t = reorder(w_hh_l0.T)                                   # (H, 4H)
    b1 = reorder((b_ih_l0 + b_hh_l0)[None, :])                     # (1, 4H)
    w2 = reorder(jnp.concatenate([w_ih_l1.T, w_hh_l1.T], axis=0))  # (2H, 4H) = [W_ih2; W_hh2]
    b2 = reorder((b_ih_l1 + b_hh_l1)[None, :])                     # (1, 4H)

    # Fuse layer-1 recurrence into the layer-2 dot:
    #   [h1(t); h2(t-1)] @ [[W_ih2 | W_hh1], [W_hh2 | 0]] = [g2(t)_pre | h1(t) @ W_hh1]
    rec_block = jnp.concatenate([w_hh1_t, jnp.zeros((H, 4 * H), jnp.float32)], axis=0)
    w2_big = jnp.concatenate([w2, rec_block], axis=1)              # (2H, 8H)

    return {
        # kernel weights (bf16 MXU operands, f32 accumulation)
        "w_ih1_t": w_ih1_t.astype(jnp.bfloat16),   # (D, 4H)
        "b1": b1,                                  # (1, 4H) f32
        "w2_big": w2_big.astype(jnp.bfloat16),     # (2H, 8H)
        "b2": b2,                                  # (1, 4H) f32
        "fc_w": fc_w,                              # (O, H) f32
        "fc_b": fc_b[None, :],                     # (1, O) f32
        # unfused copies, used only by the pure-JAX reference
        "w_hh1_t": w_hh1_t.astype(jnp.bfloat16),
        "w2": w2.astype(jnp.bfloat16),
    }


def reference_forward(x, params):
    """Pure-JAX (non-Pallas) reference matching PyTorch eval-mode semantics, using the
    same bf16-operand / f32-accumulation matmuls as the kernel (unfused form)."""
    B, T, D = x.shape
    H = params["w_hh1_t"].shape[0]
    f32 = jnp.float32

    proj = (jnp.dot(x.reshape(B * T, D).astype(jnp.bfloat16), params["w_ih1_t"],
                    preferred_element_type=f32) + params["b1"]).reshape(B, T, 4 * H)

    def act(g, c):
        i = jax.nn.sigmoid(g[:, 0 * H:1 * H])
        f = jax.nn.sigmoid(g[:, 1 * H:2 * H])
        o = jax.nn.sigmoid(g[:, 2 * H:3 * H])
        gg = jnp.tanh(g[:, 3 * H:])
        c = f * c + i * gg
        return o * jnp.tanh(c), c

    h1 = c1 = h2 = c2 = jnp.zeros((B, H), f32)
    for t in range(T):
        g1 = proj[:, t, :] + jnp.dot(h1.astype(jnp.bfloat16), params["w_hh1_t"],
                                     preferred_element_type=f32)
        h1, c1 = act(g1, c1)
        hcat = jnp.concatenate([h1, h2], axis=-1).astype(jnp.bfloat16)
        g2 = jnp.dot(hcat, params["w2"], preferred_element_type=f32) + params["b2"]
        h2, c2 = act(g2, c2)

    return jnp.sum(h2 * params["fc_w"], axis=-1, keepdims=True) + params["fc_b"]


if __name__ == "__main__":
    B, T, D, H, O = 2, 8, 8, 128, 1
    key = jax.random.PRNGKey(0)
    k_x, k_p = jax.random.split(key)
    x = jax.random.normal(k_x, (B, T, D), jnp.float32)
    params = init_params(k_p, input_size=D, hidden_size=H, output_size=O)

    out = jax.block_until_ready(stock_lstm_forward(x, params))
    ref = reference_forward(x, params)

    assert out.shape == (B, O)
    assert jnp.allclose(out, ref, atol=2e-3, rtol=2e-3), (out, ref)

    print("KERNEL_OK")
</pallas_src>

<mosaic_0001>
module attributes {stable_mosaic.version = 11 : i64} {
  func.func @_stock_lstm_kernel(%arg0: memref<16x8xbf16, #tpu.memory_space<vmem>>, %arg1: memref<8x512xbf16, #tpu.memory_space<vmem>>, %arg2: memref<1x512xf32, #tpu.memory_space<vmem>>, %arg3: memref<256x1024xbf16, #tpu.memory_space<vmem>>, %arg4: memref<1x512xf32, #tpu.memory_space<vmem>>, %arg5: memref<1x128xf32, #tpu.memory_space<vmem>>, %arg6: memref<1x1xf32, #tpu.memory_space<vmem>>, %arg7: memref<2x1xf32, #tpu.memory_space<vmem>>) attributes {dimension_semantics = [], scalar_prefetch = 0 : i64, scratch_operands = 0 : i64, tpu.core_type = #tpu.core_type<tc>} {
    %c0 = arith.constant 0 : index
    %c0_0 = arith.constant 0 : index
    %0 = vector.load %arg0[%c0, %c0_0] : memref<16x8xbf16, #tpu.memory_space<vmem>>, vector<16x8xbf16>
    %c0_1 = arith.constant 0 : index
    %c0_2 = arith.constant 0 : index
    %1 = vector.load %arg1[%c0_1, %c0_2] : memref<8x512xbf16, #tpu.memory_space<vmem>>, vector<8x512xbf16>
    %cst = arith.constant dense<0.000000e+00> : vector<16x512xf32>
    %2 = tpu.matmul %0, %1, %cst {dimension_numbers = #tpu.dot_dimension_numbers<[1], [0], [0], [1], [0, 0, 1, 1], [], []>} : vector<16x8xbf16>, vector<8x512xbf16>, vector<16x512xf32> -> vector<16x512xf32>
    %c0_3 = arith.constant 0 : index
    %c0_4 = arith.constant 0 : index
    %3 = vector.load %arg2[%c0_3, %c0_4] : memref<1x512xf32, #tpu.memory_space<vmem>>, vector<1x512xf32>
    %4 = vector.broadcast %3 : vector<1x512xf32> to vector<16x512xf32>
    %5 = arith.addf %2, %4 : vector<16x512xf32>
    %c0_5 = arith.constant 0 : index
    %c0_6 = arith.constant 0 : index
    %6 = vector.load %arg3[%c0_5, %c0_6] : memref<256x1024xbf16, #tpu.memory_space<vmem>>, vector<256x1024xbf16>
    %c0_7 = arith.constant 0 : index
    %c0_8 = arith.constant 0 : index
    %7 = vector.load %arg4[%c0_7, %c0_8] : memref<1x512xf32, #tpu.memory_space<vmem>>, vector<1x512xf32>
    %8 = vector.shape_cast %7 : vector<1x512xf32> to vector<1x512xf32>
    %9 = vector.broadcast %8 : vector<1x512xf32> to vector<2x512xf32>
    %cst_9 = arith.constant 0.000000e+00 : f32
    %10 = vector.broadcast %cst_9 : f32 to vector<2x128xf32>
    %11 = arith.truncf %10 : vector<2x128xf32> to vector<2x128xbf16>
    %cst_10 = arith.constant 0.000000e+00 : f32
    %12 = vector.broadcast %cst_10 : f32 to vector<2x512xf32>
    %13 = vector.extract_strided_slice %5 {offsets = [0, 0], sizes = [2, 512], strides = [1, 1]} : vector<16x512xf32> to vector<2x512xf32>
    %14 = arith.addf %13, %12 : vector<2x512xf32>
    %15 = vector.extract_strided_slice %14 {offsets = [0, 0], sizes = [2, 384], strides = [1, 1]} : vector<2x512xf32> to vector<2x384xf32>
    %16 = arith.negf %15 : vector<2x384xf32>
    %17 = math.exp %16 : vector<2x384xf32>
    %cst_11 = arith.constant 1.000000e+00 : f32
    %18 = vector.broadcast %cst_11 : f32 to vector<2x384xf32>
    %19 = arith.addf %18, %17 : vector<2x384xf32>
    %20 = arith.divf %18, %19 : vector<2x384xf32>
    %21 = vector.extract_strided_slice %20 {offsets = [0, 0], sizes = [2, 128], strides = [1, 1]} : vector<2x384xf32> to vector<2x128xf32>
    %22 = vector.extract_strided_slice %20 {offsets = [0, 128], sizes = [2, 128], strides = [1, 1]} : vector<2x384xf32> to vector<2x128xf32>
    %23 = vector.extract_strided_slice %20 {offsets = [0, 256], sizes = [2, 128], strides = [1, 1]} : vector<2x384xf32> to vector<2x128xf32>
    %24 = vector.extract_strided_slice %14 {offsets = [0, 384], sizes = [2, 128], strides = [1, 1]} : vector<2x512xf32> to vector<2x128xf32>
    %25 = math.tanh %24 : vector<2x128xf32>
    %26 = arith.mulf %22, %10 : vector<2x128xf32>
    %27 = arith.mulf %21, %25 : vector<2x128xf32>
    %28 = arith.addf %26, %27 : vector<2x128xf32>
    %29 = math.tanh %28 : vector<2x128xf32>
    %30 = arith.mulf %23, %29 : vector<2x128xf32>
    %31 = arith.truncf %30 : vector<2x128xf32> to vector<2x128xbf16>
    %32 = tpu.concatenate %31, %11 in 1 : vector<2x128xbf16>, vector<2x128xbf16> -> vector<2x256xbf16>
    %cst_12 = arith.constant dense<0.000000e+00> : vector<2x1024xf32>
    %33 = tpu.matmul %32, %6, %cst_12 {dimension_numbers = #tpu.dot_dimension_numbers<[1], [0], [0], [1], [0, 0, 1, 1], [], []>} : vector<2x256xbf16>, vector<256x1024xbf16>, vector<2x1024xf32> -> vector<2x1024xf32>
    %34 = vector.extract_strided_slice %33 {offsets = [0, 512], sizes = [2, 512], strides = [1, 1]} : vector<2x1024xf32> to vector<2x512xf32>
    %35 = vector.extract_strided_slice %33 {offsets = [0, 0], sizes = [2, 512], strides = [1, 1]} : vector<2x1024xf32> to vector<2x512xf32>
    %36 = arith.addf %35, %9 : vector<2x512xf32>
    %37 = vector.extract_strided_slice %36 {offsets = [0, 0], sizes = [2, 384], strides = [1, 1]} : vector<2x512xf32> to vector<2x384xf32>
    %38 = arith.negf %37 : vector<2x384xf32>
    %39 = math.exp %38 : vector<2x384xf32>
    %cst_13 = arith.constant 1.000000e+00 : f32
    %40 = vector.broadcast %cst_13 : f32 to vector<2x384xf32>
    %41 = arith.addf %40, %39 : vector<2x384xf32>
    %42 = arith.divf %40, %41 : vector<2x384xf32>
    %43 = vector.extract_strided_slice %42 {offsets = [0, 0], sizes = [2, 128], strides = [1, 1]} : vector<2x384xf32> to vector<2x128xf32>
    %44 = vector.extract_strided_slice %42 {offsets = [0, 128], sizes = [2, 128], strides = [1, 1]} : vector<2x384xf32> to vector<2x128xf32>
    %45 = vector.extract_strided_slice %42 {offsets = [0, 256], sizes = [2, 128], strides = [1, 1]} : vector<2x384xf32> to vector<2x128xf32>
    %46 = vector.extract_strided_slice %36 {offsets = [0, 384], sizes = [2, 128], strides = [1, 1]} : vector<2x512xf32> to vector<2x128xf32>
    %47 = math.tanh %46 : vector<2x128xf32>
    %48 = arith.mulf %44, %10 : vector<2x128xf32>
    %49 = arith.mulf %43, %47 : vector<2x128xf32>
    %50 = arith.addf %48, %49 : vector<2x128xf32>
    %51 = math.tanh %50 : vector<2x128xf32>
    %52 = arith.mulf %45, %51 : vector<2x128xf32>
    %53 = arith.truncf %52 : vector<2x128xf32> to vector<2x128xbf16>
    %54 = vector.extract_strided_slice %5 {offsets = [2, 0], sizes = [2, 512], strides = [1, 1]} : vector<16x512xf32> to vector<2x512xf32>
    %55 = arith.addf %54, %34 : vector<2x512xf32>
    %56 = vector.extract_strided_slice %55 {offsets = [0, 0], sizes = [2, 384], strides = [1, 1]} : vector<2x512xf32> to vector<2x384xf32>
    %57 = arith.negf %56 : vector<2x384xf32>
    %58 = math.exp %57 : vector<2x384xf32>
    %cst_14 = arith.constant 1.000000e+00 : f32
    %59 = vector.broadcast %cst_14 : f32 to vector<2x384xf32>
    %60 = arith.addf %59, %58 : vector<2x384xf32>
    %61 = arith.divf %59, %60 : vector<2x384xf32>
    %62 = vector.extract_strided_slice %61 {offsets = [0, 0], sizes = [2, 128], strides = [1, 1]} : vector<2x384xf32> to vector<2x128xf32>
    %63 = vector.extract_strided_slice %61 {offsets = [0, 128], sizes = [2, 128], strides = [1, 1]} : vector<2x384xf32> to vector<2x128xf32>
    %64 = vector.extract_strided_slice %61 {offsets = [0, 256], sizes = [2, 128], strides = [1, 1]} : vector<2x384xf32> to vector<2x128xf32>
    %65 = vector.extract_strided_slice %55 {offsets = [0, 384], sizes = [2, 128], strides = [1, 1]} : vector<2x512xf32> to vector<2x128xf32>
    %66 = math.tanh %65 : vector<2x128xf32>
    %67 = arith.mulf %63, %28 : vector<2x128xf32>
    %68 = arith.mulf %62, %66 : vector<2x128xf32>
    %69 = arith.addf %67, %68 : vector<2x128xf32>
    %70 = math.tanh %69 : vector<2x128xf32>
    %71 = arith.mulf %64, %70 : vector<2x128xf32>
    %72 = arith.truncf %71 : vector<2x128xf32> to vector<2x128xbf16>
    %73 = tpu.concatenate %72, %53 in 1 : vector<2x128xbf16>, vector<2x128xbf16> -> vector<2x256xbf16>
    %cst_15 = arith.constant dense<0.000000e+00> : vector<2x1024xf32>
    %74 = tpu.matmul %73, %6, %cst_15 {dimension_numbers = #tpu.dot_dimension_numbers<[1], [0], [0], [1], [0, 0, 1, 1], [], []>} : vector<2x256xbf16>, vector<256x1024xbf16>, vector<2x1024xf32> -> vector<2x1024xf32>
    %75 = vector.extract_strided_slice %74 {offsets = [0, 512], sizes = [2, 512], strides = [1, 1]} : vector<2x1024xf32> to vector<2x512xf32>
    %76 = vector.extract_strided_slice %74 {offsets = [0, 0], sizes = [2, 512], strides = [1, 1]} : vector<2x1024xf32> to vector<2x512xf32>
    %77 = arith.addf %76, %9 : vector<2x512xf32>
    %78 = vector.extract_strided_slice %77 {offsets = [0, 0], sizes = [2, 384], strides = [1, 1]} : vector<2x512xf32> to vector<2x384xf32>
    %79 = arith.negf %78 : vector<2x384xf32>
    %80 = math.exp %79 : vector<2x384xf32>
    %cst_16 = arith.constant 1.000000e+00 : f32
    %81 = vector.broadcast %cst_16 : f32 to vector<2x384xf32>
    %82 = arith.addf %81, %80 : vector<2x384xf32>
    %83 = arith.divf %81, %82 : vector<2x384xf32>
    %84 = vector.extract_strided_slice %83 {offsets = [0, 0], sizes = [2, 128], strides = [1, 1]} : vector<2x384xf32> to vector<2x128xf32>
    %85 = vector.extract_strided_slice %83 {offsets = [0, 128], sizes = [2, 128], strides = [1, 1]} : vector<2x384xf32> to vector<2x128xf32>
    %86 = vector.extract_strided_slice %83 {offsets = [0, 256], sizes = [2, 128], strides = [1, 1]} : vector<2x384xf32> to vector<2x128xf32>
    %87 = vector.extract_strided_slice %77 {offsets = [0, 384], sizes = [2, 128], strides = [1, 1]} : vector<2x512xf32> to vector<2x128xf32>
    %88 = math.tanh %87 : vector<2x128xf32>
    %89 = arith.mulf %85, %50 : vector<2x128xf32>
    %90 = arith.mulf %84, %88 : vector<2x128xf32>
    %91 = arith.addf %89, %90 : vector<2x128xf32>
    %92 = math.tanh %91 : vector<2x128xf32>
    %93 = arith.mulf %86, %92 : vector<2x128xf32>
    %94 = arith.truncf %93 : vector<2x128xf32> to vector<2x128xbf16>
    %95 = vector.extract_strided_slice %5 {offsets = [4, 0], sizes = [2, 512], strides = [1, 1]} : vector<16x512xf32> to vector<2x512xf32>
    %96 = arith.addf %95, %75 : vector<2x512xf32>
    %97 = vector.extract_strided_slice %96 {offsets = [0, 0], sizes = [2, 384], strides = [1, 1]} : vector<2x512xf32> to vector<2x384xf32>
    %98 = arith.negf %97 : vector<2x384xf32>
    %99 = math.exp %98 : vector<2x384xf32>
    %cst_17 = arith.constant 1.000000e+00 : f32
    %100 = vector.broadcast %cst_17 : f32 to vector<2x384xf32>
    %101 = arith.addf %100, %99 : vector<2x384xf32>
    %102 = arith.divf %100, %101 : vector<2x384xf32>
    %103 = vector.extract_strided_slice %102 {offsets = [0, 0], sizes = [2, 128], strides = [1, 1]} : vector<2x384xf32> to vector<2x128xf32>
    %104 = vector.extract_strided_slice %102 {offsets = [0, 128], sizes = [2, 128], strides = [1, 1]} : vector<2x384xf32> to vector<2x128xf32>
    %105 = vector.extract_strided_slice %102 {offsets = [0, 256], sizes = [2, 128], strides = [1, 1]} : vector<2x384xf32> to vector<2x128xf32>
    %106 = vector.extract_strided_slice %96 {offsets = [0, 384], sizes = [2, 128], strides = [1, 1]} : vector<2x512xf32> to vector<2x128xf32>
    %107 = math.tanh %106 : vector<2x128xf32>
    %108 = arith.mulf %104, %69 : vector<2x128xf32>
    %109 = arith.mulf %103, %107 : vector<2x128xf32>
    %110 = arith.addf %108, %109 : vector<2x128xf32>
    %111 = math.tanh %110 : vector<2x128xf32>
    %112 = arith.mulf %105, %111 : vector<2x128xf32>
    %113 = arith.truncf %112 : vector<2x128xf32> to vector<2x128xbf16>
    %114 = tpu.concatenate %113, %94 in 1 : vector<2x128xbf16>, vector<2x128xbf16> -> vector<2x256xbf16>
    %cst_18 = arith.constant dense<0.000000e+00> : vector<2x1024xf32>
    %115 = tpu.matmul %114, %6, %cst_18 {dimension_numbers = #tpu.dot_dimension_numbers<[1], [0], [0], [1], [0, 0, 1, 1], [], []>} : vector<2x256xbf16>, vector<256x1024xbf16>, vector<2x1024xf32> -> vector<2x1024xf32>
    %116 = vector.extract_strided_slice %115 {offsets = [0, 512], sizes = [2, 512], strides = [1, 1]} : vector<2x1024xf32> to vector<2x512xf32>
    %117 = vector.extract_strided_slice %115 {offsets = [0, 0], sizes = [2, 512], strides = [1, 1]} : vector<2x1024xf32> to vector<2x512xf32>
    %118 = arith.addf %117, %9 : vector<2x512xf32>
    %119 = vector.extract_strided_slice %118 {offsets = [0, 0], sizes = [2, 384], strides = [1, 1]} : vector<2x512xf32> to vector<2x384xf32>
    %120 = arith.negf %119 : vector<2x384xf32>
    %121 = math.exp %120 : vector<2x384xf32>
    %cst_19 = arith.constant 1.000000e+00 : f32
    %122 = vector.broadcast %cst_19 : f32 to vector<2x384xf32>
    %123 = arith.addf %122, %121 : vector<2x384xf32>
    %124 = arith.divf %122, %123 : vector<2x384xf32>
    %125 = vector.extract_strided_slice %124 {offsets = [0, 0], sizes = [2, 128], strides = [1, 1]} : vector<2x384xf32> to vector<2x128xf32>
    %126 = vector.extract_strided_slice %124 {offsets = [0, 128], sizes = [2, 128], strides = [1, 1]} : vector<2x384xf32> to vector<2x128xf32>
    %127 = vector.extract_strided_slice %124 {offsets = [0, 256], sizes = [2, 128], strides = [1, 1]} : vector<2x384xf32> to vector<2x128xf32>
    %128 = vector.extract_strided_slice %118 {offsets = [0, 384], sizes = [2, 128], strides = [1, 1]} : vector<2x512xf32> to vector<2x128xf32>
    %129 = math.tanh %128 : vector<2x128xf32>
    %130 = arith.mulf %126, %91 : vector<2x128xf32>
    %131 = arith.mulf %125, %129 : vector<2x128xf32>
    %132 = arith.addf %130, %131 : vector<2x128xf32>
    %133 = math.tanh %132 : vector<2x128xf32>
    %134 = arith.mulf %127, %133 : vector<2x128xf32>
    %135 = arith.truncf %134 : vector<2x128xf32> to vector<2x128xbf16>
    %136 = vector.extract_strided_slice %5 {offsets = [6, 0], sizes = [2, 512], strides = [1, 1]} : vector<16x512xf32> to vector<2x512xf32>
    %137 = arith.addf %136, %116 : vector<2x512xf32>
    %138 = vector.extract_strided_slice %137 {offsets = [0, 0], sizes = [2, 384], strides = [1, 1]} : vector<2x512xf32> to vector<2x384xf32>
    %139 = arith.negf %138 : vector<2x384xf32>
    %140 = math.exp %139 : vector<2x384xf32>
    %cst_20 = arith.constant 1.000000e+00 : f32
    %141 = vector.broadcast %cst_20 : f32 to vector<2x384xf32>
    %142 = arith.addf %141, %140 : vector<2x384xf32>
    %143 = arith.divf %141, %142 : vector<2x384xf32>
    %144 = vector.extract_strided_slice %143 {offsets = [0, 0], sizes = [2, 128], strides = [1, 1]} : vector<2x384xf32> to vector<2x128xf32>
    %145 = vector.extract_strided_slice %143 {offsets = [0, 128], sizes = [2, 128], strides = [1, 1]} : vector<2x384xf32> to vector<2x128xf32>
    %146 = vector.extract_strided_slice %143 {offsets = [0, 256], sizes = [2, 128], strides = [1, 1]} : vector<2x384xf32> to vector<2x128xf32>
    %147 = vector.extract_strided_slice %137 {offsets = [0, 384], sizes = [2, 128], strides = [1, 1]} : vector<2x512xf32> to vector<2x128xf32>
    %148 = math.tanh %147 : vector<2x128xf32>
    %149 = arith.mulf %145, %110 : vector<2x128xf32>
    %150 = arith.mulf %144, %148 : vector<2x128xf32>
    %151 = arith.addf %149, %150 : vector<2x128xf32>
    %152 = math.tanh %151 : vector<2x128xf32>
    %153 = arith.mulf %146, %152 : vector<2x128xf32>
    %154 = arith.truncf %153 : vector<2x128xf32> to vector<2x128xbf16>
    %155 = tpu.concatenate %154, %135 in 1 : vector<2x128xbf16>, vector<2x128xbf16> -> vector<2x256xbf16>
    %cst_21 = arith.constant dense<0.000000e+00> : vector<2x1024xf32>
    %156 = tpu.matmul %155, %6, %cst_21 {dimension_numbers = #tpu.dot_dimension_numbers<[1], [0], [0], [1], [0, 0, 1, 1], [], []>} : vector<2x256xbf16>, vector<256x1024xbf16>, vector<2x1024xf32> -> vector<2x1024xf32>
    %157 = vector.extract_strided_slice %156 {offsets = [0, 512], sizes = [2, 512], strides = [1, 1]} : vector<2x1024xf32> to vector<2x512xf32>
    %158 = vector.extract_strided_slice %156 {offsets = [0, 0], sizes = [2, 512], strides = [1, 1]} : vector<2x1024xf32> to vector<2x512xf32>
    %159 = arith.addf %158, %9 : vector<2x512xf32>
    %160 = vector.extract_strided_slice %159 {offsets = [0, 0], sizes = [2, 384], strides = [1, 1]} : vector<2x512xf32> to vector<2x384xf32>
    %161 = arith.negf %160 : vector<2x384xf32>
    %162 = math.exp %161 : vector<2x384xf32>
    %cst_22 = arith.constant 1.000000e+00 : f32
    %163 = vector.broadcast %cst_22 : f32 to vector<2x384xf32>
    %164 = arith.addf %163, %162 : vector<2x384xf32>
    %165 = arith.divf %163, %164 : vector<2x384xf32>
    %166 = vector.extract_strided_slice %165 {offsets = [0, 0], sizes = [2, 128], strides = [1, 1]} : vector<2x384xf32> to vector<2x128xf32>
    %167 = vector.extract_strided_slice %165 {offsets = [0, 128], sizes = [2, 128], strides = [1, 1]} : vector<2x384xf32> to vector<2x128xf32>
    %168 = vector.extract_strided_slice %165 {offsets = [0, 256], sizes = [2, 128], strides = [1, 1]} : vector<2x384xf32> to vector<2x128xf32>
    %169 = vector.extract_strided_slice %159 {offsets = [0, 384], sizes = [2, 128], strides = [1, 1]} : vector<2x512xf32> to vector<2x128xf32>
    %170 = math.tanh %169 : vector<2x128xf32>
    %171 = arith.mulf %167, %132 : vector<2x128xf32>
    %172 = arith.mulf %166, %170 : vector<2x128xf32>
    %173 = arith.addf %171, %172 : vector<2x128xf32>
    %174 = math.tanh %173 : vector<2x128xf32>
    %175 = arith.mulf %168, %174 : vector<2x128xf32>
    %176 = arith.truncf %175 : vector<2x128xf32> to vector<2x128xbf16>
    %177 = vector.extract_strided_slice %5 {offsets = [8, 0], sizes = [2, 512], strides = [1, 1]} : vector<16x512xf32> to vector<2x512xf32>
    %178 = arith.addf %177, %157 : vector<2x512xf32>
    %179 = vector.extract_strided_slice %178 {offsets = [0, 0], sizes = [2, 384], strides = [1, 1]} : vector<2x512xf32> to vector<2x384xf32>
    %180 = arith.negf %179 : vector<2x384xf32>
    %181 = math.exp %180 : vector<2x384xf32>
    %cst_23 = arith.constant 1.000000e+00 : f32
    %182 = vector.broadcast %cst_23 : f32 to vector<2x384xf32>
    %183 = arith.addf %182, %181 : vector<2x384xf32>
    %184 = arith.divf %182, %183 : vector<2x384xf32>
    %185 = vector.extract_strided_slice %184 {offsets = [0, 0], sizes = [2, 128], strides = [1, 1]} : vector<2x384xf32> to vector<2x128xf32>
    %186 = vector.extract_strided_slice %184 {offsets = [0, 128], sizes = [2, 128], strides = [1, 1]} : vector<2x384xf32> to vector<2x128xf32>
    %187 = vector.extract_strided_slice %184 {offsets = [0, 256], sizes = [2, 128], strides = [1, 1]} : vector<2x384xf32> to vector<2x128xf32>
    %188 = vector.extract_strided_slice %178 {offsets = [0, 384], sizes = [2, 128], strides = [1, 1]} : vector<2x512xf32> to vector<2x128xf32>
    %189 = math.tanh %188 : vector<2x128xf32>
    %190 = arith.mulf %186, %151 : vector<2x128xf32>
    %191 = arith.mulf %185, %189 : vector<2x128xf32>
    %192 = arith.addf %190, %191 : vector<2x128xf32>
    %193 = math.tanh %192 : vector<2x128xf32>
    %194 = arith.mulf %187, %193 : vector<2x128xf32>
    %195 = arith.truncf %194 : vector<2x128xf32> to vector<2x128xbf16>
    %196 = tpu.concatenate %195, %176 in 1 : vector<2x128xbf16>, vector<2x128xbf16> -> vector<2x256xbf16>
    %cst_24 = arith.constant dense<0.000000e+00> : vector<2x1024xf32>
    %197 = tpu.matmul %196, %6, %cst_24 {dimension_numbers = #tpu.dot_dimension_numbers<[1], [0], [0], [1], [0, 0, 1, 1], [], []>} : vector<2x256xbf16>, vector<256x1024xbf16>, vector<2x1024xf32> -> vector<2x1024xf32>
    %198 = vector.extract_strided_slice %197 {offsets = [0, 512], sizes = [2, 512], strides = [1, 1]} : vector<2x1024xf32> to vector<2x512xf32>
    %199 = vector.extract_strided_slice %197 {offsets = [0, 0], sizes = [2, 512], strides = [1, 1]} : vector<2x1024xf32> to vector<2x512xf32>
    %200 = arith.addf %199, %9 : vector<2x512xf32>
    %201 = vector.extract_strided_slice %200 {offsets = [0, 0], sizes = [2, 384], strides = [1, 1]} : vector<2x512xf32> to vector<2x384xf32>
    %202 = arith.negf %201 : vector<2x384xf32>
    %203 = math.exp %202 : vector<2x384xf32>
    %cst_25 = arith.constant 1.000000e+00 : f32
    %204 = vector.broadcast %cst_25 : f32 to vector<2x384xf32>
    %205 = arith.addf %204, %203 : vector<2x384xf32>
    %206 = arith.divf %204, %205 : vector<2x384xf32>
    %207 = vector.extract_strided_slice %206 {offsets = [0, 0], sizes = [2, 128], strides = [1, 1]} : vector<2x384xf32> to vector<2x128xf32>
    %208 = vector.extract_strided_slice %206 {offsets = [0, 128], sizes = [2, 128], strides = [1, 1]} : vector<2x384xf32> to vector<2x128xf32>
    %209 = vector.extract_strided_slice %206 {offsets = [0, 256], sizes = [2, 128], strides = [1, 1]} : vector<2x384xf32> to vector<2x128xf32>
    %210 = vector.extract_strided_slice %200 {offsets = [0, 384], sizes = [2, 128], strides = [1, 1]} : vector<2x512xf32> to vector<2x128xf32>
    %211 = math.tanh %210 : vector<2x128xf32>
    %212 = arith.mulf %208, %173 : vector<2x128xf32>
    %213 = arith.mulf %207, %211 : vector<2x128xf32>
    %214 = arith.addf %212, %213 : vector<2x128xf32>
    %215 = math.tanh %214 : vector<2x128xf32>
    %216 = arith.mulf %209, %215 : vector<2x128xf32>
    %217 = arith.truncf %216 : vector<2x128xf32> to vector<2x128xbf16>
    %218 = vector.extract_strided_slice %5 {offsets = [10, 0], sizes = [2, 512], strides = [1, 1]} : vector<16x512xf32> to vector<2x512xf32>
    %219 = arith.addf %218, %198 : vector<2x512xf32>
    %220 = vector.extract_strided_slice %219 {offsets = [0, 0], sizes = [2, 384], strides = [1, 1]} : vector<2x512xf32> to vector<2x384xf32>
    %221 = arith.negf %220 : vector<2x384xf32>
    %222 = math.exp %221 : vector<2x384xf32>
    %cst_26 = arith.constant 1.000000e+00 : f32
    %223 = vector.broadcast %cst_26 : f32 to vector<2x384xf32>
    %224 = arith.addf %223, %222 : vector<2x384xf32>
    %225 = arith.divf %223, %224 : vector<2x384xf32>
    %226 = vector.extract_strided_slice %225 {offsets = [0, 0], sizes = [2, 128], strides = [1, 1]} : vector<2x384xf32> to vector<2x128xf32>
    %227 = vector.extract_strided_slice %225 {offsets = [0, 128], sizes = [2, 128], strides = [1, 1]} : vector<2x384xf32> to vector<2x128xf32>
    %228 = vector.extract_strided_slice %225 {offsets = [0, 256], sizes = [2, 128], strides = [1, 1]} : vector<2x384xf32> to vector<2x128xf32>
    %229 = vector.extract_strided_slice %219 {offsets = [0, 384], sizes = [2, 128], strides = [1, 1]} : vector<2x512xf32> to vector<2x128xf32>
    %230 = math.tanh %229 : vector<2x128xf32>
    %231 = arith.mulf %227, %192 : vector<2x128xf32>
    %232 = arith.mulf %226, %230 : vector<2x128xf32>
    %233 = arith.addf %231, %232 : vector<2x128xf32>
    %234 = math.tanh %233 : vector<2x128xf32>
    %235 = arith.mulf %228, %234 : vector<2x128xf32>
    %236 = arith.truncf %235 : vector<2x128xf32> to vector<2x128xbf16>
    %237 = tpu.concatenate %236, %217 in 1 : vector<2x128xbf16>, vector<2x128xbf16> -> vector<2x256xbf16>
    %cst_27 = arith.constant dense<0.000000e+00> : vector<2x1024xf32>
    %238 = tpu.matmul %237, %6, %cst_27 {dimension_numbers = #tpu.dot_dimension_numbers<[1], [0], [0], [1], [0, 0, 1, 1], [], []>} : vector<2x256xbf16>, vector<256x1024xbf16>, vector<2x1024xf32> -> vector<2x1024xf32>
    %239 = vector.extract_strided_slice %238 {offsets = [0, 512], sizes = [2, 512], strides = [1, 1]} : vector<2x1024xf32> to vector<2x512xf32>
    %240 = vector.extract_strided_slice %238 {offsets = [0, 0], sizes = [2, 512], strides = [1, 1]} : vector<2x1024xf32> to vector<2x512xf32>
    %241 = arith.addf %240, %9 : vector<2x512xf32>
    %242 = vector.extract_strided_slice %241 {offsets = [0, 0], sizes = [2, 384], strides = [1, 1]} : vector<2x512xf32> to vector<2x384xf32>
    %243 = arith.negf %242 : vector<2x384xf32>
    %244 = math.exp %243 : vector<2x384xf32>
    %cst_28 = arith.constant 1.000000e+00 : f32
    %245 = vector.broadcast %cst_28 : f32 to vector<2x384xf32>
    %246 = arith.addf %245, %244 : vector<2x384xf32>
    %247 = arith.divf %245, %246 : vector<2x384xf32>
    %248 = vector.extract_strided_slice %247 {offsets = [0, 0], sizes = [2, 128], strides = [1, 1]} : vector<2x384xf32> to vector<2x128xf32>
    %249 = vector.extract_strided_slice %247 {offsets = [0, 128], sizes = [2, 128], strides = [1, 1]} : vector<2x384xf32> to vector<2x128xf32>
    %250 = vector.extract_strided_slice %247 {offsets = [0, 256], sizes = [2, 128], strides = [1, 1]} : vector<2x384xf32> to vector<2x128xf32>
    %251 = vector.extract_strided_slice %241 {offsets = [0, 384], sizes = [2, 128], strides = [1, 1]} : vector<2x512xf32> to vector<2x128xf32>
    %252 = math.tanh %251 : vector<2x128xf32>
    %253 = arith.mulf %249, %214 : vector<2x128xf32>
    %254 = arith.mulf %248, %252 : vector<2x128xf32>
    %255 = arith.addf %253, %254 : vector<2x128xf32>
    %256 = math.tanh %255 : vector<2x128xf32>
    %257 = arith.mulf %250, %256 : vector<2x128xf32>
    %258 = arith.truncf %257 : vector<2x128xf32> to vector<2x128xbf16>
    %259 = vector.extract_strided_slice %5 {offsets = [12, 0], sizes = [2, 512], strides = [1, 1]} : vector<16x512xf32> to vector<2x512xf32>
    %260 = arith.addf %259, %239 : vector<2x512xf32>
    %261 = vector.extract_strided_slice %260 {offsets = [0, 0], sizes = [2, 384], strides = [1, 1]} : vector<2x512xf32> to vector<2x384xf32>
    %262 = arith.negf %261 : vector<2x384xf32>
    %263 = math.exp %262 : vector<2x384xf32>
    %cst_29 = arith.constant 1.000000e+00 : f32
    %264 = vector.broadcast %cst_29 : f32 to vector<2x384xf32>
    %265 = arith.addf %264, %263 : vector<2x384xf32>
    %266 = arith.divf %264, %265 : vector<2x384xf32>
    %267 = vector.extract_strided_slice %266 {offsets = [0, 0], sizes = [2, 128], strides = [1, 1]} : vector<2x384xf32> to vector<2x128xf32>
    %268 = vector.extract_strided_slice %266 {offsets = [0, 128], sizes = [2, 128], strides = [1, 1]} : vector<2x384xf32> to vector<2x128xf32>
    %269 = vector.extract_strided_slice %266 {offsets = [0, 256], sizes = [2, 128], strides = [1, 1]} : vector<2x384xf32> to vector<2x128xf32>
    %270 = vector.extract_strided_slice %260 {offsets = [0, 384], sizes = [2, 128], strides = [1, 1]} : vector<2x512xf32> to vector<2x128xf32>
    %271 = math.tanh %270 : vector<2x128xf32>
    %272 = arith.mulf %268, %233 : vector<2x128xf32>
    %273 = arith.mulf %267, %271 : vector<2x128xf32>
    %274 = arith.addf %272, %273 : vector<2x128xf32>
    %275 = math.tanh %274 : vector<2x128xf32>
    %276 = arith.mulf %269, %275 : vector<2x128xf32>
    %277 = arith.truncf %276 : vector<2x128xf32> to vector<2x128xbf16>
    %278 = tpu.concatenate %277, %258 in 1 : vector<2x128xbf16>, vector<2x128xbf16> -> vector<2x256xbf16>
    %cst_30 = arith.constant dense<0.000000e+00> : vector<2x1024xf32>
    %279 = tpu.matmul %278, %6, %cst_30 {dimension_numbers = #tpu.dot_dimension_numbers<[1], [0], [0], [1], [0, 0, 1, 1], [], []>} : vector<2x256xbf16>, vector<256x1024xbf16>, vector<2x1024xf32> -> vector<2x1024xf32>
    %280 = vector.extract_strided_slice %279 {offsets = [0, 512], sizes = [2, 512], strides = [1, 1]} : vector<2x1024xf32> to vector<2x512xf32>
    %281 = vector.extract_strided_slice %279 {offsets = [0, 0], sizes = [2, 512], strides = [1, 1]} : vector<2x1024xf32> to vector<2x512xf32>
    %282 = arith.addf %281, %9 : vector<2x512xf32>
    %283 = vector.extract_strided_slice %282 {offsets = [0, 0], sizes = [2, 384], strides = [1, 1]} : vector<2x512xf32> to vector<2x384xf32>
    %284 = arith.negf %283 : vector<2x384xf32>
    %285 = math.exp %284 : vector<2x384xf32>
    %cst_31 = arith.constant 1.000000e+00 : f32
    %286 = vector.broadcast %cst_31 : f32 to vector<2x384xf32>
    %287 = arith.addf %286, %285 : vector<2x384xf32>
    %288 = arith.divf %286, %287 : vector<2x384xf32>
    %289 = vector.extract_strided_slice %288 {offsets = [0, 0], sizes = [2, 128], strides = [1, 1]} : vector<2x384xf32> to vector<2x128xf32>
    %290 = vector.extract_strided_slice %288 {offsets = [0, 128], sizes = [2, 128], strides = [1, 1]} : vector<2x384xf32> to vector<2x128xf32>
    %291 = vector.extract_strided_slice %288 {offsets = [0, 256], sizes = [2, 128], strides = [1, 1]} : vector<2x384xf32> to vector<2x128xf32>
    %292 = vector.extract_strided_slice %282 {offsets = [0, 384], sizes = [2, 128], strides = [1, 1]} : vector<2x512xf32> to vector<2x128xf32>
    %293 = math.tanh %292 : vector<2x128xf32>
    %294 = arith.mulf %290, %255 : vector<2x128xf32>
    %295 = arith.mulf %289, %293 : vector<2x128xf32>
    %296 = arith.addf %294, %295 : vector<2x128xf32>
    %297 = math.tanh %296 : vector<2x128xf32>
    %298 = arith.mulf %291, %297 : vector<2x128xf32>
    %299 = arith.truncf %298 : vector<2x128xf32> to vector<2x128xbf16>
    %300 = vector.extract_strided_slice %5 {offsets = [14, 0], sizes = [2, 512], strides = [1, 1]} : vector<16x512xf32> to vector<2x512xf32>
    %301 = arith.addf %300, %280 : vector<2x512xf32>
    %302 = vector.extract_strided_slice %301 {offsets = [0, 0], sizes = [2, 384], strides = [1, 1]} : vector<2x512xf32> to vector<2x384xf32>
    %303 = arith.negf %302 : vector<2x384xf32>
    %304 = math.exp %303 : vector<2x384xf32>
    %cst_32 = arith.constant 1.000000e+00 : f32
    %305 = vector.broadcast %cst_32 : f32 to vector<2x384xf32>
    %306 = arith.addf %305, %304 : vector<2x384xf32>
    %307 = arith.divf %305, %306 : vector<2x384xf32>
    %308 = vector.extract_strided_slice %307 {offsets = [0, 0], sizes = [2, 128], strides = [1, 1]} : vector<2x384xf32> to vector<2x128xf32>
    %309 = vector.extract_strided_slice %307 {offsets = [0, 128], sizes = [2, 128], strides = [1, 1]} : vector<2x384xf32> to vector<2x128xf32>
    %310 = vector.extract_strided_slice %307 {offsets = [0, 256], sizes = [2, 128], strides = [1, 1]} : vector<2x384xf32> to vector<2x128xf32>
    %311 = vector.extract_strided_slice %301 {offsets = [0, 384], sizes = [2, 128], strides = [1, 1]} : vector<2x512xf32> to vector<2x128xf32>
    %312 = math.tanh %311 : vector<2x128xf32>
    %313 = arith.mulf %309, %274 : vector<2x128xf32>
    %314 = arith.mulf %308, %312 : vector<2x128xf32>
    %315 = arith.addf %313, %314 : vector<2x128xf32>
    %316 = math.tanh %315 : vector<2x128xf32>
    %317 = arith.mulf %310, %316 : vector<2x128xf32>
    %318 = arith.truncf %317 : vector<2x128xf32> to vector<2x128xbf16>
    %319 = tpu.concatenate %318, %299 in 1 : vector<2x128xbf16>, vector<2x128xbf16> -> vector<2x256xbf16>
    %cst_33 = arith.constant dense<0.000000e+00> : vector<2x1024xf32>
    %320 = tpu.matmul %319, %6, %cst_33 {dimension_numbers = #tpu.dot_dimension_numbers<[1], [0], [0], [1], [0, 0, 1, 1], [], []>} : vector<2x256xbf16>, vector<256x1024xbf16>, vector<2x1024xf32> -> vector<2x1024xf32>
    %321 = vector.extract_strided_slice %320 {offsets = [0, 0], sizes = [2, 512], strides = [1, 1]} : vector<2x1024xf32> to vector<2x512xf32>
    %322 = arith.addf %321, %9 : vector<2x512xf32>
    %323 = vector.extract_strided_slice %322 {offsets = [0, 0], sizes = [2, 384], strides = [1, 1]} : vector<2x512xf32> to vector<2x384xf32>
    %324 = arith.negf %323 : vector<2x384xf32>
    %325 = math.exp %324 : vector<2x384xf32>
    %cst_34 = arith.constant 1.000000e+00 : f32
    %326 = vector.broadcast %cst_34 : f32 to vector<2x384xf32>
    %327 = arith.addf %326, %325 : vector<2x384xf32>
    %328 = arith.divf %326, %327 : vector<2x384xf32>
    %329 = vector.extract_strided_slice %328 {offsets = [0, 0], sizes = [2, 128], strides = [1, 1]} : vector<2x384xf32> to vector<2x128xf32>
    %330 = vector.extract_strided_slice %328 {offsets = [0, 128], sizes = [2, 128], strides = [1, 1]} : vector<2x384xf32> to vector<2x128xf32>
    %331 = vector.extract_strided_slice %328 {offsets = [0, 256], sizes = [2, 128], strides = [1, 1]} : vector<2x384xf32> to vector<2x128xf32>
    %332 = vector.extract_strided_slice %322 {offsets = [0, 384], sizes = [2, 128], strides = [1, 1]} : vector<2x512xf32> to vector<2x128xf32>
    %333 = math.tanh %332 : vector<2x128xf32>
    %334 = arith.mulf %330, %296 : vector<2x128xf32>
    %335 = arith.mulf %329, %333 : vector<2x128xf32>
    %336 = arith.addf %334, %335 : vector<2x128xf32>
    %337 = math.tanh %336 : vector<2x128xf32>
    %338 = arith.mulf %331, %337 : vector<2x128xf32>
    %c0_35 = arith.constant 0 : index
    %c0_36 = arith.constant 0 : index
    %339 = vector.load %arg5[%c0_35, %c0_36] : memref<1x128xf32, #tpu.memory_space<vmem>>, vector<1x128xf32>
    %340 = vector.broadcast %339 : vector<1x128xf32> to vector<2x128xf32>
    %341 = arith.mulf %338, %340 : vector<2x128xf32>
    %cst_37 = arith.constant dense<0.000000e+00> : vector<2xf32>
    %342 = vector.multi_reduction <add>, %341, %cst_37 [1] : vector<2x128xf32> to vector<2xf32>
    %343 = vector.shape_cast %342 : vector<2xf32> to vector<2x1xf32>
    %c0_38 = arith.constant 0 : index
    %c0_39 = arith.constant 0 : index
    %344 = vector.load %arg6[%c0_38, %c0_39] : memref<1x1xf32, #tpu.memory_space<vmem>>, vector<1x1xf32>
    %345 = vector.broadcast %344 : vector<1x1xf32> to vector<2x1xf32>
    %346 = arith.addf %343, %345 : vector<2x1xf32>
    %c0_40 = arith.constant 0 : index
    %c0_41 = arith.constant 0 : index
    %347 = vector.load %arg7[%c0_40, %c0_41] : memref<2x1xf32, #tpu.memory_space<vmem>>, vector<2x1xf32>
    tpu.vector_store %arg7[%c0_40, %c0_41], %346 {strides = array<i32>} : memref<2x1xf32, #tpu.memory_space<vmem>>, vector<2x1xf32>,
    return
  }
}

</mosaic_0001>

<bundles_post_ra>
// kernel: stock_lstm_forward.1
= control target key start
LH: loop header
LB: loop body
LE: loop exit
PB: predicated region body
PF: predicated region fallthrough
CT: control target
= control target key end

     0   :  { %s4824_s0 = inlined_call_operand.vmem [shape: bf16[16,8], index: 0, kind: input, shape index: {}]   ;;  %s4825_s1 = inlined_call_operand.vmem [shape: bf16[8,512], index: 1, kind: input, shape index: {}]   ;;  %s4826_s2 = inlined_call_operand.vmem [shape: f32[1,512], index: 2, kind: input, shape index: {}]   ;;  %s4827_s3 = inlined_call_operand.hbm [shape: bf16[256,1024], index: 3, kind: input, shape index: {}]   ;;  %s4828_s4 = inlined_call_operand.vmem [shape: f32[1,512], index: 4, kind: input, shape index: {}]   ;;  %s4829_s5 = inlined_call_operand.vmem [shape: f32[1,128], index: 5, kind: input, shape index: {}]   ;;  %s4830_s6 = inlined_call_operand.<no memory space> [shape: f32[1,1], index: 6, kind: input, shape index: {}]   ;;  %s4831_s7 = inlined_call_operand.vmem [shape: f32[2,1], index: 7, kind: output, shape index: {}]  }
   0x1   :  { %v12_v0 = vstv %s4830_s6 }
   0x2   :  { %13 = vst [vmem:[#allocation2] sm:$0x1] %v12_v0 }
   0x3   :  { %14 = vsyncpa [#allocation4], 0  ;;  %s3308_s26 = smov [#allocation3]   ;;  %s3284_s30 = scalar_lea.hbm %s4827_s3, 16384 }
   0x4   :  { %s26_s27 = sshll.u32 %s3308_s26, 4  ;;  %p3285_p0 = scmp.ne.s32.totalorder %s4827_s3, %s3284_s30  ;;  %s27_s27 = int_to_ptr.vmem [resolvable:$true] %s26_s27 }
   0x5   :  { %p3288_p1 = scmp.lt.u32.totalorder %s3284_s30, %s4827_s3 }
   0x7   :  { %p3290_p2 = pnand %p3288_p1, %p3285_p0 }
   0x9   :  { %3293 = shalt.err (!%p3290_p2)
}
   0xa   :  { %s3294_s6 = scalar_lea.vmem %s27_s27, 16384  ;;  %p3299_p4 = scmp.lt.s32.totalorder %s27_s27, %s27_s27 }
   0xb   :  { %p3295_p3 = scmp.ne.s32.totalorder %s27_s27, %s3294_s6  ;;  %p3300_p5 = scmp.lt.s32.totalorder %s3294_s6, %s3294_s6 }
   0xd   :  { %p3301_p6 = por %p3300_p5, %p3299_p4 }
   0xf   :  { %p3302_p7 = pnand %p3301_p6, %p3295_p3 }
  0x11   :  { %3305 = shalt.err (!%p3302_p7)
}
  0x12   :  { %s3309_s12 = smov 512   ;;  %s3310_s13 = smov 32  }
  0x13   :  { %32 = dma.hbm_to_vmem [thread:$0]  %s4827_s3, 16384, %s27_s27, [#allocation4], %s3309_s12, %s3309_s12, %s3310_s13  }
  0x14   :  { %3306 = dma.done.wait [#allocation4], 16384  }
  0x15   :  { %3307 = vsyncadd [#allocation4], 4294950912  ;;  %v4832_v1 = vmov 0   ;;  %v45_v2 = vld [vmem:[%s4825_s1] sm:$0xff]  ;;  %vm88_vm0 = vcmask 1043456   ;;  %v46_v6 = vld [vmem:[%s4825_s1 + $0x8] sm:$0xff] }
  0x16   :  { %133 = vmatprep.mubr.bf16.mxu0 %v4832_v1  ;;  %176 = vmatprep.mubr.bf16.mxu1 %v4832_v1  ;;  %v2834_v3 = vcombine.high %v45_v2, %v45_v2  ;;  %v2833_v4 = vcombine.low %v45_v2, %v45_v2  ;;  %v3025_v5 = vld [vmem:[%s4824_s0] sm:$0xff]   ;;  %v2836_v8 = vcombine.high %v46_v6, %v46_v6  ;;  %v188_v11 = vld [vmem:[#allocation3 + $0x8] sm:$0xff]  ;;  %vm84_vm1 = vcmask 64512  }
  0x17   :  { %v187_v7 = vld [vmem:[#allocation3] sm:$0xff]  ;;  %v2835_v9 = vcombine.low %v46_v6, %v46_v6  ;;  %v192_v12 = vld [vmem:[#allocation3 + $0x28] sm:$0xff]  ;;  %vm2813_vm2 = vcmask 1041408   ;;  %vm2825_vm3 = vcmask 1024  }
  0x18   :  { %v191_v10 = vld [vmem:[#allocation3 + $0x20] sm:$0xff]  ;;  %2837 = vmatprep.subr.msk.bf16.mxu0 %vm88_vm0, %v2834_v3  ;;  %v90_v13 = vsel %vm88_vm0, %v2833_v4, 0  ;;  %v3382_v15 = vcombine.high %v188_v11, %v192_v12  ;;  %v196_v18 = vld [vmem:[#allocation3 + $0x48] sm:$0xff]  ;;  %2839 = vmatprep.subr.msk.bf16.mxu1 %vm88_vm0, %v2836_v8  ;;  %v3389_v22 = vcombine.low %v188_v11, %v192_v12 }
  0x19   :  { %v3380_v14 = vcombine.high %v187_v7, %v191_v10  ;;  %v195_v16 = vld [vmem:[#allocation3 + $0x40] sm:$0xff]  ;;  %102 = vmatpush1.bf16.msra.mxu0 %v90_v13  ;;  %v96_v19 = vsel %vm88_vm0, %v2835_v9, 0  ;;  %v3386_v20 = vcombine.low %v187_v7, %v191_v10  ;;  %v200_v21 = vld [vmem:[#allocation3 + $0x68] sm:$0xff] }
  0x1a   :  { %5134 = vst [vmem:[#allocation7_spill] sm:$0xff] %v3382_v15  ;;  %v199_v17 = vld [vmem:[#allocation3 + $0x60] sm:$0xff]  ;;  %145 = vmatpush1.bf16.msra.mxu1 %v96_v19  ;;  %5136 = vst [vmem:[#allocation9_spill] sm:$0xff] %v3389_v22  ;;  %v3394_v24 = vcombine.high %v196_v18, %v200_v21  ;;  %v204_v27 = vld [vmem:[#allocation3 + $0x88] sm:$0xff]  ;;  %v3403_v30 = vcombine.low %v196_v18, %v200_v21 }
  0x1b   :  { %5133 = vst [vmem:[#allocation6_spill] sm:$0xff] %v3380_v14  ;;  %5135 = vst [vmem:[#allocation8_spill] sm:$0xff] %v3386_v20  ;;  %1006 = vmatprep.subr.bf16.mxu0 %v3380_v14  ;;  %v3391_v23 = vcombine.high %v195_v16, %v199_v17  ;;  %1047 = vmatprep.subr.bf16.mxu1 %v3382_v15  ;;  %v203_v25 = vld [vmem:[#allocation3 + $0x80] sm:$0xff]  ;;  %v208_v28 = vld [vmem:[#allocation3 + $0xa8] sm:$0xff]  ;;  %v3399_v29 = vcombine.low %v195_v16, %v199_v17 }
  0x1c   :  { %5138 = vst [vmem:[#allocation11_spill] sm:$0xff] %v3394_v24  ;;  %v207_v26 = vld [vmem:[#allocation3 + $0xa0] sm:$0xff]  ;;  %2838 = vmatmul.mubr.msk.bf16.vlgmr.msra.gmra.mrb[0].mxu0 %vm84_vm1, %v3025_v5  ;;  %5140 = vst [vmem:[#allocation13_spill] sm:$0xff] %v3403_v30  ;;  %v3408_v32 = vcombine.high %v204_v27, %v208_v28  ;;  %v212_v35 = vld [vmem:[#allocation3 + $0xc8] sm:$0xff]  ;;  %v3417_v38 = vcombine.low %v204_v27, %v208_v28 }
  0x1d   :  { %5137 = vst [vmem:[#allocation10_spill] sm:$0xff] %v3391_v23  ;;  %2840 = vmatmul.mubr.msk.bf16.vlgmr.msra.gmra.mrb[0].mxu1 %vm84_vm1, %v3025_v5  ;;  %1007 = vmatpush1.bf16.msra.mxu0 %v3386_v20  ;;  %5139 = vst [vmem:[#allocation12_spill] sm:$0xff] %v3399_v29  ;;  %v3405_v31 = vcombine.high %v203_v25, %v207_v26  ;;  %v211_v33 = vld [vmem:[#allocation3 + $0xc0] sm:$0xff]  ;;  %v216_v36 = vld [vmem:[#allocation3 + $0xe8] sm:$0xff]  ;;  %v3413_v37 = vcombine.low %v203_v25, %v207_v26 }
  0x1e   :  { %1048 = vmatpush1.bf16.msra.mxu1 %v3389_v22  ;;  %1008 = vmatprep.subr.bf16.mxu0 %v3391_v23  ;;  %5142 = vst [vmem:[#allocation15_spill] sm:$0xff] %v3408_v32  ;;  %v215_v34 = vld [vmem:[#allocation3 + $0xe0] sm:$0xff]  ;;  %5144 = vst [vmem:[#allocation17_spill] sm:$0xff] %v3417_v38  ;;  %v3422_v40 = vcombine.high %v212_v35, %v216_v36  ;;  %v3429_v42 = vcombine.low %v212_v35, %v216_v36  ;;  %v220_v45 = vld [vmem:[#allocation3 + $0x108] sm:$0xff] }
  0x1f   :  { %5141 = vst [vmem:[#allocation14_spill] sm:$0xff] %v3405_v31  ;;  %1049 = vmatprep.subr.bf16.mxu1 %v3394_v24  ;;  %1038 = vmatprep.mubr.bf16.mxu0 %v4832_v1  ;;  %5143 = vst [vmem:[#allocation16_spill] sm:$0xff] %v3413_v37  ;;  %v3419_v39 = vcombine.high %v211_v33, %v215_v34  ;;  %v3425_v41 = vcombine.low %v211_v33, %v215_v34  ;;  %v219_v43 = vld [vmem:[#allocation3 + $0x100] sm:$0xff]  ;;  %v224_v47 = vld [vmem:[#allocation3 + $0x128] sm:$0xff] }
  0x20   :  { %1079 = vmatprep.mubr.bf16.mxu1 %v4832_v1  ;;  %5146 = vst [vmem:[#allocation19_spill] sm:$0xff] %v3422_v40  ;;  %5148 = vst [vmem:[#allocation21_spill] sm:$0xff] %v3429_v42  ;;  %v223_v44 = vld [vmem:[#allocation3 + $0x120] sm:$0xff]  ;;  %v3436_v48 = vcombine.high %v220_v45, %v224_v47  ;;  %v3440_v50 = vcombine.low %v220_v45, %v224_v47  ;;  %v228_v54 = vld [vmem:[#allocation3 + $0x148] sm:$0xff] }
  0x21   :  { %1009 = vmatpush1.bf16.msra.mxu0 %v3399_v29  ;;  %5145 = vst [vmem:[#allocation18_spill] sm:$0xff] %v3419_v39  ;;  %5147 = vst [vmem:[#allocation20_spill] sm:$0xff] %v3425_v41  ;;  %v3434_v46 = vcombine.high %v219_v43, %v223_v44  ;;  %v3438_v49 = vcombine.low %v219_v43, %v223_v44  ;;  %v227_v51 = vld [vmem:[#allocation3 + $0x140] sm:$0xff]  ;;  %v232_v55 = vld [vmem:[#allocation3 + $0x168] sm:$0xff] }
  0x22   :  { %1050 = vmatpush1.bf16.msra.mxu1 %v3403_v30  ;;  %1010 = vmatprep.subr.bf16.mxu0 %v3405_v31  ;;  %5150 = vst [vmem:[#allocation23_spill] sm:$0xff] %v3436_v48  ;;  %5152 = vst [vmem:[#allocation25_spill] sm:$0xff] %v3440_v50  ;;  %v231_v52 = vld [vmem:[#allocation3 + $0x160] sm:$0xff]  ;;  %v3448_v56 = vcombine.high %v228_v54, %v232_v55  ;;  %v3452_v58 = vcombine.low %v228_v54, %v232_v55  ;;  %v236_v61 = vld [vmem:[#allocation3 + $0x188] sm:$0xff] }
  0x23   :  { %1051 = vmatprep.subr.bf16.mxu1 %v3408_v32  ;;  %5149 = vst [vmem:[#allocation22_spill] sm:$0xff] %v3434_v46  ;;  %5151 = vst [vmem:[#allocation24_spill] sm:$0xff] %v3438_v49  ;;  %v3446_v53 = vcombine.high %v227_v51, %v231_v52  ;;  %v3450_v57 = vcombine.low %v227_v51, %v231_v52  ;;  %v235_v59 = vld [vmem:[#allocation3 + $0x180] sm:$0xff]  ;;  %v240_v63 = vld [vmem:[#allocation3 + $0x1a8] sm:$0xff] }
  0x24   :  { %5154 = vst [vmem:[#allocation27_spill] sm:$0xff] %v3448_v56  ;;  %5156 = vst [vmem:[#allocation29_spill] sm:$0xff] %v3452_v58  ;;  %v239_v60 = vld [vmem:[#allocation3 + $0x1a0] sm:$0xff]  ;;  %v3460_v0 = vcombine.high %v236_v61, %v240_v63  ;;  %v3464_v3 = vcombine.low %v236_v61, %v240_v63  ;;  %v244_v6 = vld [vmem:[#allocation3 + $0x1c8] sm:$0xff] }
  0x25   :  { %1011 = vmatpush1.bf16.msra.mxu0 %v3413_v37  ;;  %5153 = vst [vmem:[#allocation26_spill] sm:$0xff] %v3446_v53  ;;  %5155 = vst [vmem:[#allocation28_spill] sm:$0xff] %v3450_v57  ;;  %v3458_v62 = vcombine.high %v235_v59, %v239_v60  ;;  %v3462_v2 = vcombine.low %v235_v59, %v239_v60  ;;  %v243_v4 = vld [vmem:[#allocation3 + $0x1c0] sm:$0xff]  ;;  %v248_v8 = vld [vmem:[#allocation3 + $0x1e8] sm:$0xff] }
  0x26   :  { %1052 = vmatpush1.bf16.msra.mxu1 %v3417_v38  ;;  %1012 = vmatprep.subr.bf16.mxu0 %v3419_v39  ;;  %5158 = vst [vmem:[#allocation31_spill] sm:$0xff] %v3460_v0  ;;  %5160 = vst [vmem:[#allocation33_spill] sm:$0xff] %v3464_v3  ;;  %v247_v5 = vld [vmem:[#allocation3 + $0x1e0] sm:$0xff]  ;;  %v3472_v9 = vcombine.high %v244_v6, %v248_v8  ;;  %v3476_v11 = vcombine.low %v244_v6, %v248_v8  ;;  %v252_v16 = vld [vmem:[#allocation3 + $0x208] sm:$0xff] }
  0x27   :  { %1053 = vmatprep.subr.bf16.mxu1 %v3422_v40  ;;  %5157 = vst [vmem:[#allocation30_spill] sm:$0xff] %v3458_v62  ;;  %5159 = vst [vmem:[#allocation32_spill] sm:$0xff] %v3462_v2  ;;  %v3470_v7 = vcombine.high %v243_v4, %v247_v5  ;;  %v3474_v10 = vcombine.low %v243_v4, %v247_v5  ;;  %v251_v12 = vld [vmem:[#allocation3 + $0x200] sm:$0xff]  ;;  %v256_v18 = vld [vmem:[#allocation3 + $0x228] sm:$0xff] }
  0x28   :  { %5162 = vst [vmem:[#allocation35_spill] sm:$0xff] %v3472_v9  ;;  %5164 = vst [vmem:[#allocation37_spill] sm:$0xff] %v3476_v11  ;;  %v255_v13 = vld [vmem:[#allocation3 + $0x220] sm:$0xff]  ;;  %v3484_v19 = vcombine.high %v252_v16, %v256_v18  ;;  %v3488_v25 = vcombine.low %v252_v16, %v256_v18  ;;  %v260_v28 = vld [vmem:[#allocation3 + $0x248] sm:$0xff] }
  0x29   :  { %1013 = vmatpush1.bf16.msra.mxu0 %v3425_v41  ;;  %5161 = vst [vmem:[#allocation34_spill] sm:$0xff] %v3470_v7  ;;  %5163 = vst [vmem:[#allocation36_spill] sm:$0xff] %v3474_v10  ;;  %v3482_v17 = vcombine.high %v251_v12, %v255_v13  ;;  %v3486_v21 = vcombine.low %v251_v12, %v255_v13  ;;  %v259_v26 = vld [vmem:[#allocation3 + $0x240] sm:$0xff]  ;;  %v264_v34 = vld [vmem:[#allocation3 + $0x268] sm:$0xff] }
  0x2a   :  { %1054 = vmatpush1.bf16.msra.mxu1 %v3429_v42  ;;  %1014 = vmatprep.subr.bf16.mxu0 %v3434_v46  ;;  %5166 = vst [vmem:[#allocation39_spill] sm:$0xff] %v3484_v19  ;;  %5168 = vst [vmem:[#allocation41_spill] sm:$0xff] %v3488_v25  ;;  %v263_v27 = vld [vmem:[#allocation3 + $0x260] sm:$0xff]  ;;  %v3496_v35 = vcombine.high %v260_v28, %v264_v34  ;;  %v3500_v43 = vcombine.low %v260_v28, %v264_v34  ;;  %v268_v47 = vld [vmem:[#allocation3 + $0x288] sm:$0xff] }
  0x2b   :  { %1055 = vmatprep.subr.bf16.mxu1 %v3436_v48  ;;  %5165 = vst [vmem:[#allocation38_spill] sm:$0xff] %v3482_v17  ;;  %5167 = vst [vmem:[#allocation40_spill] sm:$0xff] %v3486_v21  ;;  %v3494_v33 = vcombine.high %v259_v26, %v263_v27  ;;  %v3498_v36 = vcombine.low %v259_v26, %v263_v27  ;;  %v267_v44 = vld [vmem:[#allocation3 + $0x280] sm:$0xff]  ;;  %v272_v52 = vld [vmem:[#allocation3 + $0x2a8] sm:$0xff] }
  0x2c   :  { %5170 = vst [vmem:[#allocation43_spill] sm:$0xff] %v3496_v35  ;;  %5172 = vst [vmem:[#allocation45_spill] sm:$0xff] %v3500_v43  ;;  %v271_v45 = vld [vmem:[#allocation3 + $0x2a0] sm:$0xff]  ;;  %v3508_v54 = vcombine.high %v268_v47, %v272_v52  ;;  %v3512_v59 = vcombine.low %v268_v47, %v272_v52  ;;  %v276_v63 = vld [vmem:[#allocation3 + $0x2c8] sm:$0xff] }
  0x2d   :  { %1015 = vmatpush1.bf16.msra.mxu0 %v3438_v49  ;;  %5169 = vst [vmem:[#allocation42_spill] sm:$0xff] %v3494_v33  ;;  %5171 = vst [vmem:[#allocation44_spill] sm:$0xff] %v3498_v36  ;;  %v3506_v51 = vcombine.high %v267_v44, %v271_v45  ;;  %v3510_v55 = vcombine.low %v267_v44, %v271_v45  ;;  %v275_v60 = vld [vmem:[#allocation3 + $0x2c0] sm:$0xff]  ;;  %v280_v5 = vld [vmem:[#allocation3 + $0x2e8] sm:$0xff] }
  0x2e   :  { %1056 = vmatpush1.bf16.msra.mxu1 %v3440_v50  ;;  %1016 = vmatprep.subr.bf16.mxu0 %v3446_v53  ;;  %5174 = vst [vmem:[#allocation47_spill] sm:$0xff] %v3508_v54  ;;  %5176 = vst [vmem:[#allocation49_spill] sm:$0xff] %v3512_v59  ;;  %v279_v61 = vld [vmem:[#allocation3 + $0x2e0] sm:$0xff]  ;;  %v3520_v6 = vcombine.high %v276_v63, %v280_v5  ;;  %v3524_v12 = vcombine.low %v276_v63, %v280_v5  ;;  %v284_v18 = vld [vmem:[#allocation3 + $0x308] sm:$0xff] }
  0x2f   :  { %1057 = vmatprep.subr.bf16.mxu1 %v3448_v56  ;;  %5173 = vst [vmem:[#allocation46_spill] sm:$0xff] %v3506_v51  ;;  %5175 = vst [vmem:[#allocation48_spill] sm:$0xff] %v3510_v55  ;;  %v3518_v4 = vcombine.high %v275_v60, %v279_v61  ;;  %v3522_v8 = vcombine.low %v275_v60, %v279_v61  ;;  %v283_v13 = vld [vmem:[#allocation3 + $0x300] sm:$0xff]  ;;  %v288_v27 = vld [vmem:[#allocation3 + $0x328] sm:$0xff] }
  0x30   :  { %5178 = vst [vmem:[#allocation51_spill] sm:$0xff] %v3520_v6  ;;  %5180 = vst [vmem:[#allocation53_spill] sm:$0xff] %v3524_v12  ;;  %v287_v16 = vld [vmem:[#allocation3 + $0x320] sm:$0xff]  ;;  %v3534_v45 = vcombine.high %v284_v18, %v288_v27  ;;  %v3536_v47 = vcombine.low %v284_v18, %v288_v27  ;;  %v292_v60 = vld [vmem:[#allocation3 + $0x348] sm:$0xff] }
  0x31   :  { %1017 = vmatpush1.bf16.msra.mxu0 %v3450_v57  ;;  %5177 = vst [vmem:[#allocation50_spill] sm:$0xff] %v3518_v4  ;;  %5179 = vst [vmem:[#allocation52_spill] sm:$0xff] %v3522_v8  ;;  %v3530_v26 = vcombine.high %v283_v13, %v287_v16  ;;  %v3532_v28 = vcombine.low %v283_v13, %v287_v16  ;;  %v291_v34 = vld [vmem:[#allocation3 + $0x340] sm:$0xff]  ;;  %v296_v61 = vld [vmem:[#allocation3 + $0x368] sm:$0xff] }
  0x32   :  { %1058 = vmatpush1.bf16.msra.mxu1 %v3452_v58  ;;  %1018 = vmatprep.subr.bf16.mxu0 %v3458_v62  ;;  %v295_v44 = vld [vmem:[#allocation3 + $0x360] sm:$0xff]  ;;  %5183 = vst [vmem:[#allocation56_spill] sm:$0xff] %v3534_v45  ;;  %5184 = vst [vmem:[#allocation57_spill] sm:$0xff] %v3536_v47  ;;  %v3541_v5 = vcombine.high %v292_v60, %v296_v61  ;;  %v3549_v16 = vcombine.low %v292_v60, %v296_v61 }
  0x33   :  { %1059 = vmatprep.subr.bf16.mxu1 %v3460_v0  ;;  %5181 = vst [vmem:[#allocation54_spill] sm:$0xff] %v3530_v26  ;;  %5182 = vst [vmem:[#allocation55_spill] sm:$0xff] %v3532_v28  ;;  %v3538_v52 = vcombine.high %v291_v34, %v295_v44  ;;  %v299_v63 = vld [vmem:[#allocation3 + $0x380] sm:$0xff]  ;;  %v3545_v13 = vcombine.low %v291_v34, %v295_v44 }
  0x34   :  { %5186 = vst [vmem:[#allocation59_spill] sm:$0xff] %v3541_v5  ;;  %v303_v1 = vld [vmem:[#allocation3 + $0x3a0] sm:$0xff]  ;;  %5188 = vst [vmem:[#allocation61_spill] sm:$0xff] %v3549_v16 }
  0x35   :  { %1019 = vmatpush1.bf16.msra.mxu0 %v3462_v2  ;;  %5185 = vst [vmem:[#allocation58_spill] sm:$0xff] %v3538_v52  ;;  %5187 = vst [vmem:[#allocation60_spill] sm:$0xff] %v3545_v13  ;;  %v3551_v18 = vcombine.high %v299_v63, %v303_v1  ;;  %v3557_v34 = vcombine.low %v299_v63, %v303_v1 }
  0x36   :  { %1060 = vmatpush1.bf16.msra.mxu1 %v3464_v3  ;;  %1020 = vmatprep.subr.bf16.mxu0 %v3470_v7 }
  0x37   :  { %1061 = vmatprep.subr.bf16.mxu1 %v3472_v9  ;;  %5189 = vst [vmem:[#allocation62_spill] sm:$0xff] %v3551_v18  ;;  %5191 = vst [vmem:[#allocation64_spill] sm:$0xff] %v3557_v34 }
  0x39   :  { %1021 = vmatpush1.bf16.msra.mxu0 %v3474_v10 }
  0x3a   :  { %1062 = vmatpush1.bf16.msra.mxu1 %v3476_v11  ;;  %1022 = vmatprep.subr.bf16.mxu0 %v3482_v17 }
  0x3b   :  { %1063 = vmatprep.subr.bf16.mxu1 %v3484_v19 }
  0x3d   :  { %1023 = vmatpush1.bf16.msra.mxu0 %v3486_v21 }
  0x3e   :  { %1064 = vmatpush1.bf16.msra.mxu1 %v3488_v25  ;;  %1024 = vmatprep.subr.bf16.mxu0 %v3494_v33 }
  0x3f   :  { %1065 = vmatprep.subr.bf16.mxu1 %v3496_v35 }
  0x41   :  { %1025 = vmatpush1.bf16.msra.mxu0 %v3498_v36 }
  0x42   :  { %1066 = vmatpush1.bf16.msra.mxu1 %v3500_v43  ;;  %1026 = vmatprep.subr.bf16.mxu0 %v3506_v51 }
  0x43   :  { %1067 = vmatprep.subr.bf16.mxu1 %v3508_v54 }
  0x45   :  { %1027 = vmatpush1.bf16.msra.mxu0 %v3510_v55 }
  0x46   :  { %1068 = vmatpush1.bf16.msra.mxu1 %v3512_v59  ;;  %1028 = vmatprep.subr.bf16.mxu0 %v3518_v4  ;;  %v308_v4 = vld [vmem:[#allocation3 + $0x3c8] sm:$0xff] }
  0x47   :  { %1069 = vmatprep.subr.bf16.mxu1 %v3520_v6  ;;  %v311_v6 = vld [vmem:[#allocation3 + $0x3e0] sm:$0xff] }
  0x49   :  { %1029 = vmatpush1.bf16.msra.mxu0 %v3522_v8  ;;  %v304_v8 = vld [vmem:[#allocation3 + $0x3a8] sm:$0xff] }
  0x4a   :  { %1070 = vmatpush1.bf16.msra.mxu1 %v3524_v12  ;;  %1030 = vmatprep.subr.bf16.mxu0 %v3530_v26  ;;  %v300_v12 = vld [vmem:[#allocation3 + $0x388] sm:$0xff]  ;;  %v307_v26 = vld [vmem:[#allocation3 + $0x3c0] sm:$0xff] }
  0x4b   :  { %1071 = vmatprep.subr.bf16.mxu1 %v3534_v45  ;;  %v3554_v27 = vcombine.high %v300_v12, %v304_v8  ;;  %v312_v45 = vld [vmem:[#allocation3 + $0x3e8] sm:$0xff]  ;;  %v3561_v44 = vcombine.low %v300_v12, %v304_v8  ;;  %v3563_v60 = vcombine.high %v307_v26, %v311_v6  ;;  %v3569_v1 = vcombine.low %v307_v26, %v311_v6 }
  0x4c   :  { %v3566_v61 = vcombine.high %v308_v4, %v312_v45  ;;  %v3573_v8 = vcombine.low %v308_v4, %v312_v45  ;;  %v49_v4 = vlaneseq }
  0x4d   :  { %1031 = vmatpush1.bf16.msra.mxu0 %v3532_v28  ;;  %5190 = vst [vmem:[#allocation63_spill] sm:$0xff] %v3554_v27  ;;  %5192 = vst [vmem:[#allocation65_spill] sm:$0xff] %v3561_v44  ;;  %v194_v28 = vld [vmem:[#allocation3 + $0x38] sm:$0xff] }
  0x4e   :  { %1072 = vmatpush1.bf16.msra.mxu1 %v3536_v47  ;;  %1032 = vmatprep.subr.bf16.mxu0 %v3538_v52  ;;  %5193 = vst [vmem:[#allocation66_spill] sm:$0xff] %v3563_v60  ;;  %5194 = vst [vmem:[#allocation67_spill] sm:$0xff] %v3566_v61  ;;  %v193_v52 = vld [vmem:[#allocation3 + $0x30] sm:$0xff]  ;;  %v190_v47 = vld [vmem:[#allocation3 + $0x18] sm:$0xff]  ;;  %v3588_v45 = vshrl.u32 %v49_v4, 7 }
  0x4f   :  { %1073 = vmatprep.subr.bf16.mxu1 %v3541_v5  ;;  %v189_v5 = vld [vmem:[#allocation3 + $0x10] sm:$0xff]  ;;  %5195 = vst [vmem:[#allocation68_spill] sm:$0xff] %v3569_v1  ;;  %5196 = vst [vmem:[#allocation69_spill] sm:$0xff] %v3573_v8  ;;  %v3578_v63 = vcombine.high %v190_v47, %v194_v28  ;;  %v3586_v26 = vcombine.low %v190_v47, %v194_v28 }
  0x50   :  { %v3575_v12 = vcombine.high %v189_v5, %v193_v52  ;;  %v3584_v6 = vcombine.low %v189_v5, %v193_v52  ;;  %5200 = vst [vmem:[#allocation73_spill] sm:$0xff] %v3588_v45  ;;  %v4889_v52 = vsub.s32 3, %v3588_v45 }
  0x51   :  { %1033 = vmatpush1.bf16.msra.mxu0 %v3545_v13  ;;  %5198 = vst [vmem:[#allocation71_spill] sm:$0xff] %v3578_v63  ;;  %5199 = vst [vmem:[#allocation72_spill] sm:$0xff] %v3586_v26 }
  0x52   :  { %1074 = vmatpush1.bf16.msra.mxu1 %v3549_v16  ;;  %1034 = vmatprep.subr.bf16.mxu0 %v3551_v18  ;;  %5197 = vst [vmem:[#allocation70_spill] sm:$0xff] %v3575_v12 }
  0x53   :  { %1075 = vmatprep.subr.bf16.mxu1 %v3554_v27 }
  0x55   :  { %1035 = vmatpush1.bf16.msra.mxu0 %v3557_v34 }
  0x56   :  { %1076 = vmatpush1.bf16.msra.mxu1 %v3561_v44  ;;  %1036 = vmatprep.subr.bf16.mxu0 %v3563_v60  ;;  %v4874_v60 = vsub.s32 0, %v3588_v45 }
  0x57   :  { %1077 = vmatprep.subr.bf16.mxu1 %v3566_v61  ;;  %v47_v61 = vld [vmem:[%s4826_s2] sm:$0xf] }
  0x58   :  { %v64_v34 = vrot.slane %v47_v61, %v4889_v52 }
  0x59   :  { %1037 = vmatpush1.bf16.msra.mxu0 %v3569_v1  ;;  %v4879_v1 = vsub.s32 1, %v3588_v45 }
  0x5a   :  { %1078 = vmatpush1.bf16.msra.mxu1 %v3573_v8  ;;  %1088 = vmatprep.subr.bf16.mxu0 %v3575_v12  ;;  %v4884_v8 = vsub.s32 2, %v3588_v45 }
  0x5b   :  { %1129 = vmatprep.subr.bf16.mxu1 %v3578_v63  ;;  %v52_v63 = vrot.slane %v47_v61, %v4874_v60  ;;  %v56_v28 = vrot.slane %v47_v61, %v4879_v1 }
  0x5c   :  { %v60_v5 = vrot.slane %v47_v61, %v4884_v8 }
  0xef   :  { %v135_v47 = vpop.f32.mrb[0].mxu0 }
  0xf0   :  { %v3603_v4 = vadd.f32 %v135_v47, %v52_v63  ;;  %v137_v12 = vpop.f32.mrb[1].mxu0  ;;  %v178_v44 = vpop.f32.mrb[0].mxu1 }
  0xf1   :  { %v3607_v27 = vadd.f32 %v137_v12, %v56_v28  ;;  %v139_v18 = vpop.f32.mrb[2].mxu0  ;;  %v180_v60 = vpop.f32.mrb[1].mxu1  ;;  %v3619_v61 = vadd.f32 %v178_v44, %v60_v5 }
  0xf2   :  { %v2841_v16 = vmul.f32 -1.442695, %v3603_v4  ;;  %v3610_v13 = vadd.f32 %v139_v18, %v52_v63  ;;  %v141_v1 = vpop.f32.mrb[3].mxu0  ;;  %v182_v59 = vpop.f32.mrb[2].mxu1  ;;  %v3622_v52 = vadd.f32 %v180_v60, %v64_v34  ;;  %v197_v60 = vld [vmem:[#allocation3 + $0x50] sm:$0xff] }
  0xf3   :  { %5201 = vst [vmem:[#allocation74_spill] sm:$0xff] %v3607_v27  ;;  %v2842_v55 = vmul.f32 -1.442695, %v3607_v27  ;;  %v3613_v8 = vadd.f32 %v141_v1, %v56_v28  ;;  %v3615_v47 = vadd.f32 %v182_v59, %v60_v5  ;;  %v184_v54 = vpop.f32.mrb[3].mxu1  ;;  %5206 = vst [vmem:[#allocation79_spill] sm:$0xff] %v3619_v61  ;;  %v5215_v27 = vmov 0  }
  0xf4   :  { %5202 = vst [vmem:[#allocation75_spill] sm:$0xff] %v3610_v13  ;;  %3028 = vpow2.f32 %v2841_v16  ;;  %v3617_v45 = vadd.f32 %v184_v54, %v64_v34  ;;  %v2843_v12 = vmul.f32 -1.442695, %v3619_v61  ;;  %5207 = vst [vmem:[#allocation80_spill] sm:$0xff] %v3622_v52  ;;  %v218_v61 = vld [vmem:[#allocation3 + $0xf8] sm:$0xff] }
  0xf5   :  { %5203 = vst [vmem:[#allocation76_spill] sm:$0xff] %v3613_v8  ;;  %5204 = vst [vmem:[#allocation77_spill] sm:$0xff] %v3615_v47  ;;  %3030 = vpow2.f32 %v2842_v55  ;;  %v198_v47 = vld [vmem:[#allocation3 + $0x58] sm:$0xff] }
  0xf6   :  { %5205 = vst [vmem:[#allocation78_spill] sm:$0xff] %v3617_v45  ;;  %3032 = vpow2.f32 %v2843_v12 }
  0xf7   :  { %3034 = vtanh.f32 %v3622_v52  ;;  %v214_v52 = vld [vmem:[#allocation3 + $0xd8] sm:$0xff] }
  0xfe   :  { %v3029_v18 = vpop.eup %3028 }
  0xff   :  { %v3031_v63 = vpop.eup %3030  ;;  %v350_v13 = vadd.f32 1.0, %v3029_v18  ;;  %v201_v18 = vld [vmem:[#allocation3 + $0x70] sm:$0xff] }
 0x100   :  { %v351_v1 = vadd.f32 1.0, %v3031_v63  ;;  %v3033_v59 = vpop.eup %3032  ;;  %v202_v63 = vld [vmem:[#allocation3 + $0x78] sm:$0xff]  ;;  %v3630_v8 = vcombine.high %v197_v60, %v201_v18 }
 0x101   :  { %3036 = vrcp.f32 %v350_v13  ;;  %v3035_v16 = vpop.eup %3034  ;;  %v352_v28 = vadd.f32 1.0, %v3033_v59  ;;  %v3632_v59 = vcombine.high %v198_v47, %v202_v63 }
 0x102   :  { %3038 = vrcp.f32 %v351_v1  ;;  %5209 = vst [vmem:[#allocation82_spill] sm:$0xff] %v3630_v8 }
 0x103   :  { %3040 = vrcp.f32 %v352_v28  ;;  %5210 = vst [vmem:[#allocation83_spill] sm:$0xff] %v3632_v59  ;;  %v206_v28 = vld [vmem:[#allocation3 + $0x98] sm:$0xff] }
 0x10b   :  { %v3037_v54 = vpop.eup %3036 }
 0x10c   :  { %v3039_v55 = vpop.eup %3038  ;;  %v361_v44 = vmul.f32 %v3037_v54, %v3035_v16  ;;  %v205_v16 = vld [vmem:[#allocation3 + $0x90] sm:$0xff] }
 0x10d   :  { %v360_v5 = vmul.f32 0.0, %v3039_v55  ;;  %v3041_v34 = vpop.eup %3040  ;;  %v209_v54 = vld [vmem:[#allocation3 + $0xb0] sm:$0xff]  ;;  %v210_v55 = vld [vmem:[#allocation3 + $0xb8] sm:$0xff] }
 0x10f   :  { %v3625_v45 = vadd.f32 %v361_v44, %v360_v5  ;;  %v3638_v44 = vcombine.low %v197_v60, %v201_v18  ;;  %v3640_v5 = vcombine.low %v198_v47, %v202_v63  ;;  %v3652_v47 = vcombine.low %v205_v16, %v209_v54 }
 0x110   :  { %v3654_v60 = vcombine.low %v206_v28, %v210_v55  ;;  %v3660_v63 = vcombine.high %v214_v52, %v218_v61 }
 0x111   :  { %5208 = vst [vmem:[#allocation81_spill] sm:$0xff] %v3625_v45  ;;  %3042 = vtanh.f32 %v3625_v45  ;;  %5211 = vst [vmem:[#allocation84_spill] sm:$0xff] %v3638_v44  ;;  %v217_v45 = vld [vmem:[#allocation3 + $0xf0] sm:$0xff] }
 0x112   :  { %5212 = vst [vmem:[#allocation85_spill] sm:$0xff] %v3640_v5  ;;  %5216 = vst [vmem:[#allocation88_spill] sm:$0xff] %v3652_v47 }
 0x113   :  { %5217 = vst [vmem:[#allocation89_spill] sm:$0xff] %v3654_v60  ;;  %5219 = vst [vmem:[#allocation91_spill] sm:$0xff] %v3660_v63 }
 0x11b   :  { %v3043_v12 = vpop.eup %3042 }
 0x11c   :  { %v364_v13 = vmul.f32 %v3043_v12, %v3041_v34  ;;  %v3644_v34 = vcombine.high %v205_v16, %v209_v54  ;;  %v3646_v12 = vcombine.high %v206_v28, %v210_v55  ;;  %v3666_v54 = vcombine.low %v214_v52, %v218_v61 }
 0x11e   :  { %v3628_v1 = vpack.c.bf16 %v364_v13, %v364_v13  ;;  %5213 = vst [vmem:[#allocation86_spill] sm:$0xff] %v3644_v34  ;;  %5214 = vst [vmem:[#allocation87_spill] sm:$0xff] %v3646_v12  ;;  %v213_v13 = vld [vmem:[#allocation3 + $0xd0] sm:$0xff] }
 0x11f   :  { %v3658_v18 = vcombine.high %v213_v13, %v217_v45  ;;  %v3664_v16 = vcombine.low %v213_v13, %v217_v45  ;;  %5221 = vst [vmem:[#allocation93_spill] sm:$0xff] %v3666_v54 }
 0x120   :  { %1039 = vmatmul.mubr.bf16.vlgmr.msra.gmra.mrb[4].mxu0 %v3628_v1  ;;  %1080 = vmatmul.mubr.bf16.vlgmr.msra.gmra.mrb[4].mxu1 %v3628_v1 }
 0x121   :  { %1089 = vmatpush1.bf16.msra.mxu0 %v3584_v6  ;;  %1130 = vmatpush1.bf16.msra.mxu1 %v3586_v26  ;;  %5218 = vst [vmem:[#allocation90_spill] sm:$0xff] %v3658_v18  ;;  %v222_v26 = vld [vmem:[#allocation3 + $0x118] sm:$0xff]  ;;  %5220 = vst [vmem:[#allocation92_spill] sm:$0xff] %v3664_v16 }
 0x122   :  { %1090 = vmatprep.subr.bf16.mxu0 %v3630_v8  ;;  %1131 = vmatprep.subr.bf16.mxu1 %v3632_v59  ;;  %v221_v59 = vld [vmem:[#allocation3 + $0x110] sm:$0xff] }
 0x123   :  { %1120 = vmatprep.mubr.bf16.mxu0 %v5215_v27  ;;  %1161 = vmatprep.mubr.bf16.mxu1 %v5215_v27  ;;  %v225_v8 = vld [vmem:[#allocation3 + $0x130] sm:$0xff]  ;;  %v226_v27 = vld [vmem:[#allocation3 + $0x138] sm:$0xff] }
 0x124   :  { %v3670_v28 = vcombine.high %v221_v59, %v225_v8  ;;  %v3672_v55 = vcombine.high %v222_v26, %v226_v27  ;;  %v3676_v45 = vcombine.low %v221_v59, %v225_v8  ;;  %v3678_v52 = vcombine.low %v222_v26, %v226_v27 }
 0x125   :  { %1091 = vmatpush1.bf16.msra.mxu0 %v3638_v44  ;;  %1132 = vmatpush1.bf16.msra.mxu1 %v3640_v5  ;;  %v230_v5 = vld [vmem:[#allocation3 + $0x158] sm:$0xff] }
 0x126   :  { %1092 = vmatprep.subr.bf16.mxu0 %v3644_v34  ;;  %1133 = vmatprep.subr.bf16.mxu1 %v3646_v12  ;;  %5222 = vst [vmem:[#allocation94_spill] sm:$0xff] %v3670_v28  ;;  %5223 = vst [vmem:[#allocation95_spill] sm:$0xff] %v3672_v55  ;;  %v229_v12 = vld [vmem:[#allocation3 + $0x150] sm:$0xff]  ;;  %v234_v44 = vld [vmem:[#allocation3 + $0x178] sm:$0xff] }
 0x127   :  { %v233_v34 = vld [vmem:[#allocation3 + $0x170] sm:$0xff]  ;;  %5224 = vst [vmem:[#allocation96_spill] sm:$0xff] %v3676_v45  ;;  %5225 = vst [vmem:[#allocation97_spill] sm:$0xff] %v3678_v52  ;;  %v3684_v13 = vcombine.high %v230_v5, %v234_v44  ;;  %v3690_v26 = vcombine.low %v230_v5, %v234_v44 }
 0x128   :  { %v3682_v61 = vcombine.high %v229_v12, %v233_v34  ;;  %v3688_v8 = vcombine.low %v229_v12, %v233_v34 }
 0x129   :  { %1093 = vmatpush1.bf16.msra.mxu0 %v3652_v47  ;;  %1134 = vmatpush1.bf16.msra.mxu1 %v3654_v60  ;;  %5227 = vst [vmem:[#allocation99_spill] sm:$0xff] %v3684_v13  ;;  %v238_v60 = vld [vmem:[#allocation3 + $0x198] sm:$0xff]  ;;  %5229 = vst [vmem:[#allocation101_spill] sm:$0xff] %v3690_v26 }
 0x12a   :  { %1094 = vmatprep.subr.bf16.mxu0 %v3658_v18  ;;  %1135 = vmatprep.subr.bf16.mxu1 %v3660_v63  ;;  %5226 = vst [vmem:[#allocation98_spill] sm:$0xff] %v3682_v61  ;;  %v237_v63 = vld [vmem:[#allocation3 + $0x190] sm:$0xff]  ;;  %v242_v47 = vld [vmem:[#allocation3 + $0x1b8] sm:$0xff]  ;;  %5228 = vst [vmem:[#allocation100_spill] sm:$0xff] %v3688_v8 }
 0x12b   :  { %v241_v18 = vld [vmem:[#allocation3 + $0x1b0] sm:$0xff]  ;;  %v3696_v27 = vcombine.high %v238_v60, %v242_v47  ;;  %v3702_v44 = vcombine.low %v238_v60, %v242_v47 }
 0x12c   :  { %v3694_v59 = vcombine.high %v237_v63, %v241_v18  ;;  %v3700_v34 = vcombine.low %v237_v63, %v241_v18 }
 0x12d   :  { %1095 = vmatpush1.bf16.msra.mxu0 %v3664_v16  ;;  %1136 = vmatpush1.bf16.msra.mxu1 %v3666_v54  ;;  %5231 = vst [vmem:[#allocation103_spill] sm:$0xff] %v3696_v27  ;;  %v246_v54 = vld [vmem:[#allocation3 + $0x1d8] sm:$0xff]  ;;  %5233 = vst [vmem:[#allocation105_spill] sm:$0xff] %v3702_v44 }
 0x12e   :  { %1096 = vmatprep.subr.bf16.mxu0 %v3670_v28  ;;  %1137 = vmatprep.subr.bf16.mxu1 %v3672_v55  ;;  %5230 = vst [vmem:[#allocation102_spill] sm:$0xff] %v3694_v59  ;;  %v245_v55 = vld [vmem:[#allocation3 + $0x1d0] sm:$0xff]  ;;  %v250_v16 = vld [vmem:[#allocation3 + $0x1f8] sm:$0xff]  ;;  %5232 = vst [vmem:[#allocation104_spill] sm:$0xff] %v3700_v34 }
 0x12f   :  { %v249_v28 = vld [vmem:[#allocation3 + $0x1f0] sm:$0xff]  ;;  %v3708_v12 = vcombine.high %v246_v54, %v250_v16  ;;  %v3714_v47 = vcombine.low %v246_v54, %v250_v16 }
 0x130   :  { %v3706_v5 = vcombine.high %v245_v55, %v249_v28  ;;  %v3712_v18 = vcombine.low %v245_v55, %v249_v28 }
 0x131   :  { %1097 = vmatpush1.bf16.msra.mxu0 %v3676_v45  ;;  %1138 = vmatpush1.bf16.msra.mxu1 %v3678_v52  ;;  %5235 = vst [vmem:[#allocation107_spill] sm:$0xff] %v3708_v12  ;;  %v254_v52 = vld [vmem:[#allocation3 + $0x218] sm:$0xff]  ;;  %5237 = vst [vmem:[#allocation109_spill] sm:$0xff] %v3714_v47 }
 0x132   :  { %1098 = vmatprep.subr.bf16.mxu0 %v3682_v61  ;;  %1139 = vmatprep.subr.bf16.mxu1 %v3684_v13  ;;  %5234 = vst [vmem:[#allocation106_spill] sm:$0xff] %v3706_v5  ;;  %v253_v13 = vld [vmem:[#allocation3 + $0x210] sm:$0xff]  ;;  %v258_v45 = vld [vmem:[#allocation3 + $0x238] sm:$0xff]  ;;  %5236 = vst [vmem:[#allocation108_spill] sm:$0xff] %v3712_v18 }
 0x133   :  { %v257_v61 = vld [vmem:[#allocation3 + $0x230] sm:$0xff]  ;;  %v3720_v63 = vcombine.high %v254_v52, %v258_v45  ;;  %v3726_v16 = vcombine.low %v254_v52, %v258_v45 }
 0x134   :  { %v3718_v60 = vcombine.high %v253_v13, %v257_v61  ;;  %v3724_v28 = vcombine.low %v253_v13, %v257_v61 }
 0x135   :  { %1099 = vmatpush1.bf16.msra.mxu0 %v3688_v8  ;;  %1140 = vmatpush1.bf16.msra.mxu1 %v3690_v26  ;;  %5239 = vst [vmem:[#allocation111_spill] sm:$0xff] %v3720_v63  ;;  %v262_v26 = vld [vmem:[#allocation3 + $0x258] sm:$0xff]  ;;  %5241 = vst [vmem:[#allocation113_spill] sm:$0xff] %v3726_v16 }
 0x136   :  { %1100 = vmatprep.subr.bf16.mxu0 %v3694_v59  ;;  %1141 = vmatprep.subr.bf16.mxu1 %v3696_v27  ;;  %5238 = vst [vmem:[#allocation110_spill] sm:$0xff] %v3718_v60  ;;  %v261_v27 = vld [vmem:[#allocation3 + $0x250] sm:$0xff]  ;;  %v266_v8 = vld [vmem:[#allocation3 + $0x278] sm:$0xff]  ;;  %5240 = vst [vmem:[#allocation112_spill] sm:$0xff] %v3724_v28 }
 0x137   :  { %v265_v59 = vld [vmem:[#allocation3 + $0x270] sm:$0xff]  ;;  %v3732_v55 = vcombine.high %v262_v26, %v266_v8  ;;  %v3738_v45 = vcombine.low %v262_v26, %v266_v8 }
 0x138   :  { %v3730_v54 = vcombine.high %v261_v27, %v265_v59  ;;  %v3736_v61 = vcombine.low %v261_v27, %v265_v59 }
 0x139   :  { %1101 = vmatpush1.bf16.msra.mxu0 %v3700_v34  ;;  %1142 = vmatpush1.bf16.msra.mxu1 %v3702_v44  ;;  %5243 = vst [vmem:[#allocation115_spill] sm:$0xff] %v3732_v55  ;;  %v270_v44 = vld [vmem:[#allocation3 + $0x298] sm:$0xff]  ;;  %5245 = vst [vmem:[#allocation117_spill] sm:$0xff] %v3738_v45 }
 0x13a   :  { %1102 = vmatprep.subr.bf16.mxu0 %v3706_v5  ;;  %1143 = vmatprep.subr.bf16.mxu1 %v3708_v12  ;;  %5242 = vst [vmem:[#allocation114_spill] sm:$0xff] %v3730_v54  ;;  %v269_v12 = vld [vmem:[#allocation3 + $0x290] sm:$0xff]  ;;  %v274_v34 = vld [vmem:[#allocation3 + $0x2b8] sm:$0xff]  ;;  %5244 = vst [vmem:[#allocation116_spill] sm:$0xff] %v3736_v61 }
 0x13b   :  { %v273_v5 = vld [vmem:[#allocation3 + $0x2b0] sm:$0xff]  ;;  %v3744_v13 = vcombine.high %v270_v44, %v274_v34  ;;  %v3750_v8 = vcombine.low %v270_v44, %v274_v34 }
 0x13c   :  { %v3742_v52 = vcombine.high %v269_v12, %v273_v5  ;;  %v3748_v59 = vcombine.low %v269_v12, %v273_v5 }
 0x13d   :  { %1103 = vmatpush1.bf16.msra.mxu0 %v3712_v18  ;;  %1144 = vmatpush1.bf16.msra.mxu1 %v3714_v47  ;;  %5247 = vst [vmem:[#allocation119_spill] sm:$0xff] %v3744_v13  ;;  %v278_v47 = vld [vmem:[#allocation3 + $0x2d8] sm:$0xff]  ;;  %5249 = vst [vmem:[#allocation121_spill] sm:$0xff] %v3750_v8 }
 0x13e   :  { %1104 = vmatprep.subr.bf16.mxu0 %v3718_v60  ;;  %1145 = vmatprep.subr.bf16.mxu1 %v3720_v63  ;;  %5246 = vst [vmem:[#allocation118_spill] sm:$0xff] %v3742_v52  ;;  %v277_v63 = vld [vmem:[#allocation3 + $0x2d0] sm:$0xff]  ;;  %v282_v18 = vld [vmem:[#allocation3 + $0x2f8] sm:$0xff]  ;;  %5248 = vst [vmem:[#allocation120_spill] sm:$0xff] %v3748_v59 }
 0x13f   :  { %v281_v60 = vld [vmem:[#allocation3 + $0x2f0] sm:$0xff]  ;;  %v3756_v27 = vcombine.high %v278_v47, %v282_v18  ;;  %v3762_v34 = vcombine.low %v278_v47, %v282_v18 }
 0x140   :  { %v3754_v26 = vcombine.high %v277_v63, %v281_v60  ;;  %v3760_v5 = vcombine.low %v277_v63, %v281_v60 }
 0x141   :  { %1105 = vmatpush1.bf16.msra.mxu0 %v3724_v28  ;;  %1146 = vmatpush1.bf16.msra.mxu1 %v3726_v16  ;;  %5251 = vst [vmem:[#allocation123_spill] sm:$0xff] %v3756_v27  ;;  %v286_v16 = vld [vmem:[#allocation3 + $0x318] sm:$0xff]  ;;  %5253 = vst [vmem:[#allocation125_spill] sm:$0xff] %v3762_v34 }
 0x142   :  { %1106 = vmatprep.subr.bf16.mxu0 %v3730_v54  ;;  %1147 = vmatprep.subr.bf16.mxu1 %v3732_v55  ;;  %5250 = vst [vmem:[#allocation122_spill] sm:$0xff] %v3754_v26  ;;  %v285_v55 = vld [vmem:[#allocation3 + $0x310] sm:$0xff]  ;;  %v290_v28 = vld [vmem:[#allocation3 + $0x338] sm:$0xff]  ;;  %5252 = vst [vmem:[#allocation124_spill] sm:$0xff] %v3760_v5 }
 0x143   :  { %v289_v54 = vld [vmem:[#allocation3 + $0x330] sm:$0xff]  ;;  %v3768_v12 = vcombine.high %v286_v16, %v290_v28  ;;  %v3774_v18 = vcombine.low %v286_v16, %v290_v28 }
 0x144   :  { %v3766_v44 = vcombine.high %v285_v55, %v289_v54  ;;  %v3772_v60 = vcombine.low %v285_v55, %v289_v54 }
 0x145   :  { %1107 = vmatpush1.bf16.msra.mxu0 %v3736_v61  ;;  %1148 = vmatpush1.bf16.msra.mxu1 %v3738_v45  ;;  %5255 = vst [vmem:[#allocation127_spill] sm:$0xff] %v3768_v12  ;;  %v294_v45 = vld [vmem:[#allocation3 + $0x358] sm:$0xff]  ;;  %5257 = vst [vmem:[#allocation129_spill] sm:$0xff] %v3774_v18 }
 0x146   :  { %1108 = vmatprep.subr.bf16.mxu0 %v3742_v52  ;;  %1149 = vmatprep.subr.bf16.mxu1 %v3744_v13  ;;  %5254 = vst [vmem:[#allocation126_spill] sm:$0xff] %v3766_v44  ;;  %v293_v13 = vld [vmem:[#allocation3 + $0x350] sm:$0xff]  ;;  %v298_v61 = vld [vmem:[#allocation3 + $0x378] sm:$0xff]  ;;  %5256 = vst [vmem:[#allocation128_spill] sm:$0xff] %v3772_v60 }
 0x147   :  { %v297_v52 = vld [vmem:[#allocation3 + $0x370] sm:$0xff]  ;;  %v3780_v63 = vcombine.high %v294_v45, %v298_v61  ;;  %v3786_v28 = vcombine.low %v294_v45, %v298_v61 }
 0x148   :  { %v3778_v47 = vcombine.high %v293_v13, %v297_v52  ;;  %v3784_v54 = vcombine.low %v293_v13, %v297_v52 }
 0x149   :  { %1109 = vmatpush1.bf16.msra.mxu0 %v3748_v59  ;;  %1150 = vmatpush1.bf16.msra.mxu1 %v3750_v8  ;;  %5259 = vst [vmem:[#allocation131_spill] sm:$0xff] %v3780_v63  ;;  %v302_v8 = vld [vmem:[#allocation3 + $0x398] sm:$0xff]  ;;  %5261 = vst [vmem:[#allocation133_spill] sm:$0xff] %v3786_v28 }
 0x14a   :  { %1110 = vmatprep.subr.bf16.mxu0 %v3754_v26  ;;  %1151 = vmatprep.subr.bf16.mxu1 %v3756_v27  ;;  %5258 = vst [vmem:[#allocation130_spill] sm:$0xff] %v3778_v47  ;;  %v301_v27 = vld [vmem:[#allocation3 + $0x390] sm:$0xff]  ;;  %v306_v59 = vld [vmem:[#allocation3 + $0x3b8] sm:$0xff]  ;;  %5260 = vst [vmem:[#allocation132_spill] sm:$0xff] %v3784_v54 }
 0x14b   :  { %v305_v26 = vld [vmem:[#allocation3 + $0x3b0] sm:$0xff]  ;;  %v3792_v55 = vcombine.high %v302_v8, %v306_v59  ;;  %v3798_v61 = vcombine.low %v302_v8, %v306_v59  ;;  %v5272_v8 = vld [vmem:[#allocation49_spill] sm:$0xff] }
 0x14c   :  { %v3790_v16 = vcombine.high %v301_v27, %v305_v26  ;;  %v3796_v52 = vcombine.low %v301_v27, %v305_v26  ;;  %v5271_v59 = vld [vmem:[#allocation48_spill] sm:$0xff]  ;;  %v5273_v26 = vld [vmem:[#allocation50_spill] sm:$0xff]  ;;  %v5274_v27 = vld [vmem:[#allocation51_spill] sm:$0xff] }
 0x14d   :  { %1111 = vmatpush1.bf16.msra.mxu0 %v3760_v5  ;;  %1152 = vmatpush1.bf16.msra.mxu1 %v3762_v34  ;;  %5263 = vst [vmem:[#allocation135_spill] sm:$0xff] %v3792_v55  ;;  %v310_v34 = vld [vmem:[#allocation3 + $0x3d8] sm:$0xff]  ;;  %5265 = vst [vmem:[#allocation137_spill] sm:$0xff] %v3798_v61 }
 0x14e   :  { %1112 = vmatprep.subr.bf16.mxu0 %v3766_v44  ;;  %1153 = vmatprep.subr.bf16.mxu1 %v3768_v12  ;;  %5262 = vst [vmem:[#allocation134_spill] sm:$0xff] %v3790_v16  ;;  %v309_v12 = vld [vmem:[#allocation3 + $0x3d0] sm:$0xff]  ;;  %v314_v5 = vld [vmem:[#allocation3 + $0x3f8] sm:$0xff]  ;;  %5264 = vst [vmem:[#allocation136_spill] sm:$0xff] %v3796_v52 }
 0x14f   :  { %v313_v44 = vld [vmem:[#allocation3 + $0x3f0] sm:$0xff]  ;;  %v3804_v13 = vcombine.high %v310_v34, %v314_v5 }
 0x150   :  { %v3802_v45 = vcombine.high %v309_v12, %v313_v44 }
 0x151   :  { %1113 = vmatpush1.bf16.msra.mxu0 %v3772_v60  ;;  %1154 = vmatpush1.bf16.msra.mxu1 %v3774_v18  ;;  %5267 = vst [vmem:[#allocation139_spill] sm:$0xff] %v3804_v13 }
 0x152   :  { %1114 = vmatprep.subr.bf16.mxu0 %v3778_v47  ;;  %1155 = vmatprep.subr.bf16.mxu1 %v3780_v63  ;;  %5266 = vst [vmem:[#allocation138_spill] sm:$0xff] %v3802_v45  ;;  %v3808_v63 = vcombine.low %v309_v12, %v313_v44  ;;  %v5277_v44 = vld [vmem:[#allocation54_spill] sm:$0xff]  ;;  %v5278_v12 = vld [vmem:[#allocation56_spill] sm:$0xff] }
 0x154   :  { %5268 = vst [vmem:[#allocation140_spill] sm:$0xff] %v3808_v63 }
 0x155   :  { %1115 = vmatpush1.bf16.msra.mxu0 %v3784_v54  ;;  %1156 = vmatpush1.bf16.msra.mxu1 %v3786_v28  ;;  %v3810_v54 = vcombine.low %v310_v34, %v314_v5  ;;  %v5275_v5 = vld [vmem:[#allocation52_spill] sm:$0xff]  ;;  %v5276_v34 = vld [vmem:[#allocation53_spill] sm:$0xff] }
 0x156   :  { %1116 = vmatprep.subr.bf16.mxu0 %v3790_v16  ;;  %1157 = vmatprep.subr.bf16.mxu1 %v3792_v55 }
 0x157   :  { %5269 = vst [vmem:[#allocation141_spill] sm:$0xff] %v3810_v54 }
 0x159   :  { %1117 = vmatpush1.bf16.msra.mxu0 %v3796_v52  ;;  %1158 = vmatpush1.bf16.msra.mxu1 %v3798_v61 }
 0x15a   :  { %1118 = vmatprep.subr.bf16.mxu0 %v3802_v45  ;;  %1159 = vmatprep.subr.bf16.mxu1 %v3804_v13 }
 0x15d   :  { %1119 = vmatpush1.bf16.msra.mxu0 %v3808_v63  ;;  %1160 = vmatpush1.bf16.msra.mxu1 %v3810_v54 }
 0x15e   :  { %1250 = vmatprep.subr.bf16.mxu0 %v3380_v14  ;;  %1291 = vmatprep.subr.bf16.mxu1 %v3382_v15 }
 0x160   :  { %1121 = vmatmul.mubr.bf16.vlgmr.msra.gmra.mrb[8].mxu0 %v3628_v1  ;;  %1162 = vmatmul.mubr.bf16.vlgmr.msra.gmra.mrb[8].mxu1 %v3628_v1  ;;  %v5270_v1 = vld [vmem:[#allocation47_spill] sm:$0xff] }
 0x161   :  { %1251 = vmatpush1.bf16.msra.mxu0 %v3386_v20  ;;  %1292 = vmatpush1.bf16.msra.mxu1 %v3389_v22 }
 0x162   :  { %1252 = vmatprep.subr.bf16.mxu0 %v3391_v23  ;;  %1293 = vmatprep.subr.bf16.mxu1 %v3394_v24 }
 0x165   :  { %1253 = vmatpush1.bf16.msra.mxu0 %v3399_v29  ;;  %1294 = vmatpush1.bf16.msra.mxu1 %v3403_v30 }
 0x166   :  { %1254 = vmatprep.subr.bf16.mxu0 %v3405_v31  ;;  %1295 = vmatprep.subr.bf16.mxu1 %v3408_v32 }
 0x169   :  { %1255 = vmatpush1.bf16.msra.mxu0 %v3413_v37  ;;  %1296 = vmatpush1.bf16.msra.mxu1 %v3417_v38 }
 0x16a   :  { %1256 = vmatprep.subr.bf16.mxu0 %v3419_v39  ;;  %1297 = vmatprep.subr.bf16.mxu1 %v3422_v40 }
 0x16d   :  { %1257 = vmatpush1.bf16.msra.mxu0 %v3425_v41  ;;  %1298 = vmatpush1.bf16.msra.mxu1 %v3429_v42 }
 0x16e   :  { %1258 = vmatprep.subr.bf16.mxu0 %v3434_v46  ;;  %1299 = vmatprep.subr.bf16.mxu1 %v3436_v48 }
 0x171   :  { %1259 = vmatpush1.bf16.msra.mxu0 %v3438_v49  ;;  %1300 = vmatpush1.bf16.msra.mxu1 %v3440_v50 }
 0x172   :  { %1260 = vmatprep.subr.bf16.mxu0 %v3446_v53  ;;  %1301 = vmatprep.subr.bf16.mxu1 %v3448_v56 }
 0x175   :  { %1261 = vmatpush1.bf16.msra.mxu0 %v3450_v57  ;;  %1302 = vmatpush1.bf16.msra.mxu1 %v3452_v58 }
 0x176   :  { %1262 = vmatprep.subr.bf16.mxu0 %v3458_v62  ;;  %1303 = vmatprep.subr.bf16.mxu1 %v3460_v0 }
 0x179   :  { %1263 = vmatpush1.bf16.msra.mxu0 %v3462_v2  ;;  %1304 = vmatpush1.bf16.msra.mxu1 %v3464_v3 }
 0x17a   :  { %1264 = vmatprep.subr.bf16.mxu0 %v3470_v7  ;;  %1305 = vmatprep.subr.bf16.mxu1 %v3472_v9 }
 0x17d   :  { %1265 = vmatpush1.bf16.msra.mxu0 %v3474_v10  ;;  %1306 = vmatpush1.bf16.msra.mxu1 %v3476_v11 }
 0x17e   :  { %1266 = vmatprep.subr.bf16.mxu0 %v3482_v17  ;;  %1307 = vmatprep.subr.bf16.mxu1 %v3484_v19 }
 0x181   :  { %1267 = vmatpush1.bf16.msra.mxu0 %v3486_v21  ;;  %1308 = vmatpush1.bf16.msra.mxu1 %v3488_v25 }
 0x182   :  { %1268 = vmatprep.subr.bf16.mxu0 %v3494_v33  ;;  %1309 = vmatprep.subr.bf16.mxu1 %v3496_v35 }
 0x185   :  { %1269 = vmatpush1.bf16.msra.mxu0 %v3498_v36  ;;  %1310 = vmatpush1.bf16.msra.mxu1 %v3500_v43  ;;  %v5279_v43 = vld [vmem:[#allocation55_spill] sm:$0xff] }
 0x186   :  { %1270 = vmatprep.subr.bf16.mxu0 %v3506_v51  ;;  %1311 = vmatprep.subr.bf16.mxu1 %v5270_v1  ;;  %v5280_v51 = vld [vmem:[#allocation57_spill] sm:$0xff]  ;;  %v5281_v1 = vld [vmem:[#allocation58_spill] sm:$0xff] }
 0x189   :  { %1271 = vmatpush1.bf16.msra.mxu0 %v5271_v59  ;;  %1312 = vmatpush1.bf16.msra.mxu1 %v5272_v8  ;;  %v5282_v59 = vld [vmem:[#allocation59_spill] sm:$0xff]  ;;  %v5283_v8 = vld [vmem:[#allocation60_spill] sm:$0xff] }
 0x18a   :  { %1272 = vmatprep.subr.bf16.mxu0 %v5273_v26  ;;  %1313 = vmatprep.subr.bf16.mxu1 %v5274_v27  ;;  %v5284_v26 = vld [vmem:[#allocation61_spill] sm:$0xff]  ;;  %v5285_v27 = vld [vmem:[#allocation62_spill] sm:$0xff] }
 0x18d   :  { %1273 = vmatpush1.bf16.msra.mxu0 %v5275_v5  ;;  %1314 = vmatpush1.bf16.msra.mxu1 %v5276_v34  ;;  %v5286_v5 = vld [vmem:[#allocation63_spill] sm:$0xff]  ;;  %v5287_v34 = vld [vmem:[#allocation64_spill] sm:$0xff] }
 0x18e   :  { %1274 = vmatprep.subr.bf16.mxu0 %v5277_v44  ;;  %1315 = vmatprep.subr.bf16.mxu1 %v5278_v12  ;;  %v5288_v44 = vld [vmem:[#allocation65_spill] sm:$0xff]  ;;  %v5289_v12 = vld [vmem:[#allocation66_spill] sm:$0xff] }
 0x191   :  { %1275 = vmatpush1.bf16.msra.mxu0 %v5279_v43  ;;  %1316 = vmatpush1.bf16.msra.mxu1 %v5280_v51  ;;  %v5290_v43 = vld [vmem:[#allocation67_spill] sm:$0xff]  ;;  %v5291_v51 = vld [vmem:[#allocation68_spill] sm:$0xff] }
 0x192   :  { %1276 = vmatprep.subr.bf16.mxu0 %v5281_v1  ;;  %1317 = vmatprep.subr.bf16.mxu1 %v5282_v59  ;;  %v5292_v1 = vld [vmem:[#allocation69_spill] sm:$0xff]  ;;  %v5293_v59 = vld [vmem:[#allocation70_spill] sm:$0xff] }
 0x195   :  { %1277 = vmatpush1.bf16.msra.mxu0 %v5283_v8  ;;  %1318 = vmatpush1.bf16.msra.mxu1 %v5284_v26  ;;  %v5294_v8 = vld [vmem:[#allocation71_spill] sm:$0xff] }
 0x196   :  { %1278 = vmatprep.subr.bf16.mxu0 %v5285_v27  ;;  %1319 = vmatprep.subr.bf16.mxu1 %v5286_v5  ;;  %v315_v5 = vld [vmem:[%s4828_s4] sm:$0xf] }
 0x197   :  { %v5295_v27 = vld [vmem:[#allocation73_spill] sm:$0xff] }
 0x199   :  { %1279 = vmatpush1.bf16.msra.mxu0 %v5287_v34  ;;  %1320 = vmatpush1.bf16.msra.mxu1 %v5288_v44  ;;  %v5296_v34 = vsub.s32 0, %v5295_v27 }
 0x19a   :  { %1280 = vmatprep.subr.bf16.mxu0 %v5289_v12  ;;  %1321 = vmatprep.subr.bf16.mxu1 %v5290_v43  ;;  %v5298_v12 = vsub.s32 1, %v5295_v27 }
 0x19b   :  { %v3889_v26 = vrot.slane %v315_v5, %v5296_v34  ;;  %v5300_v34 = vsub.s32 2, %v5295_v27 }
 0x19c   :  { %v3893_v44 = vrot.slane %v315_v5, %v5298_v12  ;;  %v5302_v12 = vsub.s32 3, %v5295_v27 }
 0x19d   :  { %1281 = vmatpush1.bf16.msra.mxu0 %v5291_v51  ;;  %1322 = vmatpush1.bf16.msra.mxu1 %v5292_v1  ;;  %5297 = vst [vmem:[#allocation73_spill] sm:$0xff] %v3889_v26  ;;  %v3899_v11 = vrot.slane %v315_v5, %v5300_v34 }
 0x19e   :  { %1332 = vmatprep.subr.bf16.mxu0 %v5293_v59  ;;  %1373 = vmatprep.subr.bf16.mxu1 %v5294_v8  ;;  %5299 = vst [vmem:[#allocation142_spill] sm:$0xff] %v3893_v44  ;;  %v3903_v10 = vrot.slane %v315_v5, %v5302_v12 }
 0x19f   :  { %5301 = vst [vmem:[#allocation143_spill] sm:$0xff] %v3899_v11 }
 0x1a0   :  { %5303 = vst [vmem:[#allocation144_spill] sm:$0xff] %v3903_v10 }
 0x1f3   :  { %v1040_v43 = vpop.f32.mrb[4].mxu0  ;;  %v1081_v51 = vpop.f32.mrb[4].mxu1 }
 0x1f4   :  { %v1170_v1 = vadd.f32 %v1040_v43, %v3889_v26  ;;  %v1042_v36 = vpop.f32.mrb[5].mxu0  ;;  %v1083_v59 = vpop.f32.mrb[5].mxu1  ;;  %v1172_v43 = vadd.f32 %v1081_v51, %v3899_v11 }
 0x1f5   :  { %v1171_v8 = vadd.f32 %v1042_v36, %v3893_v44  ;;  %v1044_v35 = vpop.f32.mrb[6].mxu0  ;;  %v1085_v33 = vpop.f32.mrb[6].mxu1  ;;  %v1173_v36 = vadd.f32 %v1083_v59, %v3903_v10  ;;  %v5305_v10 = vld [vmem:[#allocation74_spill] sm:$0xff] }
 0x1f6   :  { %v2972_v25 = vmul.f32 -1.442695, %v1170_v1  ;;  %v1045_v21 = vpop.f32.mrb[7].mxu0  ;;  %v1086_v19 = vpop.f32.mrb[7].mxu1  ;;  %v2974_v35 = vmul.f32 -1.442695, %v1172_v43 }
 0x1f7   :  { %v2973_v17 = vmul.f32 -1.442695, %v1171_v8 }
 0x1f8   :  { %3044 = vpow2.f32 %v2972_v25 }
 0x1f9   :  { %3046 = vpow2.f32 %v2973_v17 }
 0x1fa   :  { %3048 = vtanh.f32 %v1173_v36 }
 0x1fb   :  { %3050 = vpow2.f32 %v2974_v35 }
 0x202   :  { %v3045_v33 = vpop.eup %3044 }
 0x203   :  { %v1183_v1 = vadd.f32 1.0, %v3045_v33  ;;  %v3047_v19 = vpop.eup %3046 }
 0x204   :  { %v1184_v21 = vadd.f32 1.0, %v3047_v19  ;;  %v3049_v8 = vpop.eup %3048 }
 0x205   :  { %3052 = vrcp.f32 %v1183_v1  ;;  %v3051_v25 = vpop.eup %3050 }
 0x206   :  { %3054 = vrcp.f32 %v1184_v21  ;;  %v1185_v5 = vadd.f32 1.0, %v3051_v25 }
 0x208   :  { %3056 = vrcp.f32 %v1185_v5 }
 0x20f   :  { %v3053_v17 = vpop.eup %3052 }
 0x210   :  { %v1194_v34 = vmul.f32 %v3053_v17, %v3049_v8  ;;  %v3055_v27 = vpop.eup %3054 }
 0x211   :  { %v1193_v12 = vmul.f32 0.0, %v3055_v27 }
 0x212   :  { %v3057_v51 = vpop.eup %3056 }
 0x213   :  { %v3907_v44 = vadd.f32 %v1194_v34, %v1193_v12 }
 0x215   :  { %5304 = vst [vmem:[#allocation145_spill] sm:$0xff] %v3907_v44  ;;  %3058 = vtanh.f32 %v3907_v44 }
 0x21f   :  { %v3059_v59 = vpop.eup %3058 }
 0x220   :  { %v1197_v43 = vmul.f32 %v3059_v59, %v3057_v51 }
 0x222   :  { %v1198_v36 = vpack.c.bf16 %v1197_v43, %v1197_v43 }
 0x224   :  { %v1244_v35 = vrot.slane %v1198_v36, 7 }
 0x226   :  { %v1247_v33 = vrot.slane %v1244_v35, 1  ;;  %v5306_v35 = vld [vmem:[#allocation79_spill] sm:$0xff] }
 0x228   :  { %1282 = vmatprep.mubr.bf16.mxu0 %v1247_v33  ;;  %1323 = vmatprep.mubr.bf16.mxu1 %v1247_v33 }
 0x233   :  { %v1122_v1 = vpop.f32.mrb[8].mxu0  ;;  %v1163_v19 = vpop.f32.mrb[8].mxu1 }
 0x234   :  { %v1203_v21 = vrot.slane %v1122_v1, 6  ;;  %v1124_v8 = vpop.f32.mrb[9].mxu0  ;;  %v1165_v17 = vpop.f32.mrb[9].mxu1  ;;  %v1205_v43 = vrot.slane %v1163_v19, 6  ;;  %v5307_v1 = vld [vmem:[#allocation80_spill] sm:$0xff] }
 0x235   :  { %v1204_v25 = vrot.slane %v1124_v8, 6  ;;  %v1126_v27 = vpop.f32.mrb[10].mxu0  ;;  %v1167_v34 = vpop.f32.mrb[10].mxu1  ;;  %v1206_v36 = vrot.slane %v1165_v17, 6 }
 0x236   :  { %v1211_v5 = vadd.f32 %v1203_v21, %v3603_v4  ;;  %v1127_v12 = vpop.f32.mrb[11].mxu0  ;;  %v1168_v44 = vpop.f32.mrb[11].mxu1  ;;  %v1213_v26 = vadd.f32 %v1205_v43, %v5306_v35 }
 0x237   :  { %v1212_v11 = vadd.f32 %v1204_v25, %v5305_v10  ;;  %v1214_v9 = vadd.f32 %v1206_v36, %v5307_v1 }
 0x238   :  { %v2975_v51 = vmul.f32 -1.442695, %v1211_v5  ;;  %v2977_v7 = vmul.f32 -1.442695, %v1213_v26  ;;  %v5308_v5 = vld [vmem:[#allocation81_spill] sm:$0xff] }
 0x239   :  { %v2976_v59 = vmul.f32 -1.442695, %v1212_v11  ;;  %v1235_v19 = vrot.slane %v5308_v5, 6  ;;  %v5315_v5 = vld [vmem:[#allocation87_spill] sm:$0xff] }
 0x23a   :  { %3060 = vpow2.f32 %v2975_v51 }
 0x23b   :  { %3062 = vpow2.f32 %v2976_v59 }
 0x23c   :  { %3064 = vtanh.f32 %v1214_v9 }
 0x23d   :  { %3066 = vpow2.f32 %v2977_v7 }
 0x244   :  { %v3061_v8 = vpop.eup %3060 }
 0x245   :  { %v1224_v27 = vadd.f32 1.0, %v3061_v8  ;;  %v3063_v34 = vpop.eup %3062 }
 0x246   :  { %v1225_v44 = vadd.f32 1.0, %v3063_v34  ;;  %v3065_v21 = vpop.eup %3064  ;;  %v5310_v34 = vld [vmem:[#allocation82_spill] sm:$0xff] }
 0x247   :  { %3068 = vrcp.f32 %v1224_v27  ;;  %v3067_v25 = vpop.eup %3066  ;;  %v5309_v27 = vld [vmem:[#allocation72_spill] sm:$0xff] }
 0x248   :  { %3070 = vrcp.f32 %v1225_v44  ;;  %v1226_v51 = vadd.f32 1.0, %v3067_v25  ;;  %v5311_v44 = vld [vmem:[#allocation83_spill] sm:$0xff]  ;;  %v5313_v25 = vld [vmem:[#allocation85_spill] sm:$0xff] }
 0x24a   :  { %3072 = vrcp.f32 %v1226_v51  ;;  %v5319_v51 = vld [vmem:[#allocation91_spill] sm:$0xff] }
 0x251   :  { %v3069_v11 = vpop.eup %3068 }
 0x252   :  { %v1238_v12 = vmul.f32 %v3069_v11, %v3065_v21  ;;  %v3071_v17 = vpop.eup %3070  ;;  %v5312_v21 = vld [vmem:[#allocation84_spill] sm:$0xff]  ;;  %v5314_v11 = vld [vmem:[#allocation86_spill] sm:$0xff] }
 0x253   :  { %v1237_v59 = vmul.f32 %v3071_v17, %v1235_v19  ;;  %v5316_v19 = vld [vmem:[#allocation88_spill] sm:$0xff]  ;;  %v5318_v17 = vld [vmem:[#allocation90_spill] sm:$0xff] }
 0x254   :  { %v3073_v9 = vpop.eup %3072 }
 0x255   :  { %v3915_v43 = vadd.f32 %v1238_v12, %v1237_v59  ;;  %v5317_v12 = vld [vmem:[#allocation89_spill] sm:$0xff] }
 0x256   :  { %v5321_v59 = vld [vmem:[#allocation93_spill] sm:$0xff] }
 0x257   :  { %3074 = vtanh.f32 %v3915_v43 }
 0x261   :  { %v3075_v26 = vpop.eup %3074 }
 0x262   :  { %v1241_v7 = vmul.f32 %v3075_v26, %v3073_v9  ;;  %v5322_v9 = vld [vmem:[#allocation94_spill] sm:$0xff]  ;;  %v5323_v26 = vld [vmem:[#allocation95_spill] sm:$0xff] }
 0x264   :  { %v1242_v36 = vpack.c.bf16 %v1241_v7, %v1241_v7  ;;  %v5324_v7 = vld [vmem:[#allocation96_spill] sm:$0xff] }
 0x266   :  { %v3918_v8 = vrot.slane %v1242_v36, 1  ;;  %v5325_v36 = vld [vmem:[#allocation97_spill] sm:$0xff] }
 0x268   :  { %1283 = vmatmul.mubr.bf16.vlgmr.msra.gmra.mrb[12].mxu0 %v3918_v8  ;;  %1324 = vmatmul.mubr.bf16.vlgmr.msra.gmra.mrb[12].mxu1 %v3918_v8 }
 0x269   :  { %1333 = vmatpush1.bf16.msra.mxu0 %v3584_v6  ;;  %1374 = vmatpush1.bf16.msra.mxu1 %v5309_v27 }
 0x26a   :  { %1364 = vmatprep.mubr.bf16.mxu0 %v1247_v33  ;;  %1405 = vmatprep.mubr.bf16.mxu1 %v1247_v33  ;;  %v5320_v33 = vld [vmem:[#allocation92_spill] sm:$0xff] }
 0x26b   :  { %1334 = vmatprep.subr.bf16.mxu0 %v5310_v34  ;;  %1375 = vmatprep.subr.bf16.mxu1 %v5311_v44 }
 0x26d   :  { %1335 = vmatpush1.bf16.msra.mxu0 %v5312_v21  ;;  %1376 = vmatpush1.bf16.msra.mxu1 %v5313_v25 }
 0x26e   :  { %1336 = vmatprep.subr.bf16.mxu0 %v5314_v11  ;;  %1377 = vmatprep.subr.bf16.mxu1 %v5315_v5  ;;  %v5326_v5 = vld [vmem:[#allocation98_spill] sm:$0xff] }
 0x271   :  { %1337 = vmatpush1.bf16.msra.mxu0 %v5316_v19  ;;  %1378 = vmatpush1.bf16.msra.mxu1 %v5317_v12  ;;  %v5327_v19 = vld [vmem:[#allocation99_spill] sm:$0xff]  ;;  %v5328_v12 = vld [vmem:[#allocation100_spill] sm:$0xff] }
 0x272   :  { %1338 = vmatprep.subr.bf16.mxu0 %v5318_v17  ;;  %1379 = vmatprep.subr.bf16.mxu1 %v5319_v51  ;;  %v5329_v17 = vld [vmem:[#allocation101_spill] sm:$0xff]  ;;  %v5330_v51 = vld [vmem:[#allocation102_spill] sm:$0xff] }
 0x275   :  { %1339 = vmatpush1.bf16.msra.mxu0 %v5320_v33  ;;  %1380 = vmatpush1.bf16.msra.mxu1 %v5321_v59  ;;  %v5331_v33 = vld [vmem:[#allocation103_spill] sm:$0xff]  ;;  %v5332_v59 = vld [vmem:[#allocation104_spill] sm:$0xff] }
 0x276   :  { %1340 = vmatprep.subr.bf16.mxu0 %v5322_v9  ;;  %1381 = vmatprep.subr.bf16.mxu1 %v5323_v26  ;;  %v5333_v9 = vld [vmem:[#allocation105_spill] sm:$0xff]  ;;  %v5334_v26 = vld [vmem:[#allocation106_spill] sm:$0xff] }
 0x279   :  { %1341 = vmatpush1.bf16.msra.mxu0 %v5324_v7  ;;  %1382 = vmatpush1.bf16.msra.mxu1 %v5325_v36  ;;  %v5335_v7 = vld [vmem:[#allocation107_spill] sm:$0xff]  ;;  %v5336_v36 = vld [vmem:[#allocation108_spill] sm:$0xff] }
 0x27a   :  { %1342 = vmatprep.subr.bf16.mxu0 %v5326_v5  ;;  %1383 = vmatprep.subr.bf16.mxu1 %v5327_v19  ;;  %v5337_v5 = vld [vmem:[#allocation109_spill] sm:$0xff]  ;;  %v5338_v19 = vld [vmem:[#allocation110_spill] sm:$0xff] }
 0x27d   :  { %1343 = vmatpush1.bf16.msra.mxu0 %v5328_v12  ;;  %1384 = vmatpush1.bf16.msra.mxu1 %v5329_v17  ;;  %v5339_v12 = vld [vmem:[#allocation111_spill] sm:$0xff]  ;;  %v5340_v17 = vld [vmem:[#allocation112_spill] sm:$0xff] }
 0x27e   :  { %1344 = vmatprep.subr.bf16.mxu0 %v5330_v51  ;;  %1385 = vmatprep.subr.bf16.mxu1 %v5331_v33  ;;  %v5341_v51 = vld [vmem:[#allocation113_spill] sm:$0xff]  ;;  %v5342_v33 = vld [vmem:[#allocation114_spill] sm:$0xff] }
 0x281   :  { %1345 = vmatpush1.bf16.msra.mxu0 %v5332_v59  ;;  %1386 = vmatpush1.bf16.msra.mxu1 %v5333_v9  ;;  %v5343_v59 = vld [vmem:[#allocation115_spill] sm:$0xff]  ;;  %v5344_v9 = vld [vmem:[#allocation116_spill] sm:$0xff] }
 0x282   :  { %1346 = vmatprep.subr.bf16.mxu0 %v5334_v26  ;;  %1387 = vmatprep.subr.bf16.mxu1 %v5335_v7  ;;  %v5345_v26 = vld [vmem:[#allocation117_spill] sm:$0xff]  ;;  %v5346_v7 = vld [vmem:[#allocation118_spill] sm:$0xff] }
 0x285   :  { %1347 = vmatpush1.bf16.msra.mxu0 %v5336_v36  ;;  %1388 = vmatpush1.bf16.msra.mxu1 %v5337_v5  ;;  %v5347_v36 = vld [vmem:[#allocation119_spill] sm:$0xff]  ;;  %v5348_v5 = vld [vmem:[#allocation120_spill] sm:$0xff] }
 0x286   :  { %1348 = vmatprep.subr.bf16.mxu0 %v5338_v19  ;;  %1389 = vmatprep.subr.bf16.mxu1 %v5339_v12  ;;  %v5349_v19 = vld [vmem:[#allocation121_spill] sm:$0xff]  ;;  %v5350_v12 = vld [vmem:[#allocation122_spill] sm:$0xff] }
 0x289   :  { %1349 = vmatpush1.bf16.msra.mxu0 %v5340_v17  ;;  %1390 = vmatpush1.bf16.msra.mxu1 %v5341_v51  ;;  %v5351_v17 = vld [vmem:[#allocation123_spill] sm:$0xff]  ;;  %v5352_v51 = vld [vmem:[#allocation124_spill] sm:$0xff] }
 0x28a   :  { %1350 = vmatprep.subr.bf16.mxu0 %v5342_v33  ;;  %1391 = vmatprep.subr.bf16.mxu1 %v5343_v59  ;;  %v5353_v33 = vld [vmem:[#allocation125_spill] sm:$0xff]  ;;  %v5354_v59 = vld [vmem:[#allocation126_spill] sm:$0xff] }
 0x28d   :  { %1351 = vmatpush1.bf16.msra.mxu0 %v5344_v9  ;;  %1392 = vmatpush1.bf16.msra.mxu1 %v5345_v26  ;;  %v5355_v9 = vld [vmem:[#allocation127_spill] sm:$0xff] }
 0x28e   :  { %1352 = vmatprep.subr.bf16.mxu0 %v5346_v7  ;;  %1393 = vmatprep.subr.bf16.mxu1 %v5347_v36 }
 0x291   :  { %1353 = vmatpush1.bf16.msra.mxu0 %v5348_v5  ;;  %1394 = vmatpush1.bf16.msra.mxu1 %v5349_v19  ;;  %v5356_v5 = vld [vmem:[#allocation131_spill] sm:$0xff]  ;;  %v5357_v19 = vld [vmem:[#allocation132_spill] sm:$0xff] }
 0x292   :  { %1354 = vmatprep.subr.bf16.mxu0 %v5350_v12  ;;  %1395 = vmatprep.subr.bf16.mxu1 %v5351_v17 }
 0x295   :  { %1355 = vmatpush1.bf16.msra.mxu0 %v5352_v51  ;;  %1396 = vmatpush1.bf16.msra.mxu1 %v5353_v33 }
 0x296   :  { %1356 = vmatprep.subr.bf16.mxu0 %v5354_v59  ;;  %1397 = vmatprep.subr.bf16.mxu1 %v5355_v9 }
 0x299   :  { %1357 = vmatpush1.bf16.msra.mxu0 %v3772_v60  ;;  %1398 = vmatpush1.bf16.msra.mxu1 %v3774_v18 }
 0x29a   :  { %1358 = vmatprep.subr.bf16.mxu0 %v3778_v47  ;;  %1399 = vmatprep.subr.bf16.mxu1 %v5356_v5 }
 0x29d   :  { %1359 = vmatpush1.bf16.msra.mxu0 %v5357_v19  ;;  %1400 = vmatpush1.bf16.msra.mxu1 %v3786_v28 }
 0x29e   :  { %1360 = vmatprep.subr.bf16.mxu0 %v3790_v16  ;;  %1401 = vmatprep.subr.bf16.mxu1 %v3792_v55 }
 0x2a1   :  { %1361 = vmatpush1.bf16.msra.mxu0 %v3796_v52  ;;  %1402 = vmatpush1.bf16.msra.mxu1 %v3798_v61 }
 0x2a2   :  { %1362 = vmatprep.subr.bf16.mxu0 %v3802_v45  ;;  %1403 = vmatprep.subr.bf16.mxu1 %v3804_v13 }
 0x2a5   :  { %1363 = vmatpush1.bf16.msra.mxu0 %v3808_v63  ;;  %1404 = vmatpush1.bf16.msra.mxu1 %v3810_v54 }
 0x2a6   :  { %1494 = vmatprep.subr.bf16.mxu0 %v3380_v14  ;;  %1535 = vmatprep.subr.bf16.mxu1 %v3382_v15 }
 0x2a8   :  { %1365 = vmatmul.mubr.bf16.vlgmr.msra.gmra.mrb[16].mxu0 %v3918_v8  ;;  %1406 = vmatmul.mubr.bf16.vlgmr.msra.gmra.mrb[16].mxu1 %v3918_v8  ;;  %v5358_v8 = vld [vmem:[#allocation34_spill] sm:$0xff] }
 0x2a9   :  { %1495 = vmatpush1.bf16.msra.mxu0 %v3386_v20  ;;  %1536 = vmatpush1.bf16.msra.mxu1 %v3389_v22 }
 0x2aa   :  { %1496 = vmatprep.subr.bf16.mxu0 %v3391_v23  ;;  %1537 = vmatprep.subr.bf16.mxu1 %v3394_v24 }
 0x2ad   :  { %1497 = vmatpush1.bf16.msra.mxu0 %v3399_v29  ;;  %1538 = vmatpush1.bf16.msra.mxu1 %v3403_v30 }
 0x2ae   :  { %1498 = vmatprep.subr.bf16.mxu0 %v3405_v31  ;;  %1539 = vmatprep.subr.bf16.mxu1 %v3408_v32 }
 0x2b1   :  { %1499 = vmatpush1.bf16.msra.mxu0 %v3413_v37  ;;  %1540 = vmatpush1.bf16.msra.mxu1 %v3417_v38  ;;  %v5399_v38 = vld [vmem:[#allocation144_spill] sm:$0xff] }
 0x2b2   :  { %1500 = vmatprep.subr.bf16.mxu0 %v3419_v39  ;;  %1541 = vmatprep.subr.bf16.mxu1 %v3422_v40 }
 0x2b5   :  { %1501 = vmatpush1.bf16.msra.mxu0 %v3425_v41  ;;  %1542 = vmatpush1.bf16.msra.mxu1 %v3429_v42  ;;  %v5397_v42 = vld [vmem:[#allocation142_spill] sm:$0xff] }
 0x2b6   :  { %1502 = vmatprep.subr.bf16.mxu0 %v3434_v46  ;;  %1543 = vmatprep.subr.bf16.mxu1 %v3436_v48  ;;  %v5396_v48 = vld [vmem:[#allocation73_spill] sm:$0xff] }
 0x2b9   :  { %1503 = vmatpush1.bf16.msra.mxu0 %v3438_v49  ;;  %1544 = vmatpush1.bf16.msra.mxu1 %v3440_v50  ;;  %v5359_v49 = vld [vmem:[#allocation35_spill] sm:$0xff]  ;;  %v5360_v50 = vld [vmem:[#allocation36_spill] sm:$0xff] }
 0x2ba   :  { %1504 = vmatprep.subr.bf16.mxu0 %v3446_v53  ;;  %1545 = vmatprep.subr.bf16.mxu1 %v3448_v56  ;;  %v5361_v53 = vld [vmem:[#allocation37_spill] sm:$0xff]  ;;  %v5362_v56 = vld [vmem:[#allocation38_spill] sm:$0xff] }
 0x2bd   :  { %1505 = vmatpush1.bf16.msra.mxu0 %v3450_v57  ;;  %1546 = vmatpush1.bf16.msra.mxu1 %v3452_v58  ;;  %v5363_v57 = vld [vmem:[#allocation39_spill] sm:$0xff]  ;;  %v5364_v58 = vld [vmem:[#allocation40_spill] sm:$0xff] }
 0x2be   :  { %1506 = vmatprep.subr.bf16.mxu0 %v3458_v62  ;;  %1547 = vmatprep.subr.bf16.mxu1 %v3460_v0  ;;  %v5365_v62 = vld [vmem:[#allocation41_spill] sm:$0xff]  ;;  %v5366_v0 = vld [vmem:[#allocation42_spill] sm:$0xff] }
 0x2c1   :  { %1507 = vmatpush1.bf16.msra.mxu0 %v3462_v2  ;;  %1548 = vmatpush1.bf16.msra.mxu1 %v3464_v3  ;;  %v5367_v2 = vld [vmem:[#allocation43_spill] sm:$0xff]  ;;  %v5368_v3 = vld [vmem:[#allocation44_spill] sm:$0xff] }
 0x2c2   :  { %1508 = vmatprep.subr.bf16.mxu0 %v5358_v8  ;;  %1549 = vmatprep.subr.bf16.mxu1 %v5359_v49  ;;  %v5369_v8 = vld [vmem:[#allocation45_spill] sm:$0xff]  ;;  %v5370_v49 = vld [vmem:[#allocation46_spill] sm:$0xff] }
 0x2c5   :  { %1509 = vmatpush1.bf16.msra.mxu0 %v5360_v50  ;;  %1550 = vmatpush1.bf16.msra.mxu1 %v5361_v53  ;;  %v5371_v50 = vld [vmem:[#allocation47_spill] sm:$0xff]  ;;  %v5372_v53 = vld [vmem:[#allocation48_spill] sm:$0xff] }
 0x2c6   :  { %1510 = vmatprep.subr.bf16.mxu0 %v5362_v56  ;;  %1551 = vmatprep.subr.bf16.mxu1 %v5363_v57  ;;  %v5373_v56 = vld [vmem:[#allocation49_spill] sm:$0xff]  ;;  %v5374_v57 = vld [vmem:[#allocation50_spill] sm:$0xff] }
 0x2c9   :  { %1511 = vmatpush1.bf16.msra.mxu0 %v5364_v58  ;;  %1552 = vmatpush1.bf16.msra.mxu1 %v5365_v62  ;;  %v5375_v58 = vld [vmem:[#allocation51_spill] sm:$0xff]  ;;  %v5376_v62 = vld [vmem:[#allocation52_spill] sm:$0xff] }
 0x2ca   :  { %1512 = vmatprep.subr.bf16.mxu0 %v5366_v0  ;;  %1553 = vmatprep.subr.bf16.mxu1 %v5367_v2  ;;  %v5377_v0 = vld [vmem:[#allocation53_spill] sm:$0xff]  ;;  %v5378_v2 = vld [vmem:[#allocation54_spill] sm:$0xff] }
 0x2cd   :  { %1513 = vmatpush1.bf16.msra.mxu0 %v5368_v3  ;;  %1554 = vmatpush1.bf16.msra.mxu1 %v5369_v8  ;;  %v5379_v3 = vld [vmem:[#allocation56_spill] sm:$0xff]  ;;  %v5380_v8 = vld [vmem:[#allocation55_spill] sm:$0xff] }
 0x2ce   :  { %1514 = vmatprep.subr.bf16.mxu0 %v5370_v49  ;;  %1555 = vmatprep.subr.bf16.mxu1 %v5371_v50  ;;  %v5381_v49 = vld [vmem:[#allocation57_spill] sm:$0xff]  ;;  %v5382_v50 = vld [vmem:[#allocation58_spill] sm:$0xff] }
 0x2d1   :  { %1515 = vmatpush1.bf16.msra.mxu0 %v5372_v53  ;;  %1556 = vmatpush1.bf16.msra.mxu1 %v5373_v56  ;;  %v5383_v53 = vld [vmem:[#allocation59_spill] sm:$0xff]  ;;  %v5384_v56 = vld [vmem:[#allocation60_spill] sm:$0xff] }
 0x2d2   :  { %1516 = vmatprep.subr.bf16.mxu0 %v5374_v57  ;;  %1557 = vmatprep.subr.bf16.mxu1 %v5375_v58  ;;  %v5385_v57 = vld [vmem:[#allocation61_spill] sm:$0xff]  ;;  %v5386_v58 = vld [vmem:[#allocation62_spill] sm:$0xff] }
 0x2d5   :  { %1517 = vmatpush1.bf16.msra.mxu0 %v5376_v62  ;;  %1558 = vmatpush1.bf16.msra.mxu1 %v5377_v0  ;;  %v5387_v62 = vld [vmem:[#allocation63_spill] sm:$0xff]  ;;  %v5388_v0 = vld [vmem:[#allocation64_spill] sm:$0xff] }
 0x2d6   :  { %1518 = vmatprep.subr.bf16.mxu0 %v5378_v2  ;;  %1559 = vmatprep.subr.bf16.mxu1 %v5379_v3  ;;  %v5389_v2 = vld [vmem:[#allocation65_spill] sm:$0xff]  ;;  %v5390_v3 = vld [vmem:[#allocation66_spill] sm:$0xff] }
 0x2d9   :  { %1519 = vmatpush1.bf16.msra.mxu0 %v5380_v8  ;;  %1560 = vmatpush1.bf16.msra.mxu1 %v5381_v49  ;;  %v5391_v8 = vld [vmem:[#allocation67_spill] sm:$0xff]  ;;  %v5392_v49 = vld [vmem:[#allocation68_spill] sm:$0xff] }
 0x2da   :  { %1520 = vmatprep.subr.bf16.mxu0 %v5382_v50  ;;  %1561 = vmatprep.subr.bf16.mxu1 %v5383_v53  ;;  %v5393_v50 = vld [vmem:[#allocation69_spill] sm:$0xff]  ;;  %v5394_v53 = vld [vmem:[#allocation70_spill] sm:$0xff] }
 0x2dd   :  { %1521 = vmatpush1.bf16.msra.mxu0 %v5384_v56  ;;  %1562 = vmatpush1.bf16.msra.mxu1 %v5385_v57  ;;  %v5395_v56 = vld [vmem:[#allocation71_spill] sm:$0xff] }
 0x2de   :  { %1522 = vmatprep.subr.bf16.mxu0 %v5386_v58  ;;  %1563 = vmatprep.subr.bf16.mxu1 %v5387_v62 }
 0x2e1   :  { %1523 = vmatpush1.bf16.msra.mxu0 %v5388_v0  ;;  %1564 = vmatpush1.bf16.msra.mxu1 %v5389_v2 }
 0x2e2   :  { %1524 = vmatprep.subr.bf16.mxu0 %v5390_v3  ;;  %1565 = vmatprep.subr.bf16.mxu1 %v5391_v8 }
 0x2e5   :  { %1525 = vmatpush1.bf16.msra.mxu0 %v5392_v49  ;;  %1566 = vmatpush1.bf16.msra.mxu1 %v5393_v50  ;;  %v5398_v50 = vld [vmem:[#allocation143_spill] sm:$0xff] }
 0x2e6   :  { %1576 = vmatprep.subr.bf16.mxu0 %v5394_v53  ;;  %1617 = vmatprep.subr.bf16.mxu1 %v5395_v56 }
 0x33b   :  { %v1284_v57 = vpop.f32.mrb[12].mxu0  ;;  %v1325_v58 = vpop.f32.mrb[12].mxu1 }
 0x33c   :  { %v1414_v62 = vadd.f32 %v1284_v57, %v5396_v48  ;;  %v1286_v46 = vpop.f32.mrb[13].mxu0  ;;  %v1327_v0 = vpop.f32.mrb[13].mxu1  ;;  %v1416_v53 = vadd.f32 %v1325_v58, %v5398_v50 }
 0x33d   :  { %v1415_v2 = vadd.f32 %v1286_v46, %v5397_v42  ;;  %v1288_v41 = vpop.f32.mrb[14].mxu0  ;;  %v1329_v3 = vpop.f32.mrb[14].mxu1  ;;  %v1417_v56 = vadd.f32 %v1327_v0, %v5399_v38 }
 0x33e   :  { %v2978_v40 = vmul.f32 -1.442695, %v1414_v62  ;;  %v1289_v8 = vpop.f32.mrb[15].mxu0  ;;  %v1330_v39 = vpop.f32.mrb[15].mxu1  ;;  %v2980_v37 = vmul.f32 -1.442695, %v1416_v53 }
 0x33f   :  { %v2979_v49 = vmul.f32 -1.442695, %v1415_v2 }
 0x340   :  { %3076 = vpow2.f32 %v2978_v40 }
 0x341   :  { %3078 = vpow2.f32 %v2979_v49  ;;  %v5400_v49 = vld [vmem:[#allocation145_spill] sm:$0xff] }
 0x342   :  { %3080 = vtanh.f32 %v1417_v56 }
 0x343   :  { %3082 = vpow2.f32 %v2980_v37 }
 0x34a   :  { %v3077_v32 = vpop.eup %3076 }
 0x34b   :  { %v1427_v31 = vadd.f32 1.0, %v3077_v32  ;;  %v3079_v57 = vpop.eup %3078 }
 0x34c   :  { %v1428_v46 = vadd.f32 1.0, %v3079_v57  ;;  %v3081_v41 = vpop.eup %3080 }
 0x34d   :  { %3084 = vrcp.f32 %v1427_v31  ;;  %v3083_v62 = vpop.eup %3082 }
 0x34e   :  { %3086 = vrcp.f32 %v1428_v46  ;;  %v1429_v40 = vadd.f32 1.0, %v3083_v62 }
 0x350   :  { %3088 = vrcp.f32 %v1429_v40 }
 0x357   :  { %v3085_v3 = vpop.eup %3084 }
 0x358   :  { %v1438_v39 = vmul.f32 %v3085_v3, %v3081_v41  ;;  %v3087_v2 = vpop.eup %3086 }
 0x359   :  { %v1437_v8 = vmul.f32 %v3087_v2, %v5400_v49 }
 0x35a   :  { %v3089_v32 = vpop.eup %3088 }
 0x35b   :  { %v4057_v58 = vadd.f32 %v1438_v39, %v1437_v8 }
 0x35d   :  { %5401 = vst [vmem:[#allocation74_spill] sm:$0xff] %v4057_v58  ;;  %3090 = vtanh.f32 %v4057_v58 }
 0x367   :  { %v3091_v53 = vpop.eup %3090 }
 0x368   :  { %v1441_v56 = vmul.f32 %v3091_v53, %v3089_v32 }
 0x36a   :  { %v1442_v37 = vpack.c.bf16 %v1441_v56, %v1441_v56 }
 0x36c   :  { %v1488_v31 = vrot.slane %v1442_v37, 6 }
 0x36e   :  { %v1491_v0 = vrot.slane %v1488_v31, 2 }
 0x370   :  { %1526 = vmatprep.mubr.bf16.mxu0 %v1491_v0  ;;  %1567 = vmatprep.mubr.bf16.mxu1 %v1491_v0 }
 0x37b   :  { %v1366_v57 = vpop.f32.mrb[16].mxu0  ;;  %v1407_v46 = vpop.f32.mrb[16].mxu1 }
 0x37c   :  { %v1447_v41 = vrot.slane %v1366_v57, 4  ;;  %v1368_v3 = vpop.f32.mrb[17].mxu0  ;;  %v1409_v62 = vpop.f32.mrb[17].mxu1  ;;  %v1449_v56 = vrot.slane %v1407_v46, 4  ;;  %v1479_v46 = vrot.slane %v3915_v43, 6  ;;  %v5402_v43 = vld [vmem:[#allocation87_spill] sm:$0xff] }
 0x37d   :  { %v1448_v38 = vrot.slane %v1368_v3, 4  ;;  %v1370_v2 = vpop.f32.mrb[18].mxu0  ;;  %v1411_v39 = vpop.f32.mrb[18].mxu1  ;;  %v1450_v37 = vrot.slane %v1409_v62, 4 }
 0x37e   :  { %v1455_v40 = vadd.f32 %v1447_v41, %v3603_v4  ;;  %v1371_v49 = vpop.f32.mrb[19].mxu0  ;;  %v1412_v8 = vpop.f32.mrb[19].mxu1  ;;  %v1457_v31 = vadd.f32 %v1449_v56, %v5306_v35 }
 0x37f   :  { %v1456_v58 = vadd.f32 %v1448_v38, %v5305_v10  ;;  %v1458_v57 = vadd.f32 %v1450_v37, %v5307_v1 }
 0x380   :  { %v2981_v32 = vmul.f32 -1.442695, %v1455_v40  ;;  %v2983_v50 = vmul.f32 -1.442695, %v1457_v31 }
 0x381   :  { %v2982_v53 = vmul.f32 -1.442695, %v1456_v58 }
 0x382   :  { %3092 = vpow2.f32 %v2981_v32 }
 0x383   :  { %3094 = vpow2.f32 %v2982_v53 }
 0x384   :  { %3096 = vtanh.f32 %v1458_v57 }
 0x385   :  { %3098 = vpow2.f32 %v2983_v50 }
 0x38c   :  { %v3093_v3 = vpop.eup %3092 }
 0x38d   :  { %v1468_v2 = vadd.f32 1.0, %v3093_v3  ;;  %v3095_v39 = vpop.eup %3094  ;;  %v5403_v3 = vld [vmem:[#allocation88_spill] sm:$0xff] }
 0x38e   :  { %v1469_v41 = vadd.f32 1.0, %v3095_v39  ;;  %v3097_v38 = vpop.eup %3096  ;;  %v5405_v39 = vld [vmem:[#allocation90_spill] sm:$0xff] }
 0x38f   :  { %3100 = vrcp.f32 %v1468_v2  ;;  %v3099_v40 = vpop.eup %3098  ;;  %v5404_v2 = vld [vmem:[#allocation89_spill] sm:$0xff] }
 0x390   :  { %3102 = vrcp.f32 %v1469_v41  ;;  %v1470_v8 = vadd.f32 1.0, %v3099_v40  ;;  %v5406_v41 = vld [vmem:[#allocation91_spill] sm:$0xff]  ;;  %v5409_v40 = vld [vmem:[#allocation94_spill] sm:$0xff] }
 0x392   :  { %3104 = vrcp.f32 %v1470_v8  ;;  %v5414_v8 = vld [vmem:[#allocation99_spill] sm:$0xff] }
 0x399   :  { %v3101_v58 = vpop.eup %3100 }
 0x39a   :  { %v1482_v49 = vmul.f32 %v3101_v58, %v3097_v38  ;;  %v3103_v62 = vpop.eup %3102  ;;  %v5408_v38 = vld [vmem:[#allocation93_spill] sm:$0xff]  ;;  %v5410_v58 = vld [vmem:[#allocation95_spill] sm:$0xff] }
 0x39b   :  { %v1481_v32 = vmul.f32 %v3103_v62, %v1479_v46  ;;  %v5411_v46 = vld [vmem:[#allocation96_spill] sm:$0xff]  ;;  %v5413_v62 = vld [vmem:[#allocation98_spill] sm:$0xff] }
 0x39c   :  { %v3105_v56 = vpop.eup %3104 }
 0x39d   :  { %v4065_v53 = vadd.f32 %v1482_v49, %v1481_v32  ;;  %v5412_v49 = vld [vmem:[#allocation97_spill] sm:$0xff]  ;;  %v5415_v32 = vld [vmem:[#allocation100_spill] sm:$0xff] }
 0x39f   :  { %3106 = vtanh.f32 %v4065_v53 }
 0x3a9   :  { %v3107_v37 = vpop.eup %3106 }
 0x3aa   :  { %v1485_v50 = vmul.f32 %v3107_v37, %v3105_v56  ;;  %v5416_v56 = vld [vmem:[#allocation101_spill] sm:$0xff]  ;;  %v5417_v37 = vld [vmem:[#allocation102_spill] sm:$0xff] }
 0x3ac   :  { %v1486_v31 = vpack.c.bf16 %v1485_v50, %v1485_v50  ;;  %v5418_v50 = vld [vmem:[#allocation103_spill] sm:$0xff] }
 0x3ae   :  { %v4068_v57 = vrot.slane %v1486_v31, 2  ;;  %v5419_v31 = vld [vmem:[#allocation104_spill] sm:$0xff] }
 0x3b0   :  { %1527 = vmatmul.mubr.bf16.vlgmr.msra.gmra.mrb[20].mxu0 %v4068_v57  ;;  %1568 = vmatmul.mubr.bf16.vlgmr.msra.gmra.mrb[20].mxu1 %v4068_v57 }
 0x3b1   :  { %1577 = vmatpush1.bf16.msra.mxu0 %v3584_v6  ;;  %1618 = vmatpush1.bf16.msra.mxu1 %v5309_v27 }
 0x3b2   :  { %1608 = vmatprep.mubr.bf16.mxu0 %v1491_v0  ;;  %1649 = vmatprep.mubr.bf16.mxu1 %v1491_v0  ;;  %v5407_v0 = vld [vmem:[#allocation92_spill] sm:$0xff] }
 0x3b3   :  { %1578 = vmatprep.subr.bf16.mxu0 %v5310_v34  ;;  %1619 = vmatprep.subr.bf16.mxu1 %v5311_v44 }
 0x3b5   :  { %1579 = vmatpush1.bf16.msra.mxu0 %v5312_v21  ;;  %1620 = vmatpush1.bf16.msra.mxu1 %v5313_v25 }
 0x3b6   :  { %1580 = vmatprep.subr.bf16.mxu0 %v5314_v11  ;;  %1621 = vmatprep.subr.bf16.mxu1 %v5402_v43 }
 0x3b9   :  { %1581 = vmatpush1.bf16.msra.mxu0 %v5403_v3  ;;  %1622 = vmatpush1.bf16.msra.mxu1 %v5404_v2 }
 0x3ba   :  { %1582 = vmatprep.subr.bf16.mxu0 %v5405_v39  ;;  %1623 = vmatprep.subr.bf16.mxu1 %v5406_v41 }
 0x3bd   :  { %1583 = vmatpush1.bf16.msra.mxu0 %v5407_v0  ;;  %1624 = vmatpush1.bf16.msra.mxu1 %v5408_v38 }
 0x3be   :  { %1584 = vmatprep.subr.bf16.mxu0 %v5409_v40  ;;  %1625 = vmatprep.subr.bf16.mxu1 %v5410_v58  ;;  %v5420_v40 = vld [vmem:[#allocation105_spill] sm:$0xff]  ;;  %v5421_v58 = vld [vmem:[#allocation106_spill] sm:$0xff] }
 0x3c1   :  { %1585 = vmatpush1.bf16.msra.mxu0 %v5411_v46  ;;  %1626 = vmatpush1.bf16.msra.mxu1 %v5412_v49  ;;  %v5422_v46 = vld [vmem:[#allocation107_spill] sm:$0xff]  ;;  %v5423_v49 = vld [vmem:[#allocation108_spill] sm:$0xff] }
 0x3c2   :  { %1586 = vmatprep.subr.bf16.mxu0 %v5413_v62  ;;  %1627 = vmatprep.subr.bf16.mxu1 %v5414_v8  ;;  %v5424_v62 = vld [vmem:[#allocation109_spill] sm:$0xff]  ;;  %v5425_v8 = vld [vmem:[#allocation110_spill] sm:$0xff] }
 0x3c5   :  { %1587 = vmatpush1.bf16.msra.mxu0 %v5415_v32  ;;  %1628 = vmatpush1.bf16.msra.mxu1 %v5416_v56  ;;  %v5426_v32 = vld [vmem:[#allocation111_spill] sm:$0xff]  ;;  %v5427_v56 = vld [vmem:[#allocation112_spill] sm:$0xff] }
 0x3c6   :  { %1588 = vmatprep.subr.bf16.mxu0 %v5417_v37  ;;  %1629 = vmatprep.subr.bf16.mxu1 %v5418_v50  ;;  %v5428_v37 = vld [vmem:[#allocation113_spill] sm:$0xff]  ;;  %v5429_v50 = vld [vmem:[#allocation114_spill] sm:$0xff] }
 0x3c9   :  { %1589 = vmatpush1.bf16.msra.mxu0 %v5419_v31  ;;  %1630 = vmatpush1.bf16.msra.mxu1 %v5420_v40  ;;  %v5430_v31 = vld [vmem:[#allocation115_spill] sm:$0xff]  ;;  %v5431_v40 = vld [vmem:[#allocation116_spill] sm:$0xff] }
 0x3ca   :  { %1590 = vmatprep.subr.bf16.mxu0 %v5421_v58  ;;  %1631 = vmatprep.subr.bf16.mxu1 %v5422_v46 }
 0x3cd   :  { %1591 = vmatpush1.bf16.msra.mxu0 %v5423_v49  ;;  %1632 = vmatpush1.bf16.msra.mxu1 %v5424_v62  ;;  %v5432_v62 = vld [vmem:[#allocation120_spill] sm:$0xff] }
 0x3ce   :  { %1592 = vmatprep.subr.bf16.mxu0 %v5425_v8  ;;  %1633 = vmatprep.subr.bf16.mxu1 %v5426_v32  ;;  %v5433_v8 = vld [vmem:[#allocation121_spill] sm:$0xff] }
 0x3d1   :  { %1593 = vmatpush1.bf16.msra.mxu0 %v5427_v56  ;;  %1634 = vmatpush1.bf16.msra.mxu1 %v5428_v37 }
 0x3d2   :  { %1594 = vmatprep.subr.bf16.mxu0 %v5429_v50  ;;  %1635 = vmatprep.subr.bf16.mxu1 %v5430_v31 }
 0x3d5   :  { %1595 = vmatpush1.bf16.msra.mxu0 %v5431_v40  ;;  %1636 = vmatpush1.bf16.msra.mxu1 %v5345_v26 }
 0x3d6   :  { %1596 = vmatprep.subr.bf16.mxu0 %v5346_v7  ;;  %1637 = vmatprep.subr.bf16.mxu1 %v5347_v36 }
 0x3d9   :  { %1597 = vmatpush1.bf16.msra.mxu0 %v5432_v62  ;;  %1638 = vmatpush1.bf16.msra.mxu1 %v5433_v8 }
 0x3da   :  { %1598 = vmatprep.subr.bf16.mxu0 %v5350_v12  ;;  %1639 = vmatprep.subr.bf16.mxu1 %v5351_v17 }
 0x3dd   :  { %1599 = vmatpush1.bf16.msra.mxu0 %v5352_v51  ;;  %1640 = vmatpush1.bf16.msra.mxu1 %v5353_v33 }
 0x3de   :  { %1600 = vmatprep.subr.bf16.mxu0 %v5354_v59  ;;  %1641 = vmatprep.subr.bf16.mxu1 %v5355_v9 }
 0x3e1   :  { %1601 = vmatpush1.bf16.msra.mxu0 %v3772_v60  ;;  %1642 = vmatpush1.bf16.msra.mxu1 %v3774_v18 }
 0x3e2   :  { %1602 = vmatprep.subr.bf16.mxu0 %v3778_v47  ;;  %1643 = vmatprep.subr.bf16.mxu1 %v5356_v5 }
 0x3e5   :  { %1603 = vmatpush1.bf16.msra.mxu0 %v5357_v19  ;;  %1644 = vmatpush1.bf16.msra.mxu1 %v3786_v28 }
 0x3e6   :  { %1604 = vmatprep.subr.bf16.mxu0 %v3790_v16  ;;  %1645 = vmatprep.subr.bf16.mxu1 %v3792_v55  ;;  %v5493_v55 = vld [vmem:[#allocation144_spill] sm:$0xff] }
 0x3e9   :  { %1605 = vmatpush1.bf16.msra.mxu0 %v3796_v52  ;;  %1646 = vmatpush1.bf16.msra.mxu1 %v3798_v61 }
 0x3ea   :  { %1606 = vmatprep.subr.bf16.mxu0 %v3802_v45  ;;  %1647 = vmatprep.subr.bf16.mxu1 %v3804_v13 }
 0x3ed   :  { %1607 = vmatpush1.bf16.msra.mxu0 %v3808_v63  ;;  %1648 = vmatpush1.bf16.msra.mxu1 %v3810_v54  ;;  %v5434_v54 = vld [vmem:[#allocation14_spill] sm:$0xff]  ;;  %v5437_v63 = vld [vmem:[#allocation17_spill] sm:$0xff] }
 0x3ee   :  { %1738 = vmatprep.subr.bf16.mxu0 %v3380_v14  ;;  %1779 = vmatprep.subr.bf16.mxu1 %v3382_v15  ;;  %v5435_v14 = vld [vmem:[#allocation15_spill] sm:$0xff]  ;;  %v5436_v15 = vld [vmem:[#allocation16_spill] sm:$0xff] }
 0x3f0   :  { %1609 = vmatmul.mubr.bf16.vlgmr.msra.gmra.mrb[24].mxu0 %v4068_v57  ;;  %1650 = vmatmul.mubr.bf16.vlgmr.msra.gmra.mrb[24].mxu1 %v4068_v57  ;;  %v5438_v57 = vld [vmem:[#allocation18_spill] sm:$0xff] }
 0x3f1   :  { %1739 = vmatpush1.bf16.msra.mxu0 %v3386_v20  ;;  %1780 = vmatpush1.bf16.msra.mxu1 %v3389_v22  ;;  %v5439_v20 = vld [vmem:[#allocation19_spill] sm:$0xff]  ;;  %v5440_v22 = vld [vmem:[#allocation20_spill] sm:$0xff] }
 0x3f2   :  { %1740 = vmatprep.subr.bf16.mxu0 %v3391_v23  ;;  %1781 = vmatprep.subr.bf16.mxu1 %v3394_v24  ;;  %v5441_v23 = vld [vmem:[#allocation21_spill] sm:$0xff]  ;;  %v5442_v24 = vld [vmem:[#allocation22_spill] sm:$0xff] }
 0x3f5   :  { %1741 = vmatpush1.bf16.msra.mxu0 %v3399_v29  ;;  %1782 = vmatpush1.bf16.msra.mxu1 %v3403_v30  ;;  %v5443_v29 = vld [vmem:[#allocation23_spill] sm:$0xff]  ;;  %v5444_v30 = vld [vmem:[#allocation24_spill] sm:$0xff] }
 0x3f6   :  { %1742 = vmatprep.subr.bf16.mxu0 %v5434_v54  ;;  %1783 = vmatprep.subr.bf16.mxu1 %v5435_v14  ;;  %v5445_v54 = vld [vmem:[#allocation25_spill] sm:$0xff]  ;;  %v5446_v14 = vld [vmem:[#allocation26_spill] sm:$0xff] }
 0x3f9   :  { %1743 = vmatpush1.bf16.msra.mxu0 %v5436_v15  ;;  %1784 = vmatpush1.bf16.msra.mxu1 %v5437_v63  ;;  %v5447_v15 = vld [vmem:[#allocation27_spill] sm:$0xff]  ;;  %v5448_v63 = vld [vmem:[#allocation28_spill] sm:$0xff] }
 0x3fa   :  { %1744 = vmatprep.subr.bf16.mxu0 %v5438_v57  ;;  %1785 = vmatprep.subr.bf16.mxu1 %v5439_v20  ;;  %v5449_v57 = vld [vmem:[#allocation29_spill] sm:$0xff]  ;;  %v5450_v20 = vld [vmem:[#allocation30_spill] sm:$0xff] }
 0x3fd   :  { %1745 = vmatpush1.bf16.msra.mxu0 %v5440_v22  ;;  %1786 = vmatpush1.bf16.msra.mxu1 %v5441_v23  ;;  %v5451_v22 = vld [vmem:[#allocation31_spill] sm:$0xff]  ;;  %v5452_v23 = vld [vmem:[#allocation32_spill] sm:$0xff] }
 0x3fe   :  { %1746 = vmatprep.subr.bf16.mxu0 %v5442_v24  ;;  %1787 = vmatprep.subr.bf16.mxu1 %v5443_v29  ;;  %v5453_v24 = vld [vmem:[#allocation33_spill] sm:$0xff]  ;;  %v5454_v29 = vld [vmem:[#allocation34_spill] sm:$0xff] }
 0x401   :  { %1747 = vmatpush1.bf16.msra.mxu0 %v5444_v30  ;;  %1788 = vmatpush1.bf16.msra.mxu1 %v5445_v54  ;;  %v5455_v30 = vld [vmem:[#allocation35_spill] sm:$0xff]  ;;  %v5456_v54 = vld [vmem:[#allocation36_spill] sm:$0xff] }
 0x402   :  { %1748 = vmatprep.subr.bf16.mxu0 %v5446_v14  ;;  %1789 = vmatprep.subr.bf16.mxu1 %v5447_v15  ;;  %v5457_v14 = vld [vmem:[#allocation37_spill] sm:$0xff]  ;;  %v5458_v15 = vld [vmem:[#allocation38_spill] sm:$0xff] }
 0x405   :  { %1749 = vmatpush1.bf16.msra.mxu0 %v5448_v63  ;;  %1790 = vmatpush1.bf16.msra.mxu1 %v5449_v57  ;;  %v5459_v63 = vld [vmem:[#allocation39_spill] sm:$0xff]  ;;  %v5460_v57 = vld [vmem:[#allocation40_spill] sm:$0xff] }
 0x406   :  { %1750 = vmatprep.subr.bf16.mxu0 %v5450_v20  ;;  %1791 = vmatprep.subr.bf16.mxu1 %v5451_v22  ;;  %v5461_v20 = vld [vmem:[#allocation41_spill] sm:$0xff]  ;;  %v5462_v22 = vld [vmem:[#allocation42_spill] sm:$0xff] }
 0x409   :  { %1751 = vmatpush1.bf16.msra.mxu0 %v5452_v23  ;;  %1792 = vmatpush1.bf16.msra.mxu1 %v5453_v24  ;;  %v5463_v23 = vld [vmem:[#allocation43_spill] sm:$0xff]  ;;  %v5464_v24 = vld [vmem:[#allocation44_spill] sm:$0xff] }
 0x40a   :  { %1752 = vmatprep.subr.bf16.mxu0 %v5454_v29  ;;  %1793 = vmatprep.subr.bf16.mxu1 %v5455_v30  ;;  %v5465_v29 = vld [vmem:[#allocation45_spill] sm:$0xff]  ;;  %v5466_v30 = vld [vmem:[#allocation46_spill] sm:$0xff] }
 0x40d   :  { %1753 = vmatpush1.bf16.msra.mxu0 %v5456_v54  ;;  %1794 = vmatpush1.bf16.msra.mxu1 %v5457_v14  ;;  %v5467_v54 = vld [vmem:[#allocation47_spill] sm:$0xff]  ;;  %v5468_v14 = vld [vmem:[#allocation48_spill] sm:$0xff] }
 0x40e   :  { %1754 = vmatprep.subr.bf16.mxu0 %v5458_v15  ;;  %1795 = vmatprep.subr.bf16.mxu1 %v5459_v63  ;;  %v5469_v15 = vld [vmem:[#allocation49_spill] sm:$0xff]  ;;  %v5470_v63 = vld [vmem:[#allocation50_spill] sm:$0xff] }
 0x411   :  { %1755 = vmatpush1.bf16.msra.mxu0 %v5460_v57  ;;  %1796 = vmatpush1.bf16.msra.mxu1 %v5461_v20  ;;  %v5471_v57 = vld [vmem:[#allocation51_spill] sm:$0xff]  ;;  %v5472_v20 = vld [vmem:[#allocation52_spill] sm:$0xff] }
 0x412   :  { %1756 = vmatprep.subr.bf16.mxu0 %v5462_v22  ;;  %1797 = vmatprep.subr.bf16.mxu1 %v5463_v23  ;;  %v5473_v22 = vld [vmem:[#allocation53_spill] sm:$0xff]  ;;  %v5474_v23 = vld [vmem:[#allocation54_spill] sm:$0xff] }
 0x415   :  { %1757 = vmatpush1.bf16.msra.mxu0 %v5464_v24  ;;  %1798 = vmatpush1.bf16.msra.mxu1 %v5465_v29  ;;  %v5475_v24 = vld [vmem:[#allocation56_spill] sm:$0xff]  ;;  %v5476_v29 = vld [vmem:[#allocation55_spill] sm:$0xff] }
 0x416   :  { %1758 = vmatprep.subr.bf16.mxu0 %v5466_v30  ;;  %1799 = vmatprep.subr.bf16.mxu1 %v5467_v54  ;;  %v5477_v30 = vld [vmem:[#allocation57_spill] sm:$0xff]  ;;  %v5478_v54 = vld [vmem:[#allocation58_spill] sm:$0xff] }
 0x419   :  { %1759 = vmatpush1.bf16.msra.mxu0 %v5468_v14  ;;  %1800 = vmatpush1.bf16.msra.mxu1 %v5469_v15  ;;  %v5479_v14 = vld [vmem:[#allocation59_spill] sm:$0xff]  ;;  %v5480_v15 = vld [vmem:[#allocation60_spill] sm:$0xff] }
 0x41a   :  { %1760 = vmatprep.subr.bf16.mxu0 %v5470_v63  ;;  %1801 = vmatprep.subr.bf16.mxu1 %v5471_v57  ;;  %v5481_v63 = vld [vmem:[#allocation61_spill] sm:$0xff]  ;;  %v5482_v57 = vld [vmem:[#allocation62_spill] sm:$0xff] }
 0x41d   :  { %1761 = vmatpush1.bf16.msra.mxu0 %v5472_v20  ;;  %1802 = vmatpush1.bf16.msra.mxu1 %v5473_v22  ;;  %v5483_v20 = vld [vmem:[#allocation63_spill] sm:$0xff]  ;;  %v5484_v22 = vld [vmem:[#allocation64_spill] sm:$0xff] }
 0x41e   :  { %1762 = vmatprep.subr.bf16.mxu0 %v5474_v23  ;;  %1803 = vmatprep.subr.bf16.mxu1 %v5475_v24  ;;  %v5485_v23 = vld [vmem:[#allocation65_spill] sm:$0xff]  ;;  %v5486_v24 = vld [vmem:[#allocation66_spill] sm:$0xff] }
 0x421   :  { %1763 = vmatpush1.bf16.msra.mxu0 %v5476_v29  ;;  %1804 = vmatpush1.bf16.msra.mxu1 %v5477_v30  ;;  %v5487_v29 = vld [vmem:[#allocation67_spill] sm:$0xff]  ;;  %v5488_v30 = vld [vmem:[#allocation68_spill] sm:$0xff] }
 0x422   :  { %1764 = vmatprep.subr.bf16.mxu0 %v5478_v54  ;;  %1805 = vmatprep.subr.bf16.mxu1 %v5479_v14  ;;  %v5489_v54 = vld [vmem:[#allocation69_spill] sm:$0xff]  ;;  %v5490_v14 = vld [vmem:[#allocation70_spill] sm:$0xff] }
 0x425   :  { %1765 = vmatpush1.bf16.msra.mxu0 %v5480_v15  ;;  %1806 = vmatpush1.bf16.msra.mxu1 %v5481_v63  ;;  %v5491_v15 = vld [vmem:[#allocation71_spill] sm:$0xff] }
 0x426   :  { %1766 = vmatprep.subr.bf16.mxu0 %v5482_v57  ;;  %1807 = vmatprep.subr.bf16.mxu1 %v5483_v20 }
 0x429   :  { %1767 = vmatpush1.bf16.msra.mxu0 %v5484_v22  ;;  %1808 = vmatpush1.bf16.msra.mxu1 %v5485_v23 }
 0x42a   :  { %1768 = vmatprep.subr.bf16.mxu0 %v5486_v24  ;;  %1809 = vmatprep.subr.bf16.mxu1 %v5487_v29 }
 0x42d   :  { %1769 = vmatpush1.bf16.msra.mxu0 %v5488_v30  ;;  %1810 = vmatpush1.bf16.msra.mxu1 %v5489_v54  ;;  %v5492_v54 = vld [vmem:[#allocation143_spill] sm:$0xff] }
 0x42e   :  { %1820 = vmatprep.subr.bf16.mxu0 %v5490_v14  ;;  %1861 = vmatprep.subr.bf16.mxu1 %v5491_v15 }
 0x483   :  { %v1528_v63 = vpop.f32.mrb[20].mxu0  ;;  %v1569_v57 = vpop.f32.mrb[20].mxu1 }
 0x484   :  { %v1658_v20 = vadd.f32 %v1528_v63, %v5396_v48  ;;  %v1530_v13 = vpop.f32.mrb[21].mxu0  ;;  %v1571_v22 = vpop.f32.mrb[21].mxu1  ;;  %v1660_v14 = vadd.f32 %v1569_v57, %v5492_v54 }
 0x485   :  { %v1659_v23 = vadd.f32 %v1530_v13, %v5397_v42  ;;  %v1532_v45 = vpop.f32.mrb[22].mxu0  ;;  %v1573_v24 = vpop.f32.mrb[22].mxu1  ;;  %v1661_v15 = vadd.f32 %v1571_v22, %v5493_v55 }
 0x486   :  { %v2984_v61 = vmul.f32 -1.442695, %v1658_v20  ;;  %v1533_v29 = vpop.f32.mrb[23].mxu0  ;;  %v1574_v52 = vpop.f32.mrb[23].mxu1  ;;  %v2986_v16 = vmul.f32 -1.442695, %v1660_v14 }
 0x487   :  { %v2985_v30 = vmul.f32 -1.442695, %v1659_v23 }
 0x488   :  { %3108 = vpow2.f32 %v2984_v61 }
 0x489   :  { %3110 = vpow2.f32 %v2985_v30  ;;  %v5494_v30 = vld [vmem:[#allocation74_spill] sm:$0xff] }
 0x48a   :  { %3112 = vtanh.f32 %v1661_v15 }
 0x48b   :  { %3114 = vpow2.f32 %v2986_v16 }
 0x492   :  { %v3109_v28 = vpop.eup %3108 }
 0x493   :  { %v1671_v19 = vadd.f32 1.0, %v3109_v28  ;;  %v3111_v63 = vpop.eup %3110 }
 0x494   :  { %v1672_v13 = vadd.f32 1.0, %v3111_v63  ;;  %v3113_v24 = vpop.eup %3112 }
 0x495   :  { %3116 = vrcp.f32 %v1671_v19  ;;  %v3115_v20 = vpop.eup %3114 }
 0x496   :  { %3118 = vrcp.f32 %v1672_v13  ;;  %v1673_v61 = vadd.f32 1.0, %v3115_v20 }
 0x498   :  { %3120 = vrcp.f32 %v1673_v61 }
 0x49f   :  { %v3117_v29 = vpop.eup %3116 }
 0x4a0   :  { %v1682_v52 = vmul.f32 %v3117_v29, %v3113_v24  ;;  %v3119_v23 = vpop.eup %3118 }
 0x4a1   :  { %v1681_v45 = vmul.f32 %v3119_v23, %v5494_v30 }
 0x4a2   :  { %v3121_v14 = vpop.eup %3120 }
 0x4a3   :  { %v4207_v57 = vadd.f32 %v1682_v52, %v1681_v45 }
 0x4a5   :  { %5495 = vst [vmem:[#allocation79_spill] sm:$0xff] %v4207_v57  ;;  %3122 = vtanh.f32 %v4207_v57 }
 0x4af   :  { %v3123_v15 = vpop.eup %3122 }
 0x4b0   :  { %v1685_v22 = vmul.f32 %v3123_v15, %v3121_v14 }
 0x4b2   :  { %v1686_v28 = vpack.c.bf16 %v1685_v22, %v1685_v22 }
 0x4b4   :  { %v1732_v16 = vrot.slane %v1686_v28, 5 }
 0x4b6   :  { %v1735_v19 = vrot.slane %v1732_v16, 3 }
 0x4b8   :  { %1770 = vmatprep.mubr.bf16.mxu0 %v1735_v19  ;;  %1811 = vmatprep.mubr.bf16.mxu1 %v1735_v19 }
 0x4c3   :  { %v1610_v63 = vpop.f32.mrb[24].mxu0  ;;  %v1651_v13 = vpop.f32.mrb[24].mxu1 }
 0x4c4   :  { %v1691_v24 = vrot.slane %v1610_v63, 2  ;;  %v1612_v29 = vpop.f32.mrb[25].mxu0  ;;  %v1653_v20 = vpop.f32.mrb[25].mxu1  ;;  %v1693_v22 = vrot.slane %v1651_v13, 2  ;;  %v1723_v13 = vrot.slane %v4065_v53, 6  ;;  %v5496_v53 = vld [vmem:[#allocation94_spill] sm:$0xff] }
 0x4c5   :  { %v1692_v55 = vrot.slane %v1612_v29, 2  ;;  %v1614_v23 = vpop.f32.mrb[26].mxu0  ;;  %v1655_v52 = vpop.f32.mrb[26].mxu1  ;;  %v1694_v28 = vrot.slane %v1653_v20, 2 }
 0x4c6   :  { %v1699_v61 = vadd.f32 %v1691_v24, %v3603_v4  ;;  %v1615_v30 = vpop.f32.mrb[27].mxu0  ;;  %v1656_v45 = vpop.f32.mrb[27].mxu1  ;;  %v1701_v16 = vadd.f32 %v1693_v22, %v5306_v35  ;;  %v5498_v22 = vld [vmem:[#allocation96_spill] sm:$0xff] }
 0x4c7   :  { %v1700_v57 = vadd.f32 %v1692_v55, %v5305_v10  ;;  %v1702_v63 = vadd.f32 %v1694_v28, %v5307_v1  ;;  %v5499_v28 = vld [vmem:[#allocation97_spill] sm:$0xff] }
 0x4c8   :  { %v2987_v14 = vmul.f32 -1.442695, %v1699_v61  ;;  %v2989_v54 = vmul.f32 -1.442695, %v1701_v16  ;;  %v5500_v16 = vld [vmem:[#allocation98_spill] sm:$0xff] }
 0x4c9   :  { %v2988_v15 = vmul.f32 -1.442695, %v1700_v57 }
 0x4ca   :  { %3124 = vpow2.f32 %v2987_v14 }
 0x4cb   :  { %3126 = vpow2.f32 %v2988_v15 }
 0x4cc   :  { %3128 = vtanh.f32 %v1702_v63  ;;  %v5501_v63 = vld [vmem:[#allocation99_spill] sm:$0xff] }
 0x4cd   :  { %3130 = vpow2.f32 %v2989_v54 }
 0x4d4   :  { %v3125_v29 = vpop.eup %3124 }
 0x4d5   :  { %v1712_v23 = vadd.f32 1.0, %v3125_v29  ;;  %v3127_v52 = vpop.eup %3126  ;;  %v5502_v29 = vld [vmem:[#allocation100_spill] sm:$0xff] }
 0x4d6   :  { %v1713_v4 = vadd.f32 1.0, %v3127_v52  ;;  %v3129_v10 = vpop.eup %3128  ;;  %v5504_v52 = vld [vmem:[#allocation102_spill] sm:$0xff] }
 0x4d7   :  { %3132 = vrcp.f32 %v1712_v23  ;;  %v3131_v55 = vpop.eup %3130  ;;  %v5503_v23 = vld [vmem:[#allocation101_spill] sm:$0xff] }
 0x4d8   :  { %3134 = vrcp.f32 %v1713_v4  ;;  %v1714_v61 = vadd.f32 1.0, %v3131_v55  ;;  %v5505_v4 = vld [vmem:[#allocation103_spill] sm:$0xff]  ;;  %v5507_v55 = vld [vmem:[#allocation105_spill] sm:$0xff] }
 0x4da   :  { %3136 = vrcp.f32 %v1714_v61  ;;  %v5512_v61 = vld [vmem:[#allocation134_spill] sm:$0xff] }
 0x4e1   :  { %v3133_v57 = vpop.eup %3132 }
 0x4e2   :  { %v1726_v24 = vmul.f32 %v3133_v57, %v3129_v10  ;;  %v3135_v20 = vpop.eup %3134  ;;  %v5506_v10 = vld [vmem:[#allocation104_spill] sm:$0xff]  ;;  %v5508_v57 = vld [vmem:[#allocation109_spill] sm:$0xff] }
 0x4e3   :  { %v1725_v35 = vmul.f32 %v3135_v20, %v1723_v13  ;;  %v5509_v13 = vld [vmem:[#allocation110_spill] sm:$0xff]  ;;  %v5511_v20 = vld [vmem:[#allocation133_spill] sm:$0xff] }
 0x4e4   :  { %v3137_v1 = vpop.eup %3136 }
 0x4e5   :  { %v4215_v30 = vadd.f32 %v1726_v24, %v1725_v35  ;;  %v5510_v24 = vld [vmem:[#allocation132_spill] sm:$0xff]  ;;  %v5513_v35 = vld [vmem:[#allocation135_spill] sm:$0xff] }
 0x4e7   :  { %3138 = vtanh.f32 %v4215_v30 }
 0x4f1   :  { %v3139_v45 = vpop.eup %3138 }
 0x4f2   :  { %v1729_v54 = vmul.f32 %v3139_v45, %v3137_v1  ;;  %v5514_v1 = vld [vmem:[#allocation136_spill] sm:$0xff]  ;;  %v5515_v45 = vld [vmem:[#allocation137_spill] sm:$0xff] }
 0x4f4   :  { %v1730_v14 = vpack.c.bf16 %v1729_v54, %v1729_v54  ;;  %v5516_v54 = vld [vmem:[#allocation138_spill] sm:$0xff] }
 0x4f6   :  { %v4218_v15 = vrot.slane %v1730_v14, 3  ;;  %v5517_v14 = vld [vmem:[#allocation139_spill] sm:$0xff] }
 0x4f8   :  { %1771 = vmatmul.mubr.bf16.vlgmr.msra.gmra.mrb[28].mxu0 %v4218_v15  ;;  %1812 = vmatmul.mubr.bf16.vlgmr.msra.gmra.mrb[28].mxu1 %v4218_v15 }
 0x4f9   :  { %1821 = vmatpush1.bf16.msra.mxu0 %v3584_v6  ;;  %1862 = vmatpush1.bf16.msra.mxu1 %v5309_v27 }
 0x4fa   :  { %1852 = vmatprep.mubr.bf16.mxu0 %v1735_v19  ;;  %1893 = vmatprep.mubr.bf16.mxu1 %v1735_v19  ;;  %v5497_v19 = vld [vmem:[#allocation95_spill] sm:$0xff] }
 0x4fb   :  { %1822 = vmatprep.subr.bf16.mxu0 %v5310_v34  ;;  %1863 = vmatprep.subr.bf16.mxu1 %v5311_v44 }
 0x4fd   :  { %1823 = vmatpush1.bf16.msra.mxu0 %v5312_v21  ;;  %1864 = vmatpush1.bf16.msra.mxu1 %v5313_v25 }
 0x4fe   :  { %1824 = vmatprep.subr.bf16.mxu0 %v5314_v11  ;;  %1865 = vmatprep.subr.bf16.mxu1 %v5402_v43 }
 0x501   :  { %1825 = vmatpush1.bf16.msra.mxu0 %v5403_v3  ;;  %1866 = vmatpush1.bf16.msra.mxu1 %v5404_v2 }
 0x502   :  { %1826 = vmatprep.subr.bf16.mxu0 %v5405_v39  ;;  %1867 = vmatprep.subr.bf16.mxu1 %v5406_v41 }
 0x505   :  { %1827 = vmatpush1.bf16.msra.mxu0 %v5407_v0  ;;  %1868 = vmatpush1.bf16.msra.mxu1 %v5408_v38 }
 0x506   :  { %1828 = vmatprep.subr.bf16.mxu0 %v5496_v53  ;;  %1869 = vmatprep.subr.bf16.mxu1 %v5497_v19 }
 0x509   :  { %1829 = vmatpush1.bf16.msra.mxu0 %v5498_v22  ;;  %1870 = vmatpush1.bf16.msra.mxu1 %v5499_v28 }
 0x50a   :  { %1830 = vmatprep.subr.bf16.mxu0 %v5500_v16  ;;  %1871 = vmatprep.subr.bf16.mxu1 %v5501_v63 }
 0x50d   :  { %1831 = vmatpush1.bf16.msra.mxu0 %v5502_v29  ;;  %1872 = vmatpush1.bf16.msra.mxu1 %v5503_v23 }
 0x50e   :  { %1832 = vmatprep.subr.bf16.mxu0 %v5504_v52  ;;  %1873 = vmatprep.subr.bf16.mxu1 %v5505_v4 }
 0x511   :  { %1833 = vmatpush1.bf16.msra.mxu0 %v5506_v10  ;;  %1874 = vmatpush1.bf16.msra.mxu1 %v5507_v55 }
 0x512   :  { %1834 = vmatprep.subr.bf16.mxu0 %v5421_v58  ;;  %1875 = vmatprep.subr.bf16.mxu1 %v5422_v46 }
 0x515   :  { %1835 = vmatpush1.bf16.msra.mxu0 %v5423_v49  ;;  %1876 = vmatpush1.bf16.msra.mxu1 %v5508_v57 }
 0x516   :  { %1836 = vmatprep.subr.bf16.mxu0 %v5509_v13  ;;  %1877 = vmatprep.subr.bf16.mxu1 %v5426_v32 }
 0x519   :  { %1837 = vmatpush1.bf16.msra.mxu0 %v5427_v56  ;;  %1878 = vmatpush1.bf16.msra.mxu1 %v5428_v37 }
 0x51a   :  { %1838 = vmatprep.subr.bf16.mxu0 %v5429_v50  ;;  %1879 = vmatprep.subr.bf16.mxu1 %v5430_v31 }
 0x51d   :  { %1839 = vmatpush1.bf16.msra.mxu0 %v5431_v40  ;;  %1880 = vmatpush1.bf16.msra.mxu1 %v5345_v26 }
 0x51e   :  { %1840 = vmatprep.subr.bf16.mxu0 %v5346_v7  ;;  %1881 = vmatprep.subr.bf16.mxu1 %v5347_v36 }
 0x521   :  { %1841 = vmatpush1.bf16.msra.mxu0 %v5432_v62  ;;  %1882 = vmatpush1.bf16.msra.mxu1 %v5433_v8 }
 0x522   :  { %1842 = vmatprep.subr.bf16.mxu0 %v5350_v12  ;;  %1883 = vmatprep.subr.bf16.mxu1 %v5351_v17 }
 0x525   :  { %1843 = vmatpush1.bf16.msra.mxu0 %v5352_v51  ;;  %1884 = vmatpush1.bf16.msra.mxu1 %v5353_v33  ;;  %v5587_v33 = vld [vmem:[#allocation144_spill] sm:$0xff] }
 0x526   :  { %1844 = vmatprep.subr.bf16.mxu0 %v5354_v59  ;;  %1885 = vmatprep.subr.bf16.mxu1 %v5355_v9 }
 0x529   :  { %1845 = vmatpush1.bf16.msra.mxu0 %v3772_v60  ;;  %1886 = vmatpush1.bf16.msra.mxu1 %v3774_v18  ;;  %v5518_v18 = vld [vmem:[#allocation140_spill] sm:$0xff] }
 0x52a   :  { %1846 = vmatprep.subr.bf16.mxu0 %v3778_v47  ;;  %1887 = vmatprep.subr.bf16.mxu1 %v5356_v5  ;;  %v5519_v47 = vld [vmem:[#allocation141_spill] sm:$0xff]  ;;  %v5520_v5 = vld [vmem:[#allocation6_spill] sm:$0xff] }
 0x52d   :  { %1847 = vmatpush1.bf16.msra.mxu0 %v5510_v24  ;;  %1888 = vmatpush1.bf16.msra.mxu1 %v5511_v20  ;;  %v5521_v24 = vld [vmem:[#allocation7_spill] sm:$0xff] }
 0x52e   :  { %1848 = vmatprep.subr.bf16.mxu0 %v5512_v61  ;;  %1889 = vmatprep.subr.bf16.mxu1 %v5513_v35  ;;  %v5522_v35 = vld [vmem:[#allocation8_spill] sm:$0xff]  ;;  %v5531_v61 = vld [vmem:[#allocation17_spill] sm:$0xff] }
 0x531   :  { %1849 = vmatpush1.bf16.msra.mxu0 %v5514_v1  ;;  %1890 = vmatpush1.bf16.msra.mxu1 %v5515_v45  ;;  %v5523_v1 = vld [vmem:[#allocation9_spill] sm:$0xff]  ;;  %v5524_v45 = vld [vmem:[#allocation10_spill] sm:$0xff] }
 0x532   :  { %1850 = vmatprep.subr.bf16.mxu0 %v5516_v54  ;;  %1891 = vmatprep.subr.bf16.mxu1 %v5517_v14  ;;  %v5525_v54 = vld [vmem:[#allocation11_spill] sm:$0xff]  ;;  %v5526_v14 = vld [vmem:[#allocation12_spill] sm:$0xff] }
 0x535   :  { %1851 = vmatpush1.bf16.msra.mxu0 %v5518_v18  ;;  %1892 = vmatpush1.bf16.msra.mxu1 %v5519_v47  ;;  %v5527_v18 = vld [vmem:[#allocation13_spill] sm:$0xff]  ;;  %v5528_v47 = vld [vmem:[#allocation14_spill] sm:$0xff] }
 0x536   :  { %1963 = vmatprep.subr.bf16.mxu0 %v5520_v5  ;;  %2004 = vmatprep.subr.bf16.mxu1 %v5521_v24  ;;  %v5529_v5 = vld [vmem:[#allocation15_spill] sm:$0xff]  ;;  %v5530_v24 = vld [vmem:[#allocation16_spill] sm:$0xff] }
 0x538   :  { %1853 = vmatmul.mubr.bf16.vlgmr.msra.gmra.mrb[32].mxu0 %v4218_v15  ;;  %1894 = vmatmul.mubr.bf16.vlgmr.msra.gmra.mrb[32].mxu1 %v4218_v15  ;;  %v5532_v15 = vld [vmem:[#allocation18_spill] sm:$0xff] }
 0x539   :  { %1964 = vmatpush1.bf16.msra.mxu0 %v5522_v35  ;;  %2005 = vmatpush1.bf16.msra.mxu1 %v5523_v1  ;;  %v5533_v35 = vld [vmem:[#allocation19_spill] sm:$0xff]  ;;  %v5534_v1 = vld [vmem:[#allocation20_spill] sm:$0xff] }
 0x53a   :  { %1965 = vmatprep.subr.bf16.mxu0 %v5524_v45  ;;  %2006 = vmatprep.subr.bf16.mxu1 %v5525_v54  ;;  %v5535_v45 = vld [vmem:[#allocation21_spill] sm:$0xff]  ;;  %v5536_v54 = vld [vmem:[#allocation22_spill] sm:$0xff] }
 0x53d   :  { %1966 = vmatpush1.bf16.msra.mxu0 %v5526_v14  ;;  %2007 = vmatpush1.bf16.msra.mxu1 %v5527_v18  ;;  %v5537_v14 = vld [vmem:[#allocation23_spill] sm:$0xff]  ;;  %v5538_v18 = vld [vmem:[#allocation24_spill] sm:$0xff] }
 0x53e   :  { %1967 = vmatprep.subr.bf16.mxu0 %v5528_v47  ;;  %2008 = vmatprep.subr.bf16.mxu1 %v5529_v5  ;;  %v5539_v47 = vld [vmem:[#allocation25_spill] sm:$0xff]  ;;  %v5540_v5 = vld [vmem:[#allocation26_spill] sm:$0xff] }
 0x541   :  { %1968 = vmatpush1.bf16.msra.mxu0 %v5530_v24  ;;  %2009 = vmatpush1.bf16.msra.mxu1 %v5531_v61  ;;  %v5541_v24 = vld [vmem:[#allocation27_spill] sm:$0xff]  ;;  %v5542_v61 = vld [vmem:[#allocation28_spill] sm:$0xff] }
 0x542   :  { %1969 = vmatprep.subr.bf16.mxu0 %v5532_v15  ;;  %2010 = vmatprep.subr.bf16.mxu1 %v5533_v35  ;;  %v5543_v15 = vld [vmem:[#allocation29_spill] sm:$0xff]  ;;  %v5544_v35 = vld [vmem:[#allocation30_spill] sm:$0xff] }
 0x545   :  { %1970 = vmatpush1.bf16.msra.mxu0 %v5534_v1  ;;  %2011 = vmatpush1.bf16.msra.mxu1 %v5535_v45  ;;  %v5545_v1 = vld [vmem:[#allocation31_spill] sm:$0xff]  ;;  %v5546_v45 = vld [vmem:[#allocation32_spill] sm:$0xff] }
 0x546   :  { %1971 = vmatprep.subr.bf16.mxu0 %v5536_v54  ;;  %2012 = vmatprep.subr.bf16.mxu1 %v5537_v14  ;;  %v5547_v54 = vld [vmem:[#allocation33_spill] sm:$0xff]  ;;  %v5548_v14 = vld [vmem:[#allocation34_spill] sm:$0xff] }
 0x549   :  { %1972 = vmatpush1.bf16.msra.mxu0 %v5538_v18  ;;  %2013 = vmatpush1.bf16.msra.mxu1 %v5539_v47  ;;  %v5549_v18 = vld [vmem:[#allocation35_spill] sm:$0xff]  ;;  %v5550_v47 = vld [vmem:[#allocation36_spill] sm:$0xff] }
 0x54a   :  { %1973 = vmatprep.subr.bf16.mxu0 %v5540_v5  ;;  %2014 = vmatprep.subr.bf16.mxu1 %v5541_v24  ;;  %v5551_v5 = vld [vmem:[#allocation37_spill] sm:$0xff]  ;;  %v5552_v24 = vld [vmem:[#allocation38_spill] sm:$0xff] }
 0x54d   :  { %1974 = vmatpush1.bf16.msra.mxu0 %v5542_v61  ;;  %2015 = vmatpush1.bf16.msra.mxu1 %v5543_v15  ;;  %v5553_v61 = vld [vmem:[#allocation39_spill] sm:$0xff]  ;;  %v5554_v15 = vld [vmem:[#allocation40_spill] sm:$0xff] }
 0x54e   :  { %1975 = vmatprep.subr.bf16.mxu0 %v5544_v35  ;;  %2016 = vmatprep.subr.bf16.mxu1 %v5545_v1  ;;  %v5555_v35 = vld [vmem:[#allocation41_spill] sm:$0xff]  ;;  %v5556_v1 = vld [vmem:[#allocation42_spill] sm:$0xff] }
 0x551   :  { %1976 = vmatpush1.bf16.msra.mxu0 %v5546_v45  ;;  %2017 = vmatpush1.bf16.msra.mxu1 %v5547_v54  ;;  %v5557_v45 = vld [vmem:[#allocation43_spill] sm:$0xff]  ;;  %v5558_v54 = vld [vmem:[#allocation44_spill] sm:$0xff] }
 0x552   :  { %1977 = vmatprep.subr.bf16.mxu0 %v5548_v14  ;;  %2018 = vmatprep.subr.bf16.mxu1 %v5549_v18  ;;  %v5559_v14 = vld [vmem:[#allocation45_spill] sm:$0xff]  ;;  %v5560_v18 = vld [vmem:[#allocation46_spill] sm:$0xff] }
 0x555   :  { %1978 = vmatpush1.bf16.msra.mxu0 %v5550_v47  ;;  %2019 = vmatpush1.bf16.msra.mxu1 %v5551_v5  ;;  %v5561_v47 = vld [vmem:[#allocation47_spill] sm:$0xff]  ;;  %v5562_v5 = vld [vmem:[#allocation48_spill] sm:$0xff] }
 0x556   :  { %1979 = vmatprep.subr.bf16.mxu0 %v5552_v24  ;;  %2020 = vmatprep.subr.bf16.mxu1 %v5553_v61  ;;  %v5563_v24 = vld [vmem:[#allocation49_spill] sm:$0xff]  ;;  %v5564_v61 = vld [vmem:[#allocation50_spill] sm:$0xff] }
 0x559   :  { %1980 = vmatpush1.bf16.msra.mxu0 %v5554_v15  ;;  %2021 = vmatpush1.bf16.msra.mxu1 %v5555_v35  ;;  %v5565_v15 = vld [vmem:[#allocation51_spill] sm:$0xff]  ;;  %v5566_v35 = vld [vmem:[#allocation52_spill] sm:$0xff] }
 0x55a   :  { %1981 = vmatprep.subr.bf16.mxu0 %v5556_v1  ;;  %2022 = vmatprep.subr.bf16.mxu1 %v5557_v45  ;;  %v5567_v1 = vld [vmem:[#allocation53_spill] sm:$0xff]  ;;  %v5568_v45 = vld [vmem:[#allocation54_spill] sm:$0xff] }
 0x55d   :  { %1982 = vmatpush1.bf16.msra.mxu0 %v5558_v54  ;;  %2023 = vmatpush1.bf16.msra.mxu1 %v5559_v14  ;;  %v5569_v54 = vld [vmem:[#allocation56_spill] sm:$0xff]  ;;  %v5570_v14 = vld [vmem:[#allocation55_spill] sm:$0xff] }
 0x55e   :  { %1983 = vmatprep.subr.bf16.mxu0 %v5560_v18  ;;  %2024 = vmatprep.subr.bf16.mxu1 %v5561_v47  ;;  %v5571_v18 = vld [vmem:[#allocation57_spill] sm:$0xff]  ;;  %v5572_v47 = vld [vmem:[#allocation58_spill] sm:$0xff] }
 0x561   :  { %1984 = vmatpush1.bf16.msra.mxu0 %v5562_v5  ;;  %2025 = vmatpush1.bf16.msra.mxu1 %v5563_v24  ;;  %v5573_v5 = vld [vmem:[#allocation59_spill] sm:$0xff]  ;;  %v5574_v24 = vld [vmem:[#allocation60_spill] sm:$0xff] }
 0x562   :  { %1985 = vmatprep.subr.bf16.mxu0 %v5564_v61  ;;  %2026 = vmatprep.subr.bf16.mxu1 %v5565_v15  ;;  %v5575_v61 = vld [vmem:[#allocation61_spill] sm:$0xff]  ;;  %v5576_v15 = vld [vmem:[#allocation62_spill] sm:$0xff] }
 0x565   :  { %1986 = vmatpush1.bf16.msra.mxu0 %v5566_v35  ;;  %2027 = vmatpush1.bf16.msra.mxu1 %v5567_v1  ;;  %v5577_v35 = vld [vmem:[#allocation63_spill] sm:$0xff]  ;;  %v5578_v1 = vld [vmem:[#allocation64_spill] sm:$0xff] }
 0x566   :  { %1987 = vmatprep.subr.bf16.mxu0 %v5568_v45  ;;  %2028 = vmatprep.subr.bf16.mxu1 %v5569_v54  ;;  %v5579_v45 = vld [vmem:[#allocation65_spill] sm:$0xff]  ;;  %v5580_v54 = vld [vmem:[#allocation66_spill] sm:$0xff] }
 0x569   :  { %1988 = vmatpush1.bf16.msra.mxu0 %v5570_v14  ;;  %2029 = vmatpush1.bf16.msra.mxu1 %v5571_v18  ;;  %v5581_v14 = vld [vmem:[#allocation67_spill] sm:$0xff]  ;;  %v5582_v18 = vld [vmem:[#allocation68_spill] sm:$0xff] }
 0x56a   :  { %1989 = vmatprep.subr.bf16.mxu0 %v5572_v47  ;;  %2030 = vmatprep.subr.bf16.mxu1 %v5573_v5  ;;  %v5583_v47 = vld [vmem:[#allocation69_spill] sm:$0xff]  ;;  %v5584_v5 = vld [vmem:[#allocation70_spill] sm:$0xff] }
 0x56d   :  { %1990 = vmatpush1.bf16.msra.mxu0 %v5574_v24  ;;  %2031 = vmatpush1.bf16.msra.mxu1 %v5575_v61  ;;  %v5585_v24 = vld [vmem:[#allocation71_spill] sm:$0xff] }
 0x56e   :  { %1991 = vmatprep.subr.bf16.mxu0 %v5576_v15  ;;  %2032 = vmatprep.subr.bf16.mxu1 %v5577_v35 }
 0x571   :  { %1992 = vmatpush1.bf16.msra.mxu0 %v5578_v1  ;;  %2033 = vmatpush1.bf16.msra.mxu1 %v5579_v45 }
 0x572   :  { %1993 = vmatprep.subr.bf16.mxu0 %v5580_v54  ;;  %2034 = vmatprep.subr.bf16.mxu1 %v5581_v14 }
 0x575   :  { %1994 = vmatpush1.bf16.msra.mxu0 %v5582_v18  ;;  %2035 = vmatpush1.bf16.msra.mxu1 %v5583_v47  ;;  %v5586_v47 = vld [vmem:[#allocation143_spill] sm:$0xff] }
 0x576   :  { %2045 = vmatprep.subr.bf16.mxu0 %v5584_v5  ;;  %2086 = vmatprep.subr.bf16.mxu1 %v5585_v24 }
 0x5cb   :  { %v1772_v61 = vpop.f32.mrb[28].mxu0  ;;  %v1813_v15 = vpop.f32.mrb[28].mxu1 }
 0x5cc   :  { %v1902_v35 = vadd.f32 %v1772_v61, %v5396_v48  ;;  %v1774_v20 = vpop.f32.mrb[29].mxu0  ;;  %v1815_v1 = vpop.f32.mrb[29].mxu1  ;;  %v1904_v5 = vadd.f32 %v1813_v15, %v5586_v47 }
 0x5cd   :  { %v1903_v45 = vadd.f32 %v1774_v20, %v5397_v42  ;;  %v1776_v60 = vpop.f32.mrb[30].mxu0  ;;  %v1817_v54 = vpop.f32.mrb[30].mxu1  ;;  %v1905_v24 = vadd.f32 %v1815_v1, %v5587_v33 }
 0x5ce   :  { %v2990_v9 = vmul.f32 -1.442695, %v1902_v35  ;;  %v1777_v14 = vpop.f32.mrb[31].mxu0  ;;  %v1818_v59 = vpop.f32.mrb[31].mxu1  ;;  %v2992_v51 = vmul.f32 -1.442695, %v1904_v5 }
 0x5cf   :  { %v2991_v18 = vmul.f32 -1.442695, %v1903_v45 }
 0x5d0   :  { %3140 = vpow2.f32 %v2990_v9 }
 0x5d1   :  { %3142 = vpow2.f32 %v2991_v18  ;;  %v5588_v18 = vld [vmem:[#allocation79_spill] sm:$0xff] }
 0x5d2   :  { %3144 = vtanh.f32 %v1905_v24 }
 0x5d3   :  { %3146 = vpow2.f32 %v2992_v51 }
 0x5da   :  { %v3141_v17 = vpop.eup %3140 }
 0x5db   :  { %v1915_v12 = vadd.f32 1.0, %v3141_v17  ;;  %v3143_v61 = vpop.eup %3142 }
 0x5dc   :  { %v1916_v20 = vadd.f32 1.0, %v3143_v61  ;;  %v3145_v60 = vpop.eup %3144  ;;  %v5590_v61 = vld [vmem:[#allocation75_spill] sm:$0xff] }
 0x5dd   :  { %3148 = vrcp.f32 %v1915_v12  ;;  %v3147_v35 = vpop.eup %3146 }
 0x5de   :  { %3150 = vrcp.f32 %v1916_v20  ;;  %v1917_v9 = vadd.f32 1.0, %v3147_v35  ;;  %v5591_v35 = vld [vmem:[#allocation76_spill] sm:$0xff] }
 0x5e0   :  { %3152 = vrcp.f32 %v1917_v9 }
 0x5e7   :  { %v3149_v54 = vpop.eup %3148 }
 0x5e8   :  { %v1926_v59 = vmul.f32 %v3149_v54, %v3145_v60  ;;  %v3151_v45 = vpop.eup %3150 }
 0x5e9   :  { %v1925_v14 = vmul.f32 %v3151_v45, %v5588_v18 }
 0x5ea   :  { %v3153_v5 = vpop.eup %3152 }
 0x5eb   :  { %v4357_v15 = vadd.f32 %v1926_v59, %v1925_v14 }
 0x5ed   :  { %5589 = vst [vmem:[#allocation80_spill] sm:$0xff] %v4357_v15  ;;  %3154 = vtanh.f32 %v4357_v15 }
 0x5f7   :  { %v3155_v17 = vpop.eup %3154 }
 0x5f8   :  { %v1929_v24 = vmul.f32 %v3155_v17, %v3153_v5  ;;  %v5592_v5 = vld [vmem:[#allocation77_spill] sm:$0xff] }
 0x5fa   :  { %v1930_v51 = vpack.c.bf16 %v1929_v24, %v1929_v24  ;;  %v5593_v24 = vld [vmem:[#allocation78_spill] sm:$0xff] }
 0x5fc   :  { %1995 = vmatprep.mubr.bf16.mxu0 %v1930_v51  ;;  %2036 = vmatprep.mubr.bf16.mxu1 %v1930_v51 }
 0x60b   :  { %v1854_v12 = vpop.f32.mrb[32].mxu0  ;;  %v1895_v1 = vpop.f32.mrb[32].mxu1 }
 0x60c   :  { %v1931_v20 = vadd.f32 %v1854_v12, %v5590_v61  ;;  %v1856_v60 = vpop.f32.mrb[33].mxu0  ;;  %v1897_v54 = vpop.f32.mrb[33].mxu1  ;;  %v1933_v17 = vadd.f32 %v1895_v1, %v5592_v5 }
 0x60d   :  { %v1932_v33 = vadd.f32 %v1856_v60, %v5591_v35  ;;  %v1858_v45 = vpop.f32.mrb[34].mxu0  ;;  %v1899_v59 = vpop.f32.mrb[34].mxu1  ;;  %v1934_v47 = vadd.f32 %v1897_v54, %v5593_v24  ;;  %v5596_v54 = vld [vmem:[#allocation123_spill] sm:$0xff] }
 0x60e   :  { %v2993_v18 = vmul.f32 -1.442695, %v1931_v20  ;;  %v1859_v9 = vpop.f32.mrb[35].mxu0  ;;  %v1900_v14 = vpop.f32.mrb[35].mxu1  ;;  %v2995_v42 = vmul.f32 -1.442695, %v1933_v17 }
 0x60f   :  { %v2994_v15 = vmul.f32 -1.442695, %v1932_v33  ;;  %v1955_v33 = vrot.slane %v4215_v30, 6  ;;  %v5594_v30 = vld [vmem:[#allocation121_spill] sm:$0xff]  ;;  %v5597_v17 = vld [vmem:[#allocation124_spill] sm:$0xff] }
 0x610   :  { %3156 = vpow2.f32 %v2993_v18 }
 0x611   :  { %3158 = vpow2.f32 %v2994_v15 }
 0x612   :  { %3160 = vtanh.f32 %v1934_v47 }
 0x613   :  { %3162 = vpow2.f32 %v2995_v42 }
 0x61a   :  { %v3157_v48 = vpop.eup %3156 }
 0x61b   :  { %v1944_v8 = vadd.f32 1.0, %v3157_v48  ;;  %v3159_v12 = vpop.eup %3158 }
 0x61c   :  { %v1945_v60 = vadd.f32 1.0, %v3159_v12  ;;  %v3161_v45 = vpop.eup %3160  ;;  %v5598_v12 = vld [vmem:[#allocation125_spill] sm:$0xff] }
 0x61d   :  { %3164 = vrcp.f32 %v1944_v8  ;;  %v3163_v20 = vpop.eup %3162 }
 0x61e   :  { %3166 = vrcp.f32 %v1945_v60  ;;  %v1946_v9 = vadd.f32 1.0, %v3163_v20  ;;  %v5599_v60 = vld [vmem:[#allocation126_spill] sm:$0xff]  ;;  %v5601_v20 = vld [vmem:[#allocation128_spill] sm:$0xff] }
 0x620   :  { %3168 = vrcp.f32 %v1946_v9  ;;  %v5606_v9 = vld [vmem:[#allocation133_spill] sm:$0xff] }
 0x627   :  { %v3165_v59 = vpop.eup %3164 }
 0x628   :  { %v1958_v18 = vmul.f32 %v3165_v59, %v3161_v45  ;;  %v3167_v15 = vpop.eup %3166  ;;  %v5600_v45 = vld [vmem:[#allocation127_spill] sm:$0xff]  ;;  %v5602_v59 = vld [vmem:[#allocation129_spill] sm:$0xff] }
 0x629   :  { %v1957_v1 = vmul.f32 %v3167_v15, %v1955_v33  ;;  %v5603_v33 = vld [vmem:[#allocation130_spill] sm:$0xff]  ;;  %v5605_v15 = vld [vmem:[#allocation132_spill] sm:$0xff] }
 0x62a   :  { %v3169_v48 = vpop.eup %3168 }
 0x62b   :  { %v4365_v14 = vadd.f32 %v1958_v18, %v1957_v1  ;;  %v5604_v18 = vld [vmem:[#allocation131_spill] sm:$0xff]  ;;  %v5607_v1 = vld [vmem:[#allocation134_spill] sm:$0xff] }
 0x62d   :  { %3170 = vtanh.f32 %v4365_v14 }
 0x637   :  { %v3171_v47 = vpop.eup %3170 }
 0x638   :  { %v1961_v42 = vmul.f32 %v3171_v47, %v3169_v48  ;;  %v5608_v48 = vld [vmem:[#allocation135_spill] sm:$0xff]  ;;  %v5609_v47 = vld [vmem:[#allocation136_spill] sm:$0xff] }
 0x63a   :  { %v4368_v8 = vpack.c.bf16 %v1961_v42, %v1961_v42  ;;  %v5610_v42 = vld [vmem:[#allocation137_spill] sm:$0xff] }
 0x63c   :  { %1996 = vmatmul.mubr.bf16.vlgmr.msra.gmra.mrb[36].mxu0 %v4368_v8  ;;  %2037 = vmatmul.mubr.bf16.vlgmr.msra.gmra.mrb[36].mxu1 %v4368_v8 }
 0x63d   :  { %2046 = vmatpush1.bf16.msra.mxu0 %v3584_v6  ;;  %2087 = vmatpush1.bf16.msra.mxu1 %v5309_v27 }
 0x63e   :  { %2077 = vmatprep.mubr.bf16.mxu0 %v1930_v51  ;;  %2118 = vmatprep.mubr.bf16.mxu1 %v1930_v51  ;;  %v5595_v51 = vld [vmem:[#allocation122_spill] sm:$0xff] }
 0x63f   :  { %2047 = vmatprep.subr.bf16.mxu0 %v5310_v34  ;;  %2088 = vmatprep.subr.bf16.mxu1 %v5311_v44 }
 0x641   :  { %2048 = vmatpush1.bf16.msra.mxu0 %v5312_v21  ;;  %2089 = vmatpush1.bf16.msra.mxu1 %v5313_v25 }
 0x642   :  { %2049 = vmatprep.subr.bf16.mxu0 %v5314_v11  ;;  %2090 = vmatprep.subr.bf16.mxu1 %v5402_v43 }
 0x645   :  { %2050 = vmatpush1.bf16.msra.mxu0 %v5403_v3  ;;  %2091 = vmatpush1.bf16.msra.mxu1 %v5404_v2 }
 0x646   :  { %2051 = vmatprep.subr.bf16.mxu0 %v5405_v39  ;;  %2092 = vmatprep.subr.bf16.mxu1 %v5406_v41 }
 0x649   :  { %2052 = vmatpush1.bf16.msra.mxu0 %v5407_v0  ;;  %2093 = vmatpush1.bf16.msra.mxu1 %v5408_v38 }
 0x64a   :  { %2053 = vmatprep.subr.bf16.mxu0 %v5496_v53  ;;  %2094 = vmatprep.subr.bf16.mxu1 %v5497_v19 }
 0x64d   :  { %2054 = vmatpush1.bf16.msra.mxu0 %v5498_v22  ;;  %2095 = vmatpush1.bf16.msra.mxu1 %v5499_v28 }
 0x64e   :  { %2055 = vmatprep.subr.bf16.mxu0 %v5500_v16  ;;  %2096 = vmatprep.subr.bf16.mxu1 %v5501_v63 }
 0x651   :  { %2056 = vmatpush1.bf16.msra.mxu0 %v5502_v29  ;;  %2097 = vmatpush1.bf16.msra.mxu1 %v5503_v23 }
 0x652   :  { %2057 = vmatprep.subr.bf16.mxu0 %v5504_v52  ;;  %2098 = vmatprep.subr.bf16.mxu1 %v5505_v4 }
 0x655   :  { %2058 = vmatpush1.bf16.msra.mxu0 %v5506_v10  ;;  %2099 = vmatpush1.bf16.msra.mxu1 %v5507_v55 }
 0x656   :  { %2059 = vmatprep.subr.bf16.mxu0 %v5421_v58  ;;  %2100 = vmatprep.subr.bf16.mxu1 %v5422_v46 }
 0x659   :  { %2060 = vmatpush1.bf16.msra.mxu0 %v5423_v49  ;;  %2101 = vmatpush1.bf16.msra.mxu1 %v5508_v57 }
 0x65a   :  { %2061 = vmatprep.subr.bf16.mxu0 %v5509_v13  ;;  %2102 = vmatprep.subr.bf16.mxu1 %v5426_v32 }
 0x65d   :  { %2062 = vmatpush1.bf16.msra.mxu0 %v5427_v56  ;;  %2103 = vmatpush1.bf16.msra.mxu1 %v5428_v37 }
 0x65e   :  { %2063 = vmatprep.subr.bf16.mxu0 %v5429_v50  ;;  %2104 = vmatprep.subr.bf16.mxu1 %v5430_v31 }
 0x661   :  { %2064 = vmatpush1.bf16.msra.mxu0 %v5431_v40  ;;  %2105 = vmatpush1.bf16.msra.mxu1 %v5345_v26 }
 0x662   :  { %2065 = vmatprep.subr.bf16.mxu0 %v5346_v7  ;;  %2106 = vmatprep.subr.bf16.mxu1 %v5347_v36 }
 0x665   :  { %2066 = vmatpush1.bf16.msra.mxu0 %v5432_v62  ;;  %2107 = vmatpush1.bf16.msra.mxu1 %v5594_v30  ;;  %v5684_v30 = vld [vmem:[#allocation144_spill] sm:$0xff] }
 0x666   :  { %2067 = vmatprep.subr.bf16.mxu0 %v5595_v51  ;;  %2108 = vmatprep.subr.bf16.mxu1 %v5596_v54 }
 0x669   :  { %2068 = vmatpush1.bf16.msra.mxu0 %v5597_v17  ;;  %2109 = vmatpush1.bf16.msra.mxu1 %v5598_v12  ;;  %v5682_v12 = vld [vmem:[#allocation142_spill] sm:$0xff] }
 0x66a   :  { %2069 = vmatprep.subr.bf16.mxu0 %v5599_v60  ;;  %2110 = vmatprep.subr.bf16.mxu1 %v5600_v45  ;;  %v5611_v45 = vld [vmem:[#allocation138_spill] sm:$0xff] }
 0x66d   :  { %2070 = vmatpush1.bf16.msra.mxu0 %v5601_v20  ;;  %2111 = vmatpush1.bf16.msra.mxu1 %v5602_v59  ;;  %v5612_v20 = vld [vmem:[#allocation139_spill] sm:$0xff]  ;;  %v5613_v59 = vld [vmem:[#allocation140_spill] sm:$0xff] }
 0x66e   :  { %2071 = vmatprep.subr.bf16.mxu0 %v5603_v33  ;;  %2112 = vmatprep.subr.bf16.mxu1 %v5604_v18  ;;  %v5614_v33 = vld [vmem:[#allocation141_spill] sm:$0xff]  ;;  %v5615_v18 = vld [vmem:[#allocation6_spill] sm:$0xff] }
 0x671   :  { %2072 = vmatpush1.bf16.msra.mxu0 %v5605_v15  ;;  %2113 = vmatpush1.bf16.msra.mxu1 %v5606_v9  ;;  %v5616_v15 = vld [vmem:[#allocation7_spill] sm:$0xff]  ;;  %v5681_v9 = vld [vmem:[#allocation73_spill] sm:$0xff] }
 0x672   :  { %2073 = vmatprep.subr.bf16.mxu0 %v5607_v1  ;;  %2114 = vmatprep.subr.bf16.mxu1 %v5608_v48  ;;  %v5617_v48 = vld [vmem:[#allocation8_spill] sm:$0xff]  ;;  %v5626_v1 = vld [vmem:[#allocation17_spill] sm:$0xff] }
 0x675   :  { %2074 = vmatpush1.bf16.msra.mxu0 %v5609_v47  ;;  %2115 = vmatpush1.bf16.msra.mxu1 %v5610_v42  ;;  %v5618_v47 = vld [vmem:[#allocation9_spill] sm:$0xff]  ;;  %v5619_v42 = vld [vmem:[#allocation10_spill] sm:$0xff] }
 0x676   :  { %2075 = vmatprep.subr.bf16.mxu0 %v5611_v45  ;;  %2116 = vmatprep.subr.bf16.mxu1 %v5612_v20  ;;  %v5620_v45 = vld [vmem:[#allocation11_spill] sm:$0xff]  ;;  %v5621_v20 = vld [vmem:[#allocation12_spill] sm:$0xff] }
 0x679   :  { %2076 = vmatpush1.bf16.msra.mxu0 %v5613_v59  ;;  %2117 = vmatpush1.bf16.msra.mxu1 %v5614_v33  ;;  %v5622_v59 = vld [vmem:[#allocation13_spill] sm:$0xff]  ;;  %v5623_v33 = vld [vmem:[#allocation14_spill] sm:$0xff] }
 0x67a   :  { %2207 = vmatprep.subr.bf16.mxu0 %v5615_v18  ;;  %2248 = vmatprep.subr.bf16.mxu1 %v5616_v15  ;;  %v5624_v18 = vld [vmem:[#allocation15_spill] sm:$0xff]  ;;  %v5625_v15 = vld [vmem:[#allocation16_spill] sm:$0xff] }
 0x67c   :  { %2078 = vmatmul.mubr.bf16.vlgmr.msra.gmra.mrb[40].mxu0 %v4368_v8  ;;  %2119 = vmatmul.mubr.bf16.vlgmr.msra.gmra.mrb[40].mxu1 %v4368_v8  ;;  %v5627_v8 = vld [vmem:[#allocation18_spill] sm:$0xff] }
 0x67d   :  { %2208 = vmatpush1.bf16.msra.mxu0 %v5617_v48  ;;  %2249 = vmatpush1.bf16.msra.mxu1 %v5618_v47  ;;  %v5628_v48 = vld [vmem:[#allocation19_spill] sm:$0xff]  ;;  %v5629_v47 = vld [vmem:[#allocation20_spill] sm:$0xff] }
 0x67e   :  { %2209 = vmatprep.subr.bf16.mxu0 %v5619_v42  ;;  %2250 = vmatprep.subr.bf16.mxu1 %v5620_v45  ;;  %v5630_v42 = vld [vmem:[#allocation21_spill] sm:$0xff]  ;;  %v5631_v45 = vld [vmem:[#allocation22_spill] sm:$0xff] }
 0x681   :  { %2210 = vmatpush1.bf16.msra.mxu0 %v5621_v20  ;;  %2251 = vmatpush1.bf16.msra.mxu1 %v5622_v59  ;;  %v5632_v20 = vld [vmem:[#allocation23_spill] sm:$0xff]  ;;  %v5633_v59 = vld [vmem:[#allocation24_spill] sm:$0xff] }
 0x682   :  { %2211 = vmatprep.subr.bf16.mxu0 %v5623_v33  ;;  %2252 = vmatprep.subr.bf16.mxu1 %v5624_v18  ;;  %v5634_v33 = vld [vmem:[#allocation25_spill] sm:$0xff]  ;;  %v5635_v18 = vld [vmem:[#allocation26_spill] sm:$0xff] }
 0x685   :  { %2212 = vmatpush1.bf16.msra.mxu0 %v5625_v15  ;;  %2253 = vmatpush1.bf16.msra.mxu1 %v5626_v1  ;;  %v5636_v15 = vld [vmem:[#allocation27_spill] sm:$0xff]  ;;  %v5637_v1 = vld [vmem:[#allocation28_spill] sm:$0xff] }
 0x686   :  { %2213 = vmatprep.subr.bf16.mxu0 %v5627_v8  ;;  %2254 = vmatprep.subr.bf16.mxu1 %v5628_v48  ;;  %v5638_v8 = vld [vmem:[#allocation29_spill] sm:$0xff]  ;;  %v5639_v48 = vld [vmem:[#allocation30_spill] sm:$0xff] }
 0x689   :  { %2214 = vmatpush1.bf16.msra.mxu0 %v5629_v47  ;;  %2255 = vmatpush1.bf16.msra.mxu1 %v5630_v42  ;;  %v5640_v47 = vld [vmem:[#allocation31_spill] sm:$0xff]  ;;  %v5641_v42 = vld [vmem:[#allocation32_spill] sm:$0xff] }
 0x68a   :  { %2215 = vmatprep.subr.bf16.mxu0 %v5631_v45  ;;  %2256 = vmatprep.subr.bf16.mxu1 %v5632_v20  ;;  %v5642_v45 = vld [vmem:[#allocation33_spill] sm:$0xff]  ;;  %v5643_v20 = vld [vmem:[#allocation34_spill] sm:$0xff] }
 0x68d   :  { %2216 = vmatpush1.bf16.msra.mxu0 %v5633_v59  ;;  %2257 = vmatpush1.bf16.msra.mxu1 %v5634_v33  ;;  %v5644_v59 = vld [vmem:[#allocation35_spill] sm:$0xff]  ;;  %v5645_v33 = vld [vmem:[#allocation36_spill] sm:$0xff] }
 0x68e   :  { %2217 = vmatprep.subr.bf16.mxu0 %v5635_v18  ;;  %2258 = vmatprep.subr.bf16.mxu1 %v5636_v15  ;;  %v5646_v18 = vld [vmem:[#allocation37_spill] sm:$0xff]  ;;  %v5647_v15 = vld [vmem:[#allocation38_spill] sm:$0xff] }
 0x691   :  { %2218 = vmatpush1.bf16.msra.mxu0 %v5637_v1  ;;  %2259 = vmatpush1.bf16.msra.mxu1 %v5638_v8  ;;  %v5648_v1 = vld [vmem:[#allocation39_spill] sm:$0xff]  ;;  %v5649_v8 = vld [vmem:[#allocation40_spill] sm:$0xff] }
 0x692   :  { %2219 = vmatprep.subr.bf16.mxu0 %v5639_v48  ;;  %2260 = vmatprep.subr.bf16.mxu1 %v5640_v47  ;;  %v5650_v48 = vld [vmem:[#allocation41_spill] sm:$0xff]  ;;  %v5651_v47 = vld [vmem:[#allocation42_spill] sm:$0xff] }
 0x695   :  { %2220 = vmatpush1.bf16.msra.mxu0 %v5641_v42  ;;  %2261 = vmatpush1.bf16.msra.mxu1 %v5642_v45  ;;  %v5652_v42 = vld [vmem:[#allocation43_spill] sm:$0xff]  ;;  %v5653_v45 = vld [vmem:[#allocation44_spill] sm:$0xff] }
 0x696   :  { %2221 = vmatprep.subr.bf16.mxu0 %v5643_v20  ;;  %2262 = vmatprep.subr.bf16.mxu1 %v5644_v59  ;;  %v5654_v20 = vld [vmem:[#allocation45_spill] sm:$0xff]  ;;  %v5655_v59 = vld [vmem:[#allocation46_spill] sm:$0xff] }
 0x699   :  { %2222 = vmatpush1.bf16.msra.mxu0 %v5645_v33  ;;  %2263 = vmatpush1.bf16.msra.mxu1 %v5646_v18  ;;  %v5656_v33 = vld [vmem:[#allocation47_spill] sm:$0xff]  ;;  %v5657_v18 = vld [vmem:[#allocation48_spill] sm:$0xff] }
 0x69a   :  { %2223 = vmatprep.subr.bf16.mxu0 %v5647_v15  ;;  %2264 = vmatprep.subr.bf16.mxu1 %v5648_v1  ;;  %v5658_v15 = vld [vmem:[#allocation49_spill] sm:$0xff]  ;;  %v5659_v1 = vld [vmem:[#allocation50_spill] sm:$0xff] }
 0x69d   :  { %2224 = vmatpush1.bf16.msra.mxu0 %v5649_v8  ;;  %2265 = vmatpush1.bf16.msra.mxu1 %v5650_v48  ;;  %v5660_v8 = vld [vmem:[#allocation51_spill] sm:$0xff]  ;;  %v5661_v48 = vld [vmem:[#allocation52_spill] sm:$0xff] }
 0x69e   :  { %2225 = vmatprep.subr.bf16.mxu0 %v5651_v47  ;;  %2266 = vmatprep.subr.bf16.mxu1 %v5652_v42  ;;  %v5662_v47 = vld [vmem:[#allocation53_spill] sm:$0xff]  ;;  %v5663_v42 = vld [vmem:[#allocation54_spill] sm:$0xff] }
 0x6a1   :  { %2226 = vmatpush1.bf16.msra.mxu0 %v5653_v45  ;;  %2267 = vmatpush1.bf16.msra.mxu1 %v5654_v20  ;;  %v5664_v45 = vld [vmem:[#allocation56_spill] sm:$0xff]  ;;  %v5665_v20 = vld [vmem:[#allocation55_spill] sm:$0xff] }
 0x6a2   :  { %2227 = vmatprep.subr.bf16.mxu0 %v5655_v59  ;;  %2268 = vmatprep.subr.bf16.mxu1 %v5656_v33  ;;  %v5666_v59 = vld [vmem:[#allocation57_spill] sm:$0xff]  ;;  %v5667_v33 = vld [vmem:[#allocation58_spill] sm:$0xff] }
 0x6a5   :  { %2228 = vmatpush1.bf16.msra.mxu0 %v5657_v18  ;;  %2269 = vmatpush1.bf16.msra.mxu1 %v5658_v15  ;;  %v5668_v18 = vld [vmem:[#allocation59_spill] sm:$0xff]  ;;  %v5669_v15 = vld [vmem:[#allocation60_spill] sm:$0xff] }
 0x6a6   :  { %2229 = vmatprep.subr.bf16.mxu0 %v5659_v1  ;;  %2270 = vmatprep.subr.bf16.mxu1 %v5660_v8  ;;  %v5670_v1 = vld [vmem:[#allocation61_spill] sm:$0xff]  ;;  %v5671_v8 = vld [vmem:[#allocation62_spill] sm:$0xff] }
 0x6a9   :  { %2230 = vmatpush1.bf16.msra.mxu0 %v5661_v48  ;;  %2271 = vmatpush1.bf16.msra.mxu1 %v5662_v47  ;;  %v5672_v48 = vld [vmem:[#allocation63_spill] sm:$0xff]  ;;  %v5673_v47 = vld [vmem:[#allocation64_spill] sm:$0xff] }
 0x6aa   :  { %2231 = vmatprep.subr.bf16.mxu0 %v5663_v42  ;;  %2272 = vmatprep.subr.bf16.mxu1 %v5664_v45  ;;  %v5674_v42 = vld [vmem:[#allocation65_spill] sm:$0xff]  ;;  %v5675_v45 = vld [vmem:[#allocation66_spill] sm:$0xff] }
 0x6ad   :  { %2232 = vmatpush1.bf16.msra.mxu0 %v5665_v20  ;;  %2273 = vmatpush1.bf16.msra.mxu1 %v5666_v59  ;;  %v5676_v20 = vld [vmem:[#allocation67_spill] sm:$0xff]  ;;  %v5677_v59 = vld [vmem:[#allocation68_spill] sm:$0xff] }
 0x6ae   :  { %2233 = vmatprep.subr.bf16.mxu0 %v5667_v33  ;;  %2274 = vmatprep.subr.bf16.mxu1 %v5668_v18  ;;  %v5678_v33 = vld [vmem:[#allocation69_spill] sm:$0xff]  ;;  %v5679_v18 = vld [vmem:[#allocation70_spill] sm:$0xff] }
 0x6b1   :  { %2234 = vmatpush1.bf16.msra.mxu0 %v5669_v15  ;;  %2275 = vmatpush1.bf16.msra.mxu1 %v5670_v1  ;;  %v5680_v15 = vld [vmem:[#allocation71_spill] sm:$0xff] }
 0x6b2   :  { %2235 = vmatprep.subr.bf16.mxu0 %v5671_v8  ;;  %2276 = vmatprep.subr.bf16.mxu1 %v5672_v48 }
 0x6b5   :  { %2236 = vmatpush1.bf16.msra.mxu0 %v5673_v47  ;;  %2277 = vmatpush1.bf16.msra.mxu1 %v5674_v42 }
 0x6b6   :  { %2237 = vmatprep.subr.bf16.mxu0 %v5675_v45  ;;  %2278 = vmatprep.subr.bf16.mxu1 %v5676_v20 }
 0x6b9   :  { %2238 = vmatpush1.bf16.msra.mxu0 %v5677_v59  ;;  %2279 = vmatpush1.bf16.msra.mxu1 %v5678_v33  ;;  %v5683_v33 = vld [vmem:[#allocation143_spill] sm:$0xff] }
 0x6ba   :  { %2289 = vmatprep.subr.bf16.mxu0 %v5679_v18  ;;  %2330 = vmatprep.subr.bf16.mxu1 %v5680_v15 }
 0x70f   :  { %v1997_v1 = vpop.f32.mrb[36].mxu0  ;;  %v2038_v8 = vpop.f32.mrb[36].mxu1 }
 0x710   :  { %v2127_v48 = vadd.f32 %v1997_v1, %v5681_v9  ;;  %v1999_v60 = vpop.f32.mrb[37].mxu0  ;;  %v2040_v47 = vpop.f32.mrb[37].mxu1  ;;  %v2129_v18 = vadd.f32 %v2038_v8, %v5683_v33 }
 0x711   :  { %v2128_v42 = vadd.f32 %v1999_v60, %v5682_v12  ;;  %v2001_v17 = vpop.f32.mrb[38].mxu0  ;;  %v2042_v45 = vpop.f32.mrb[38].mxu1  ;;  %v2130_v15 = vadd.f32 %v2040_v47, %v5684_v30 }
 0x712   :  { %v2996_v54 = vmul.f32 -1.442695, %v2127_v48  ;;  %v2002_v20 = vpop.f32.mrb[39].mxu0  ;;  %v2043_v51 = vpop.f32.mrb[39].mxu1  ;;  %v2998_v62 = vmul.f32 -1.442695, %v2129_v18 }
 0x713   :  { %v2997_v59 = vmul.f32 -1.442695, %v2128_v42 }
 0x714   :  { %3172 = vpow2.f32 %v2996_v54 }
 0x715   :  { %3174 = vpow2.f32 %v2997_v59  ;;  %v5685_v59 = vld [vmem:[#allocation80_spill] sm:$0xff] }
 0x716   :  { %3176 = vtanh.f32 %v2130_v15 }
 0x717   :  { %3178 = vpow2.f32 %v2998_v62 }
 0x71e   :  { %v3173_v36 = vpop.eup %3172 }
 0x71f   :  { %v2140_v7 = vadd.f32 1.0, %v3173_v36  ;;  %v3175_v1 = vpop.eup %3174 }
 0x720   :  { %v2141_v60 = vadd.f32 1.0, %v3175_v1  ;;  %v3177_v17 = vpop.eup %3176 }
 0x721   :  { %3180 = vrcp.f32 %v2140_v7  ;;  %v3179_v45 = vpop.eup %3178 }
 0x722   :  { %3182 = vrcp.f32 %v2141_v60  ;;  %v2142_v54 = vadd.f32 1.0, %v3179_v45 }
 0x724   :  { %3184 = vrcp.f32 %v2142_v54 }
 0x72b   :  { %v3181_v20 = vpop.eup %3180 }
 0x72c   :  { %v2151_v51 = vmul.f32 %v3181_v20, %v3177_v17  ;;  %v3183_v48 = vpop.eup %3182 }
 0x72d   :  { %v2150_v42 = vmul.f32 %v3183_v48, %v5685_v59 }
 0x72e   :  { %v3185_v36 = vpop.eup %3184 }
 0x72f   :  { %v4507_v8 = vadd.f32 %v2151_v51, %v2150_v42 }
 0x731   :  { %5686 = vst [vmem:[#allocation81_spill] sm:$0xff] %v4507_v8  ;;  %3186 = vtanh.f32 %v4507_v8 }
 0x73b   :  { %v3187_v18 = vpop.eup %3186 }
 0x73c   :  { %v2154_v15 = vmul.f32 %v3187_v18, %v3185_v36 }
 0x73e   :  { %v2155_v62 = vpack.c.bf16 %v2154_v15, %v2154_v15 }
 0x740   :  { %v2201_v7 = vrot.slane %v2155_v62, 7 }
 0x742   :  { %v2204_v47 = vrot.slane %v2201_v7, 1 }
 0x744   :  { %2239 = vmatprep.mubr.bf16.mxu0 %v2204_v47  ;;  %2280 = vmatprep.mubr.bf16.mxu1 %v2204_v47 }
 0x74f   :  { %v2079_v1 = vpop.f32.mrb[40].mxu0  ;;  %v2120_v60 = vpop.f32.mrb[40].mxu1 }
 0x750   :  { %v2160_v17 = vrot.slane %v2079_v1, 6  ;;  %v2081_v20 = vpop.f32.mrb[41].mxu0  ;;  %v2122_v45 = vpop.f32.mrb[41].mxu1  ;;  %v2162_v15 = vrot.slane %v2120_v60, 6  ;;  %v2192_v60 = vrot.slane %v4365_v14, 6  ;;  %v5687_v14 = vld [vmem:[#allocation118_spill] sm:$0xff] }
 0x751   :  { %v2161_v30 = vrot.slane %v2081_v20, 6  ;;  %v2083_v48 = vpop.f32.mrb[42].mxu0  ;;  %v2124_v51 = vpop.f32.mrb[42].mxu1  ;;  %v2163_v62 = vrot.slane %v2122_v45, 6 }
 0x752   :  { %v2168_v54 = vadd.f32 %v2160_v17, %v5590_v61  ;;  %v2084_v59 = vpop.f32.mrb[43].mxu0  ;;  %v2125_v42 = vpop.f32.mrb[43].mxu1  ;;  %v2170_v7 = vadd.f32 %v2162_v15, %v5592_v5 }
 0x753   :  { %v2169_v8 = vadd.f32 %v2161_v30, %v5591_v35  ;;  %v2171_v1 = vadd.f32 %v2163_v62, %v5593_v24 }
 0x754   :  { %v2999_v36 = vmul.f32 -1.442695, %v2168_v54  ;;  %v3001_v33 = vmul.f32 -1.442695, %v2170_v7 }
 0x755   :  { %v3000_v18 = vmul.f32 -1.442695, %v2169_v8 }
 0x756   :  { %3188 = vpow2.f32 %v2999_v36 }
 0x757   :  { %3190 = vpow2.f32 %v3000_v18 }
 0x758   :  { %3192 = vtanh.f32 %v2171_v1 }
 0x759   :  { %3194 = vpow2.f32 %v3001_v33 }
 0x760   :  { %v3189_v20 = vpop.eup %3188 }
 0x761   :  { %v2181_v48 = vadd.f32 1.0, %v3189_v20  ;;  %v3191_v51 = vpop.eup %3190  ;;  %v5689_v20 = vld [vmem:[#allocation120_spill] sm:$0xff] }
 0x762   :  { %v2182_v17 = vadd.f32 1.0, %v3191_v51  ;;  %v3193_v30 = vpop.eup %3192  ;;  %v5691_v51 = vld [vmem:[#allocation122_spill] sm:$0xff] }
 0x763   :  { %3196 = vrcp.f32 %v2181_v48  ;;  %v3195_v54 = vpop.eup %3194  ;;  %v5690_v48 = vld [vmem:[#allocation121_spill] sm:$0xff] }
 0x764   :  { %3198 = vrcp.f32 %v2182_v17  ;;  %v2183_v42 = vadd.f32 1.0, %v3195_v54  ;;  %v5692_v17 = vld [vmem:[#allocation123_spill] sm:$0xff]  ;;  %v5694_v54 = vld [vmem:[#allocation125_spill] sm:$0xff] }
 0x766   :  { %3200 = vrcp.f32 %v2183_v42  ;;  %v5699_v42 = vld [vmem:[#allocation130_spill] sm:$0xff] }
 0x76d   :  { %v3197_v8 = vpop.eup %3196 }
 0x76e   :  { %v2195_v59 = vmul.f32 %v3197_v8, %v3193_v30  ;;  %v3199_v45 = vpop.eup %3198  ;;  %v5693_v30 = vld [vmem:[#allocation124_spill] sm:$0xff]  ;;  %v5695_v8 = vld [vmem:[#allocation126_spill] sm:$0xff] }
 0x76f   :  { %v2194_v36 = vmul.f32 %v3199_v45, %v2192_v60  ;;  %v5696_v60 = vld [vmem:[#allocation127_spill] sm:$0xff]  ;;  %v5698_v45 = vld [vmem:[#allocation129_spill] sm:$0xff] }
 0x770   :  { %v3201_v15 = vpop.eup %3200 }
 0x771   :  { %v4515_v18 = vadd.f32 %v2195_v59, %v2194_v36  ;;  %v5697_v59 = vld [vmem:[#allocation128_spill] sm:$0xff]  ;;  %v5700_v36 = vld [vmem:[#allocation131_spill] sm:$0xff] }
 0x773   :  { %3202 = vtanh.f32 %v4515_v18 }
 0x77d   :  { %v3203_v62 = vpop.eup %3202 }
 0x77e   :  { %v2198_v33 = vmul.f32 %v3203_v62, %v3201_v15  ;;  %v5701_v15 = vld [vmem:[#allocation132_spill] sm:$0xff]  ;;  %v5702_v62 = vld [vmem:[#allocation133_spill] sm:$0xff] }
 0x780   :  { %v2199_v7 = vpack.c.bf16 %v2198_v33, %v2198_v33  ;;  %v5703_v33 = vld [vmem:[#allocation134_spill] sm:$0xff] }
 0x782   :  { %v4518_v1 = vrot.slane %v2199_v7, 1  ;;  %v5704_v7 = vld [vmem:[#allocation135_spill] sm:$0xff] }
 0x784   :  { %2240 = vmatmul.mubr.bf16.vlgmr.msra.gmra.mrb[44].mxu0 %v4518_v1  ;;  %2281 = vmatmul.mubr.bf16.vlgmr.msra.gmra.mrb[44].mxu1 %v4518_v1 }
 0x785   :  { %2290 = vmatpush1.bf16.msra.mxu0 %v3584_v6  ;;  %2331 = vmatpush1.bf16.msra.mxu1 %v5309_v27 }
 0x786   :  { %2321 = vmatprep.mubr.bf16.mxu0 %v2204_v47  ;;  %2362 = vmatprep.mubr.bf16.mxu1 %v2204_v47  ;;  %v5688_v47 = vld [vmem:[#allocation119_spill] sm:$0xff] }
 0x787   :  { %2291 = vmatprep.subr.bf16.mxu0 %v5310_v34  ;;  %2332 = vmatprep.subr.bf16.mxu1 %v5311_v44 }
 0x789   :  { %2292 = vmatpush1.bf16.msra.mxu0 %v5312_v21  ;;  %2333 = vmatpush1.bf16.msra.mxu1 %v5313_v25 }
 0x78a   :  { %2293 = vmatprep.subr.bf16.mxu0 %v5314_v11  ;;  %2334 = vmatprep.subr.bf16.mxu1 %v5402_v43 }
 0x78d   :  { %2294 = vmatpush1.bf16.msra.mxu0 %v5403_v3  ;;  %2335 = vmatpush1.bf16.msra.mxu1 %v5404_v2 }
 0x78e   :  { %2295 = vmatprep.subr.bf16.mxu0 %v5405_v39  ;;  %2336 = vmatprep.subr.bf16.mxu1 %v5406_v41 }
 0x791   :  { %2296 = vmatpush1.bf16.msra.mxu0 %v5407_v0  ;;  %2337 = vmatpush1.bf16.msra.mxu1 %v5408_v38 }
 0x792   :  { %2297 = vmatprep.subr.bf16.mxu0 %v5496_v53  ;;  %2338 = vmatprep.subr.bf16.mxu1 %v5497_v19 }
 0x795   :  { %2298 = vmatpush1.bf16.msra.mxu0 %v5498_v22  ;;  %2339 = vmatpush1.bf16.msra.mxu1 %v5499_v28 }
 0x796   :  { %2299 = vmatprep.subr.bf16.mxu0 %v5500_v16  ;;  %2340 = vmatprep.subr.bf16.mxu1 %v5501_v63 }
 0x799   :  { %2300 = vmatpush1.bf16.msra.mxu0 %v5502_v29  ;;  %2341 = vmatpush1.bf16.msra.mxu1 %v5503_v23 }
 0x79a   :  { %2301 = vmatprep.subr.bf16.mxu0 %v5504_v52  ;;  %2342 = vmatprep.subr.bf16.mxu1 %v5505_v4 }
 0x79d   :  { %2302 = vmatpush1.bf16.msra.mxu0 %v5506_v10  ;;  %2343 = vmatpush1.bf16.msra.mxu1 %v5507_v55 }
 0x79e   :  { %2303 = vmatprep.subr.bf16.mxu0 %v5421_v58  ;;  %2344 = vmatprep.subr.bf16.mxu1 %v5422_v46 }
 0x7a1   :  { %2304 = vmatpush1.bf16.msra.mxu0 %v5423_v49  ;;  %2345 = vmatpush1.bf16.msra.mxu1 %v5508_v57 }
 0x7a2   :  { %2305 = vmatprep.subr.bf16.mxu0 %v5509_v13  ;;  %2346 = vmatprep.subr.bf16.mxu1 %v5426_v32 }
 0x7a5   :  { %2306 = vmatpush1.bf16.msra.mxu0 %v5427_v56  ;;  %2347 = vmatpush1.bf16.msra.mxu1 %v5428_v37 }
 0x7a6   :  { %2307 = vmatprep.subr.bf16.mxu0 %v5429_v50  ;;  %2348 = vmatprep.subr.bf16.mxu1 %v5430_v31 }
 0x7a9   :  { %2308 = vmatpush1.bf16.msra.mxu0 %v5431_v40  ;;  %2349 = vmatpush1.bf16.msra.mxu1 %v5345_v26 }
 0x7aa   :  { %2309 = vmatprep.subr.bf16.mxu0 %v5687_v14  ;;  %2350 = vmatprep.subr.bf16.mxu1 %v5688_v47 }
 0x7ad   :  { %2310 = vmatpush1.bf16.msra.mxu0 %v5689_v20  ;;  %2351 = vmatpush1.bf16.msra.mxu1 %v5690_v48  ;;  %v5778_v48 = vld [vmem:[#allocation144_spill] sm:$0xff] }
 0x7ae   :  { %2311 = vmatprep.subr.bf16.mxu0 %v5691_v51  ;;  %2352 = vmatprep.subr.bf16.mxu1 %v5692_v17 }
 0x7b1   :  { %2312 = vmatpush1.bf16.msra.mxu0 %v5693_v30  ;;  %2353 = vmatpush1.bf16.msra.mxu1 %v5694_v54  ;;  %v5705_v54 = vld [vmem:[#allocation136_spill] sm:$0xff] }
 0x7b2   :  { %2313 = vmatprep.subr.bf16.mxu0 %v5695_v8  ;;  %2354 = vmatprep.subr.bf16.mxu1 %v5696_v60  ;;  %v5706_v8 = vld [vmem:[#allocation137_spill] sm:$0xff]  ;;  %v5707_v60 = vld [vmem:[#allocation138_spill] sm:$0xff] }
 0x7b5   :  { %2314 = vmatpush1.bf16.msra.mxu0 %v5697_v59  ;;  %2355 = vmatpush1.bf16.msra.mxu1 %v5698_v45  ;;  %v5708_v59 = vld [vmem:[#allocation139_spill] sm:$0xff]  ;;  %v5709_v45 = vld [vmem:[#allocation140_spill] sm:$0xff] }
 0x7b6   :  { %2315 = vmatprep.subr.bf16.mxu0 %v5699_v42  ;;  %2356 = vmatprep.subr.bf16.mxu1 %v5700_v36  ;;  %v5710_v42 = vld [vmem:[#allocation141_spill] sm:$0xff]  ;;  %v5711_v36 = vld [vmem:[#allocation6_spill] sm:$0xff] }
 0x7b9   :  { %2316 = vmatpush1.bf16.msra.mxu0 %v5701_v15  ;;  %2357 = vmatpush1.bf16.msra.mxu1 %v5702_v62  ;;  %v5712_v15 = vld [vmem:[#allocation7_spill] sm:$0xff] }
 0x7ba   :  { %2317 = vmatprep.subr.bf16.mxu0 %v5703_v33  ;;  %2358 = vmatprep.subr.bf16.mxu1 %v5704_v7  ;;  %v5713_v7 = vld [vmem:[#allocation8_spill] sm:$0xff]  ;;  %v5722_v33 = vld [vmem:[#allocation17_spill] sm:$0xff] }
 0x7bd   :  { %2318 = vmatpush1.bf16.msra.mxu0 %v5705_v54  ;;  %2359 = vmatpush1.bf16.msra.mxu1 %v5706_v8  ;;  %v5714_v54 = vld [vmem:[#allocation9_spill] sm:$0xff]  ;;  %v5715_v8 = vld [vmem:[#allocation10_spill] sm:$0xff] }
 0x7be   :  { %2319 = vmatprep.subr.bf16.mxu0 %v5707_v60  ;;  %2360 = vmatprep.subr.bf16.mxu1 %v5708_v59  ;;  %v5716_v60 = vld [vmem:[#allocation11_spill] sm:$0xff]  ;;  %v5717_v59 = vld [vmem:[#allocation12_spill] sm:$0xff] }
 0x7c1   :  { %2320 = vmatpush1.bf16.msra.mxu0 %v5709_v45  ;;  %2361 = vmatpush1.bf16.msra.mxu1 %v5710_v42  ;;  %v5718_v45 = vld [vmem:[#allocation13_spill] sm:$0xff]  ;;  %v5719_v42 = vld [vmem:[#allocation14_spill] sm:$0xff] }
 0x7c2   :  { %2451 = vmatprep.subr.bf16.mxu0 %v5711_v36  ;;  %2492 = vmatprep.subr.bf16.mxu1 %v5712_v15  ;;  %v5720_v36 = vld [vmem:[#allocation15_spill] sm:$0xff]  ;;  %v5721_v15 = vld [vmem:[#allocation16_spill] sm:$0xff] }
 0x7c4   :  { %2322 = vmatmul.mubr.bf16.vlgmr.msra.gmra.mrb[48].mxu0 %v4518_v1  ;;  %2363 = vmatmul.mubr.bf16.vlgmr.msra.gmra.mrb[48].mxu1 %v4518_v1  ;;  %v5723_v1 = vld [vmem:[#allocation18_spill] sm:$0xff] }
 0x7c5   :  { %2452 = vmatpush1.bf16.msra.mxu0 %v5713_v7  ;;  %2493 = vmatpush1.bf16.msra.mxu1 %v5714_v54  ;;  %v5724_v7 = vld [vmem:[#allocation19_spill] sm:$0xff]  ;;  %v5725_v54 = vld [vmem:[#allocation20_spill] sm:$0xff] }
 0x7c6   :  { %2453 = vmatprep.subr.bf16.mxu0 %v5715_v8  ;;  %2494 = vmatprep.subr.bf16.mxu1 %v5716_v60  ;;  %v5726_v8 = vld [vmem:[#allocation21_spill] sm:$0xff]  ;;  %v5727_v60 = vld [vmem:[#allocation22_spill] sm:$0xff] }
 0x7c9   :  { %2454 = vmatpush1.bf16.msra.mxu0 %v5717_v59  ;;  %2495 = vmatpush1.bf16.msra.mxu1 %v5718_v45  ;;  %v5728_v59 = vld [vmem:[#allocation23_spill] sm:$0xff]  ;;  %v5729_v45 = vld [vmem:[#allocation24_spill] sm:$0xff] }
 0x7ca   :  { %2455 = vmatprep.subr.bf16.mxu0 %v5719_v42  ;;  %2496 = vmatprep.subr.bf16.mxu1 %v5720_v36  ;;  %v5730_v42 = vld [vmem:[#allocation25_spill] sm:$0xff]  ;;  %v5731_v36 = vld [vmem:[#allocation26_spill] sm:$0xff] }
 0x7cd   :  { %2456 = vmatpush1.bf16.msra.mxu0 %v5721_v15  ;;  %2497 = vmatpush1.bf16.msra.mxu1 %v5722_v33  ;;  %v5732_v15 = vld [vmem:[#allocation27_spill] sm:$0xff]  ;;  %v5733_v33 = vld [vmem:[#allocation28_spill] sm:$0xff] }
 0x7ce   :  { %2457 = vmatprep.subr.bf16.mxu0 %v5723_v1  ;;  %2498 = vmatprep.subr.bf16.mxu1 %v5724_v7  ;;  %v5734_v1 = vld [vmem:[#allocation29_spill] sm:$0xff]  ;;  %v5735_v7 = vld [vmem:[#allocation30_spill] sm:$0xff] }
 0x7d1   :  { %2458 = vmatpush1.bf16.msra.mxu0 %v5725_v54  ;;  %2499 = vmatpush1.bf16.msra.mxu1 %v5726_v8  ;;  %v5736_v54 = vld [vmem:[#allocation31_spill] sm:$0xff]  ;;  %v5737_v8 = vld [vmem:[#allocation32_spill] sm:$0xff] }
 0x7d2   :  { %2459 = vmatprep.subr.bf16.mxu0 %v5727_v60  ;;  %2500 = vmatprep.subr.bf16.mxu1 %v5728_v59  ;;  %v5738_v60 = vld [vmem:[#allocation33_spill] sm:$0xff]  ;;  %v5739_v59 = vld [vmem:[#allocation34_spill] sm:$0xff] }
 0x7d5   :  { %2460 = vmatpush1.bf16.msra.mxu0 %v5729_v45  ;;  %2501 = vmatpush1.bf16.msra.mxu1 %v5730_v42  ;;  %v5740_v45 = vld [vmem:[#allocation35_spill] sm:$0xff]  ;;  %v5741_v42 = vld [vmem:[#allocation36_spill] sm:$0xff] }
 0x7d6   :  { %2461 = vmatprep.subr.bf16.mxu0 %v5731_v36  ;;  %2502 = vmatprep.subr.bf16.mxu1 %v5732_v15  ;;  %v5742_v36 = vld [vmem:[#allocation37_spill] sm:$0xff]  ;;  %v5743_v15 = vld [vmem:[#allocation38_spill] sm:$0xff] }
 0x7d9   :  { %2462 = vmatpush1.bf16.msra.mxu0 %v5733_v33  ;;  %2503 = vmatpush1.bf16.msra.mxu1 %v5734_v1  ;;  %v5744_v33 = vld [vmem:[#allocation39_spill] sm:$0xff]  ;;  %v5745_v1 = vld [vmem:[#allocation40_spill] sm:$0xff] }
 0x7da   :  { %2463 = vmatprep.subr.bf16.mxu0 %v5735_v7  ;;  %2504 = vmatprep.subr.bf16.mxu1 %v5736_v54  ;;  %v5746_v7 = vld [vmem:[#allocation41_spill] sm:$0xff]  ;;  %v5747_v54 = vld [vmem:[#allocation42_spill] sm:$0xff] }
 0x7dd   :  { %2464 = vmatpush1.bf16.msra.mxu0 %v5737_v8  ;;  %2505 = vmatpush1.bf16.msra.mxu1 %v5738_v60  ;;  %v5748_v8 = vld [vmem:[#allocation43_spill] sm:$0xff]  ;;  %v5749_v60 = vld [vmem:[#allocation44_spill] sm:$0xff] }
 0x7de   :  { %2465 = vmatprep.subr.bf16.mxu0 %v5739_v59  ;;  %2506 = vmatprep.subr.bf16.mxu1 %v5740_v45  ;;  %v5750_v59 = vld [vmem:[#allocation45_spill] sm:$0xff]  ;;  %v5751_v45 = vld [vmem:[#allocation46_spill] sm:$0xff] }
 0x7e1   :  { %2466 = vmatpush1.bf16.msra.mxu0 %v5741_v42  ;;  %2507 = vmatpush1.bf16.msra.mxu1 %v5742_v36  ;;  %v5752_v42 = vld [vmem:[#allocation47_spill] sm:$0xff]  ;;  %v5753_v36 = vld [vmem:[#allocation48_spill] sm:$0xff] }
 0x7e2   :  { %2467 = vmatprep.subr.bf16.mxu0 %v5743_v15  ;;  %2508 = vmatprep.subr.bf16.mxu1 %v5744_v33  ;;  %v5754_v15 = vld [vmem:[#allocation49_spill] sm:$0xff]  ;;  %v5755_v33 = vld [vmem:[#allocation50_spill] sm:$0xff] }
 0x7e5   :  { %2468 = vmatpush1.bf16.msra.mxu0 %v5745_v1  ;;  %2509 = vmatpush1.bf16.msra.mxu1 %v5746_v7  ;;  %v5756_v1 = vld [vmem:[#allocation51_spill] sm:$0xff]  ;;  %v5757_v7 = vld [vmem:[#allocation52_spill] sm:$0xff] }
 0x7e6   :  { %2469 = vmatprep.subr.bf16.mxu0 %v5747_v54  ;;  %2510 = vmatprep.subr.bf16.mxu1 %v5748_v8  ;;  %v5758_v54 = vld [vmem:[#allocation53_spill] sm:$0xff]  ;;  %v5759_v8 = vld [vmem:[#allocation54_spill] sm:$0xff] }
 0x7e9   :  { %2470 = vmatpush1.bf16.msra.mxu0 %v5749_v60  ;;  %2511 = vmatpush1.bf16.msra.mxu1 %v5750_v59  ;;  %v5760_v60 = vld [vmem:[#allocation56_spill] sm:$0xff]  ;;  %v5761_v59 = vld [vmem:[#allocation55_spill] sm:$0xff] }
 0x7ea   :  { %2471 = vmatprep.subr.bf16.mxu0 %v5751_v45  ;;  %2512 = vmatprep.subr.bf16.mxu1 %v5752_v42  ;;  %v5762_v45 = vld [vmem:[#allocation57_spill] sm:$0xff]  ;;  %v5763_v42 = vld [vmem:[#allocation58_spill] sm:$0xff] }
 0x7ed   :  { %2472 = vmatpush1.bf16.msra.mxu0 %v5753_v36  ;;  %2513 = vmatpush1.bf16.msra.mxu1 %v5754_v15  ;;  %v5764_v36 = vld [vmem:[#allocation59_spill] sm:$0xff]  ;;  %v5765_v15 = vld [vmem:[#allocation60_spill] sm:$0xff] }
 0x7ee   :  { %2473 = vmatprep.subr.bf16.mxu0 %v5755_v33  ;;  %2514 = vmatprep.subr.bf16.mxu1 %v5756_v1  ;;  %v5766_v33 = vld [vmem:[#allocation61_spill] sm:$0xff]  ;;  %v5767_v1 = vld [vmem:[#allocation62_spill] sm:$0xff] }
 0x7f1   :  { %2474 = vmatpush1.bf16.msra.mxu0 %v5757_v7  ;;  %2515 = vmatpush1.bf16.msra.mxu1 %v5758_v54  ;;  %v5768_v7 = vld [vmem:[#allocation63_spill] sm:$0xff]  ;;  %v5769_v54 = vld [vmem:[#allocation64_spill] sm:$0xff] }
 0x7f2   :  { %2475 = vmatprep.subr.bf16.mxu0 %v5759_v8  ;;  %2516 = vmatprep.subr.bf16.mxu1 %v5760_v60  ;;  %v5770_v8 = vld [vmem:[#allocation65_spill] sm:$0xff]  ;;  %v5771_v60 = vld [vmem:[#allocation66_spill] sm:$0xff] }
 0x7f5   :  { %2476 = vmatpush1.bf16.msra.mxu0 %v5761_v59  ;;  %2517 = vmatpush1.bf16.msra.mxu1 %v5762_v45  ;;  %v5772_v59 = vld [vmem:[#allocation67_spill] sm:$0xff]  ;;  %v5773_v45 = vld [vmem:[#allocation68_spill] sm:$0xff] }
 0x7f6   :  { %2477 = vmatprep.subr.bf16.mxu0 %v5763_v42  ;;  %2518 = vmatprep.subr.bf16.mxu1 %v5764_v36  ;;  %v5774_v42 = vld [vmem:[#allocation69_spill] sm:$0xff]  ;;  %v5775_v36 = vld [vmem:[#allocation70_spill] sm:$0xff] }
 0x7f9   :  { %2478 = vmatpush1.bf16.msra.mxu0 %v5765_v15  ;;  %2519 = vmatpush1.bf16.msra.mxu1 %v5766_v33  ;;  %v5776_v15 = vld [vmem:[#allocation71_spill] sm:$0xff] }
 0x7fa   :  { %2479 = vmatprep.subr.bf16.mxu0 %v5767_v1  ;;  %2520 = vmatprep.subr.bf16.mxu1 %v5768_v7 }
 0x7fd   :  { %2480 = vmatpush1.bf16.msra.mxu0 %v5769_v54  ;;  %2521 = vmatpush1.bf16.msra.mxu1 %v5770_v8 }
 0x7fe   :  { %2481 = vmatprep.subr.bf16.mxu0 %v5771_v60  ;;  %2522 = vmatprep.subr.bf16.mxu1 %v5772_v59 }
 0x801   :  { %2482 = vmatpush1.bf16.msra.mxu0 %v5773_v45  ;;  %2523 = vmatpush1.bf16.msra.mxu1 %v5774_v42  ;;  %v5777_v42 = vld [vmem:[#allocation143_spill] sm:$0xff] }
 0x802   :  { %2533 = vmatprep.subr.bf16.mxu0 %v5775_v36  ;;  %2574 = vmatprep.subr.bf16.mxu1 %v5776_v15 }
 0x857   :  { %v2241_v33 = vpop.f32.mrb[44].mxu0  ;;  %v2282_v1 = vpop.f32.mrb[44].mxu1 }
 0x858   :  { %v2371_v7 = vadd.f32 %v2241_v33, %v5681_v9  ;;  %v2243_v62 = vpop.f32.mrb[45].mxu0  ;;  %v2284_v54 = vpop.f32.mrb[45].mxu1  ;;  %v2373_v36 = vadd.f32 %v2282_v1, %v5777_v42 }
 0x859   :  { %v2372_v8 = vadd.f32 %v2243_v62, %v5682_v12  ;;  %v2245_v30 = vpop.f32.mrb[46].mxu0  ;;  %v2286_v60 = vpop.f32.mrb[46].mxu1  ;;  %v2374_v15 = vadd.f32 %v2284_v54, %v5778_v48 }
 0x85a   :  { %v3002_v17 = vmul.f32 -1.442695, %v2371_v7  ;;  %v2246_v59 = vpop.f32.mrb[47].mxu0  ;;  %v2287_v51 = vpop.f32.mrb[47].mxu1  ;;  %v3004_v20 = vmul.f32 -1.442695, %v2373_v36 }
 0x85b   :  { %v3003_v45 = vmul.f32 -1.442695, %v2372_v8 }
 0x85c   :  { %3204 = vpow2.f32 %v3002_v17 }
 0x85d   :  { %3206 = vpow2.f32 %v3003_v45  ;;  %v5779_v45 = vld [vmem:[#allocation81_spill] sm:$0xff] }
 0x85e   :  { %3208 = vtanh.f32 %v2374_v15 }
 0x85f   :  { %3210 = vpow2.f32 %v3004_v20 }
 0x866   :  { %v3205_v47 = vpop.eup %3204 }
 0x867   :  { %v2384_v14 = vadd.f32 1.0, %v3205_v47  ;;  %v3207_v33 = vpop.eup %3206 }
 0x868   :  { %v2385_v62 = vadd.f32 1.0, %v3207_v33  ;;  %v3209_v30 = vpop.eup %3208 }
 0x869   :  { %3212 = vrcp.f32 %v2384_v14  ;;  %v3211_v60 = vpop.eup %3210 }
 0x86a   :  { %3214 = vrcp.f32 %v2385_v62  ;;  %v2386_v17 = vadd.f32 1.0, %v3211_v60 }
 0x86c   :  { %3216 = vrcp.f32 %v2386_v17 }
 0x873   :  { %v3213_v59 = vpop.eup %3212 }
 0x874   :  { %v2395_v51 = vmul.f32 %v3213_v59, %v3209_v30  ;;  %v3215_v8 = vpop.eup %3214 }
 0x875   :  { %v2394_v7 = vmul.f32 %v3215_v8, %v5779_v45 }
 0x876   :  { %v3217_v47 = vpop.eup %3216 }
 0x877   :  { %v4657_v1 = vadd.f32 %v2395_v51, %v2394_v7 }
 0x879   :  { %5780 = vst [vmem:[#allocation72_spill] sm:$0xff] %v4657_v1  ;;  %3218 = vtanh.f32 %v4657_v1 }
 0x883   :  { %v3219_v54 = vpop.eup %3218 }
 0x884   :  { %v2398_v36 = vmul.f32 %v3219_v54, %v3217_v47 }
 0x886   :  { %v2399_v20 = vpack.c.bf16 %v2398_v36, %v2398_v36 }
 0x888   :  { %v2445_v14 = vrot.slane %v2399_v20, 6 }
 0x88a   :  { %v2448_v15 = vrot.slane %v2445_v14, 2 }
 0x88c   :  { %2483 = vmatprep.mubr.bf16.mxu0 %v2448_v15  ;;  %2524 = vmatprep.mubr.bf16.mxu1 %v2448_v15 }
 0x897   :  { %v2323_v33 = vpop.f32.mrb[48].mxu0  ;;  %v2364_v62 = vpop.f32.mrb[48].mxu1 }
 0x898   :  { %v2404_v30 = vrot.slane %v2323_v33, 4  ;;  %v2325_v59 = vpop.f32.mrb[49].mxu0  ;;  %v2366_v60 = vpop.f32.mrb[49].mxu1  ;;  %v2406_v36 = vrot.slane %v2364_v62, 4  ;;  %v2436_v62 = vrot.slane %v4515_v18, 6  ;;  %v5819_v18 = vld [vmem:[#allocation20_spill] sm:$0xff] }
 0x899   :  { %v2405_v48 = vrot.slane %v2325_v59, 4  ;;  %v2327_v8 = vpop.f32.mrb[50].mxu0  ;;  %v2368_v51 = vpop.f32.mrb[50].mxu1  ;;  %v2407_v20 = vrot.slane %v2366_v60, 4 }
 0x89a   :  { %v2412_v17 = vadd.f32 %v2404_v30, %v5590_v61  ;;  %v2328_v45 = vpop.f32.mrb[51].mxu0  ;;  %v2369_v7 = vpop.f32.mrb[51].mxu1  ;;  %v2414_v14 = vadd.f32 %v2406_v36, %v5592_v5 }
 0x89b   :  { %v2413_v1 = vadd.f32 %v2405_v48, %v5591_v35  ;;  %v2415_v33 = vadd.f32 %v2407_v20, %v5593_v24 }
 0x89c   :  { %v3005_v47 = vmul.f32 -1.442695, %v2412_v17  ;;  %v3007_v42 = vmul.f32 -1.442695, %v2414_v14 }
 0x89d   :  { %v3006_v54 = vmul.f32 -1.442695, %v2413_v1 }
 0x89e   :  { %3220 = vpow2.f32 %v3005_v47 }
 0x89f   :  { %3222 = vpow2.f32 %v3006_v54 }
 0x8a0   :  { %3224 = vtanh.f32 %v2415_v33 }
 0x8a1   :  { %3226 = vpow2.f32 %v3007_v42 }
 0x8a8   :  { %v3221_v59 = vpop.eup %3220 }
 0x8a9   :  { %v2425_v8 = vadd.f32 1.0, %v3221_v59  ;;  %v3223_v51 = vpop.eup %3222  ;;  %v5821_v59 = vld [vmem:[#allocation22_spill] sm:$0xff] }
 0x8aa   :  { %v2426_v30 = vadd.f32 1.0, %v3223_v51  ;;  %v3225_v48 = vpop.eup %3224  ;;  %v5823_v51 = vld [vmem:[#allocation24_spill] sm:$0xff] }
 0x8ab   :  { %3228 = vrcp.f32 %v2425_v8  ;;  %v3227_v17 = vpop.eup %3226  ;;  %v5822_v8 = vld [vmem:[#allocation23_spill] sm:$0xff] }
 0x8ac   :  { %3230 = vrcp.f32 %v2426_v30  ;;  %v2427_v7 = vadd.f32 1.0, %v3227_v17  ;;  %v5824_v30 = vld [vmem:[#allocation25_spill] sm:$0xff]  ;;  %v5826_v17 = vld [vmem:[#allocation27_spill] sm:$0xff] }
 0x8ae   :  { %3232 = vrcp.f32 %v2427_v7  ;;  %v5831_v7 = vld [vmem:[#allocation32_spill] sm:$0xff] }
 0x8b5   :  { %v3229_v1 = vpop.eup %3228 }
 0x8b6   :  { %v2439_v45 = vmul.f32 %v3229_v1, %v3225_v48  ;;  %v3231_v60 = vpop.eup %3230  ;;  %v5825_v48 = vld [vmem:[#allocation26_spill] sm:$0xff]  ;;  %v5827_v1 = vld [vmem:[#allocation28_spill] sm:$0xff] }
 0x8b7   :  { %v2438_v47 = vmul.f32 %v3231_v60, %v2436_v62  ;;  %v5828_v62 = vld [vmem:[#allocation29_spill] sm:$0xff]  ;;  %v5830_v60 = vld [vmem:[#allocation31_spill] sm:$0xff] }
 0x8b8   :  { %v3233_v36 = vpop.eup %3232 }
 0x8b9   :  { %v4665_v54 = vadd.f32 %v2439_v45, %v2438_v47  ;;  %v5829_v45 = vld [vmem:[#allocation30_spill] sm:$0xff]  ;;  %v5832_v47 = vld [vmem:[#allocation33_spill] sm:$0xff] }
 0x8bb   :  { %3234 = vtanh.f32 %v4665_v54 }
 0x8c5   :  { %v3235_v20 = vpop.eup %3234 }
 0x8c6   :  { %v2442_v42 = vmul.f32 %v3235_v20, %v3233_v36  ;;  %v5833_v36 = vld [vmem:[#allocation34_spill] sm:$0xff]  ;;  %v5834_v20 = vld [vmem:[#allocation35_spill] sm:$0xff] }
 0x8c8   :  { %v2443_v14 = vpack.c.bf16 %v2442_v42, %v2442_v42  ;;  %v5835_v42 = vld [vmem:[#allocation36_spill] sm:$0xff] }
 0x8ca   :  { %v4668_v33 = vrot.slane %v2443_v14, 2  ;;  %v5836_v14 = vld [vmem:[#allocation37_spill] sm:$0xff] }
 0x8cc   :  { %2484 = vmatmul.mubr.bf16.vlgmr.msra.gmra.mrb[52].mxu0 %v4668_v33  ;;  %2525 = vmatmul.mubr.bf16.vlgmr.msra.gmra.mrb[52].mxu1 %v4668_v33 }
 0x8cd   :  { %2534 = vmatpush1.bf16.msra.mxu0 %v3584_v6  ;;  %2575 = vmatpush1.bf16.msra.mxu1 %v5309_v27  ;;  %v5781_v6 = vld [vmem:[#allocation118_spill] sm:$0xff]  ;;  %v5782_v27 = vld [vmem:[#allocation119_spill] sm:$0xff] }
 0x8ce   :  { %2565 = vmatprep.mubr.bf16.mxu0 %v2448_v15  ;;  %2606 = vmatprep.mubr.bf16.mxu1 %v2448_v15  ;;  %v5820_v15 = vld [vmem:[#allocation21_spill] sm:$0xff] }
 0x8cf   :  { %2535 = vmatprep.subr.bf16.mxu0 %v5310_v34  ;;  %2576 = vmatprep.subr.bf16.mxu1 %v5311_v44  ;;  %v5783_v34 = vld [vmem:[#allocation120_spill] sm:$0xff]  ;;  %v5784_v44 = vld [vmem:[#allocation121_spill] sm:$0xff] }
 0x8d1   :  { %2536 = vmatpush1.bf16.msra.mxu0 %v5312_v21  ;;  %2577 = vmatpush1.bf16.msra.mxu1 %v5313_v25  ;;  %v5785_v21 = vld [vmem:[#allocation122_spill] sm:$0xff]  ;;  %v5786_v25 = vld [vmem:[#allocation123_spill] sm:$0xff] }
 0x8d2   :  { %2537 = vmatprep.subr.bf16.mxu0 %v5314_v11  ;;  %2578 = vmatprep.subr.bf16.mxu1 %v5402_v43  ;;  %v5787_v11 = vld [vmem:[#allocation124_spill] sm:$0xff]  ;;  %v5788_v43 = vld [vmem:[#allocation125_spill] sm:$0xff] }
 0x8d5   :  { %2538 = vmatpush1.bf16.msra.mxu0 %v5403_v3  ;;  %2579 = vmatpush1.bf16.msra.mxu1 %v5404_v2  ;;  %v5789_v3 = vld [vmem:[#allocation126_spill] sm:$0xff]  ;;  %v5790_v2 = vld [vmem:[#allocation127_spill] sm:$0xff] }
 0x8d6   :  { %2539 = vmatprep.subr.bf16.mxu0 %v5405_v39  ;;  %2580 = vmatprep.subr.bf16.mxu1 %v5406_v41  ;;  %v5792_v39 = vld [vmem:[#allocation129_spill] sm:$0xff]  ;;  %v5793_v41 = vld [vmem:[#allocation130_spill] sm:$0xff] }
 0x8d9   :  { %2540 = vmatpush1.bf16.msra.mxu0 %v5407_v0  ;;  %2581 = vmatpush1.bf16.msra.mxu1 %v5408_v38  ;;  %v5794_v0 = vld [vmem:[#allocation131_spill] sm:$0xff]  ;;  %v5795_v38 = vld [vmem:[#allocation132_spill] sm:$0xff] }
 0x8da   :  { %2541 = vmatprep.subr.bf16.mxu0 %v5496_v53  ;;  %2582 = vmatprep.subr.bf16.mxu1 %v5497_v19  ;;  %v5805_v53 = vld [vmem:[#allocation6_spill] sm:$0xff]  ;;  %v5806_v19 = vld [vmem:[#allocation7_spill] sm:$0xff] }
 0x8dd   :  { %2542 = vmatpush1.bf16.msra.mxu0 %v5498_v22  ;;  %2583 = vmatpush1.bf16.msra.mxu1 %v5499_v28  ;;  %v5807_v22 = vld [vmem:[#allocation8_spill] sm:$0xff]  ;;  %v5808_v28 = vld [vmem:[#allocation9_spill] sm:$0xff] }
 0x8de   :  { %2543 = vmatprep.subr.bf16.mxu0 %v5500_v16  ;;  %2584 = vmatprep.subr.bf16.mxu1 %v5501_v63  ;;  %v5809_v16 = vld [vmem:[#allocation10_spill] sm:$0xff]  ;;  %v5810_v63 = vld [vmem:[#allocation11_spill] sm:$0xff] }
 0x8e1   :  { %2544 = vmatpush1.bf16.msra.mxu0 %v5502_v29  ;;  %2585 = vmatpush1.bf16.msra.mxu1 %v5503_v23  ;;  %v5811_v29 = vld [vmem:[#allocation12_spill] sm:$0xff]  ;;  %v5812_v23 = vld [vmem:[#allocation13_spill] sm:$0xff] }
 0x8e2   :  { %2545 = vmatprep.subr.bf16.mxu0 %v5504_v52  ;;  %2586 = vmatprep.subr.bf16.mxu1 %v5505_v4  ;;  %v5813_v52 = vld [vmem:[#allocation14_spill] sm:$0xff]  ;;  %v5814_v4 = vld [vmem:[#allocation15_spill] sm:$0xff] }
 0x8e5   :  { %2546 = vmatpush1.bf16.msra.mxu0 %v5506_v10  ;;  %2587 = vmatpush1.bf16.msra.mxu1 %v5507_v55  ;;  %v5815_v10 = vld [vmem:[#allocation16_spill] sm:$0xff]  ;;  %v5816_v55 = vld [vmem:[#allocation17_spill] sm:$0xff] }
 0x8e6   :  { %2547 = vmatprep.subr.bf16.mxu0 %v5421_v58  ;;  %2588 = vmatprep.subr.bf16.mxu1 %v5422_v46  ;;  %v5797_v58 = vld [vmem:[#allocation134_spill] sm:$0xff]  ;;  %v5798_v46 = vld [vmem:[#allocation135_spill] sm:$0xff] }
 0x8e9   :  { %2548 = vmatpush1.bf16.msra.mxu0 %v5423_v49  ;;  %2589 = vmatpush1.bf16.msra.mxu1 %v5508_v57  ;;  %v5799_v49 = vld [vmem:[#allocation136_spill] sm:$0xff]  ;;  %v5817_v57 = vld [vmem:[#allocation18_spill] sm:$0xff] }
 0x8ea   :  { %2549 = vmatprep.subr.bf16.mxu0 %v5509_v13  ;;  %2590 = vmatprep.subr.bf16.mxu1 %v5426_v32  ;;  %v5800_v32 = vld [vmem:[#allocation137_spill] sm:$0xff]  ;;  %v5818_v13 = vld [vmem:[#allocation19_spill] sm:$0xff] }
 0x8ed   :  { %2550 = vmatpush1.bf16.msra.mxu0 %v5427_v56  ;;  %2591 = vmatpush1.bf16.msra.mxu1 %v5428_v37  ;;  %v5801_v56 = vld [vmem:[#allocation138_spill] sm:$0xff]  ;;  %v5802_v37 = vld [vmem:[#allocation139_spill] sm:$0xff] }
 0x8ee   :  { %2551 = vmatprep.subr.bf16.mxu0 %v5429_v50  ;;  %2592 = vmatprep.subr.bf16.mxu1 %v5430_v31  ;;  %v5803_v50 = vld [vmem:[#allocation140_spill] sm:$0xff]  ;;  %v5804_v31 = vld [vmem:[#allocation141_spill] sm:$0xff] }
 0x8f1   :  { %2552 = vmatpush1.bf16.msra.mxu0 %v5431_v40  ;;  %2593 = vmatpush1.bf16.msra.mxu1 %v5345_v26  ;;  %v5791_v26 = vld [vmem:[#allocation128_spill] sm:$0xff]  ;;  %v5796_v40 = vld [vmem:[#allocation133_spill] sm:$0xff] }
 0x8f2   :  { %2553 = vmatprep.subr.bf16.mxu0 %v5781_v6  ;;  %2594 = vmatprep.subr.bf16.mxu1 %v5782_v27  ;;  %v5838_v6 = vld [vmem:[#allocation39_spill] sm:$0xff]  ;;  %v5839_v27 = vld [vmem:[#allocation40_spill] sm:$0xff] }
 0x8f5   :  { %2554 = vmatpush1.bf16.msra.mxu0 %v5783_v34  ;;  %2595 = vmatpush1.bf16.msra.mxu1 %v5784_v44  ;;  %v5840_v34 = vld [vmem:[#allocation41_spill] sm:$0xff]  ;;  %v5841_v44 = vld [vmem:[#allocation42_spill] sm:$0xff] }
 0x8f6   :  { %2555 = vmatprep.subr.bf16.mxu0 %v5785_v21  ;;  %2596 = vmatprep.subr.bf16.mxu1 %v5786_v25  ;;  %v5842_v21 = vld [vmem:[#allocation43_spill] sm:$0xff]  ;;  %v5843_v25 = vld [vmem:[#allocation44_spill] sm:$0xff] }
 0x8f9   :  { %2556 = vmatpush1.bf16.msra.mxu0 %v5787_v11  ;;  %2597 = vmatpush1.bf16.msra.mxu1 %v5788_v43  ;;  %v5844_v11 = vld [vmem:[#allocation45_spill] sm:$0xff]  ;;  %v5845_v43 = vld [vmem:[#allocation46_spill] sm:$0xff] }
 0x8fa   :  { %2557 = vmatprep.subr.bf16.mxu0 %v5789_v3  ;;  %2598 = vmatprep.subr.bf16.mxu1 %v5790_v2  ;;  %v5846_v3 = vld [vmem:[#allocation47_spill] sm:$0xff]  ;;  %v5847_v2 = vld [vmem:[#allocation48_spill] sm:$0xff] }
 0x8fd   :  { %2558 = vmatpush1.bf16.msra.mxu0 %v5791_v26  ;;  %2599 = vmatpush1.bf16.msra.mxu1 %v5792_v39  ;;  %v5848_v26 = vld [vmem:[#allocation49_spill] sm:$0xff]  ;;  %v5849_v39 = vld [vmem:[#allocation50_spill] sm:$0xff] }
 0x8fe   :  { %2559 = vmatprep.subr.bf16.mxu0 %v5793_v41  ;;  %2600 = vmatprep.subr.bf16.mxu1 %v5794_v0  ;;  %v5850_v41 = vld [vmem:[#allocation51_spill] sm:$0xff]  ;;  %v5851_v0 = vld [vmem:[#allocation52_spill] sm:$0xff] }
 0x901   :  { %2560 = vmatpush1.bf16.msra.mxu0 %v5795_v38  ;;  %2601 = vmatpush1.bf16.msra.mxu1 %v5796_v40  ;;  %v5852_v38 = vld [vmem:[#allocation53_spill] sm:$0xff]  ;;  %v5853_v40 = vld [vmem:[#allocation54_spill] sm:$0xff] }
 0x902   :  { %2561 = vmatprep.subr.bf16.mxu0 %v5797_v58  ;;  %2602 = vmatprep.subr.bf16.mxu1 %v5798_v46  ;;  %v5854_v58 = vld [vmem:[#allocation56_spill] sm:$0xff]  ;;  %v5855_v46 = vld [vmem:[#allocation55_spill] sm:$0xff] }
 0x905   :  { %2562 = vmatpush1.bf16.msra.mxu0 %v5799_v49  ;;  %2603 = vmatpush1.bf16.msra.mxu1 %v5800_v32  ;;  %v5856_v49 = vld [vmem:[#allocation57_spill] sm:$0xff]  ;;  %v5857_v32 = vld [vmem:[#allocation58_spill] sm:$0xff] }
 0x906   :  { %2563 = vmatprep.subr.bf16.mxu0 %v5801_v56  ;;  %2604 = vmatprep.subr.bf16.mxu1 %v5802_v37  ;;  %v5858_v56 = vld [vmem:[#allocation59_spill] sm:$0xff]  ;;  %v5859_v37 = vld [vmem:[#allocation60_spill] sm:$0xff] }
 0x909   :  { %2564 = vmatpush1.bf16.msra.mxu0 %v5803_v50  ;;  %2605 = vmatpush1.bf16.msra.mxu1 %v5804_v31  ;;  %v5860_v50 = vld [vmem:[#allocation61_spill] sm:$0xff]  ;;  %v5861_v31 = vld [vmem:[#allocation62_spill] sm:$0xff] }
 0x90a   :  { %2695 = vmatprep.subr.bf16.mxu0 %v5805_v53  ;;  %2736 = vmatprep.subr.bf16.mxu1 %v5806_v19  ;;  %v5862_v53 = vld [vmem:[#allocation63_spill] sm:$0xff]  ;;  %v5863_v19 = vld [vmem:[#allocation64_spill] sm:$0xff] }
 0x90c   :  { %2566 = vmatmul.mubr.bf16.vlgmr.msra.gmra.mrb[56].mxu0 %v4668_v33  ;;  %2607 = vmatmul.mubr.bf16.vlgmr.msra.gmra.mrb[56].mxu1 %v4668_v33  ;;  %v5837_v33 = vld [vmem:[#allocation38_spill] sm:$0xff] }
 0x90d   :  { %2696 = vmatpush1.bf16.msra.mxu0 %v5807_v22  ;;  %2737 = vmatpush1.bf16.msra.mxu1 %v5808_v28  ;;  %v5864_v22 = vld [vmem:[#allocation65_spill] sm:$0xff]  ;;  %v5865_v28 = vld [vmem:[#allocation66_spill] sm:$0xff] }
 0x90e   :  { %2697 = vmatprep.subr.bf16.mxu0 %v5809_v16  ;;  %2738 = vmatprep.subr.bf16.mxu1 %v5810_v63  ;;  %v5866_v16 = vld [vmem:[#allocation67_spill] sm:$0xff]  ;;  %v5867_v63 = vld [vmem:[#allocation68_spill] sm:$0xff] }
 0x911   :  { %2698 = vmatpush1.bf16.msra.mxu0 %v5811_v29  ;;  %2739 = vmatpush1.bf16.msra.mxu1 %v5812_v23  ;;  %v5868_v29 = vld [vmem:[#allocation69_spill] sm:$0xff] }
 0x912   :  { %2699 = vmatprep.subr.bf16.mxu0 %v5813_v52  ;;  %2740 = vmatprep.subr.bf16.mxu1 %v5814_v4 }
 0x915   :  { %2700 = vmatpush1.bf16.msra.mxu0 %v5815_v10  ;;  %2741 = vmatpush1.bf16.msra.mxu1 %v5816_v55 }
 0x916   :  { %2701 = vmatprep.subr.bf16.mxu0 %v5817_v57  ;;  %2742 = vmatprep.subr.bf16.mxu1 %v5818_v13 }
 0x919   :  { %2702 = vmatpush1.bf16.msra.mxu0 %v5819_v18  ;;  %2743 = vmatpush1.bf16.msra.mxu1 %v5820_v15 }
 0x91a   :  { %2703 = vmatprep.subr.bf16.mxu0 %v5821_v59  ;;  %2744 = vmatprep.subr.bf16.mxu1 %v5822_v8 }
 0x91d   :  { %2704 = vmatpush1.bf16.msra.mxu0 %v5823_v51  ;;  %2745 = vmatpush1.bf16.msra.mxu1 %v5824_v30  ;;  %v5869_v30 = vld [vmem:[#allocation143_spill] sm:$0xff] }
 0x91e   :  { %2705 = vmatprep.subr.bf16.mxu0 %v5825_v48  ;;  %2746 = vmatprep.subr.bf16.mxu1 %v5826_v17  ;;  %v5870_v17 = vld [vmem:[#allocation144_spill] sm:$0xff] }
 0x921   :  { %2706 = vmatpush1.bf16.msra.mxu0 %v5827_v1  ;;  %2747 = vmatpush1.bf16.msra.mxu1 %v5828_v62 }
 0x922   :  { %2707 = vmatprep.subr.bf16.mxu0 %v5829_v45  ;;  %2748 = vmatprep.subr.bf16.mxu1 %v5830_v60 }
 0x925   :  { %2708 = vmatpush1.bf16.msra.mxu0 %v5831_v7  ;;  %2749 = vmatpush1.bf16.msra.mxu1 %v5832_v47 }
 0x926   :  { %2709 = vmatprep.subr.bf16.mxu0 %v5833_v36  ;;  %2750 = vmatprep.subr.bf16.mxu1 %v5834_v20 }
 0x929   :  { %2710 = vmatpush1.bf16.msra.mxu0 %v5835_v42  ;;  %2751 = vmatpush1.bf16.msra.mxu1 %v5836_v14 }
 0x92a   :  { %2711 = vmatprep.subr.bf16.mxu0 %v5837_v33  ;;  %2752 = vmatprep.subr.bf16.mxu1 %v5838_v6 }
 0x92d   :  { %2712 = vmatpush1.bf16.msra.mxu0 %v5839_v27  ;;  %2753 = vmatpush1.bf16.msra.mxu1 %v5840_v34  ;;  %v5871_v27 = vld [vmem:[#allocation72_spill] sm:$0xff] }
 0x92e   :  { %2713 = vmatprep.subr.bf16.mxu0 %v5841_v44  ;;  %2754 = vmatprep.subr.bf16.mxu1 %v5842_v21 }
 0x931   :  { %2714 = vmatpush1.bf16.msra.mxu0 %v5843_v25  ;;  %2755 = vmatpush1.bf16.msra.mxu1 %v5844_v11 }
 0x932   :  { %2715 = vmatprep.subr.bf16.mxu0 %v5845_v43  ;;  %2756 = vmatprep.subr.bf16.mxu1 %v5846_v3 }
 0x935   :  { %2716 = vmatpush1.bf16.msra.mxu0 %v5847_v2  ;;  %2757 = vmatpush1.bf16.msra.mxu1 %v5848_v26 }
 0x936   :  { %2717 = vmatprep.subr.bf16.mxu0 %v5849_v39  ;;  %2758 = vmatprep.subr.bf16.mxu1 %v5850_v41 }
 0x939   :  { %2718 = vmatpush1.bf16.msra.mxu0 %v5851_v0  ;;  %2759 = vmatpush1.bf16.msra.mxu1 %v5852_v38 }
 0x93a   :  { %2719 = vmatprep.subr.bf16.mxu0 %v5853_v40  ;;  %2760 = vmatprep.subr.bf16.mxu1 %v5854_v58 }
 0x93d   :  { %2720 = vmatpush1.bf16.msra.mxu0 %v5855_v46  ;;  %2761 = vmatpush1.bf16.msra.mxu1 %v5856_v49 }
 0x93e   :  { %2721 = vmatprep.subr.bf16.mxu0 %v5857_v32  ;;  %2762 = vmatprep.subr.bf16.mxu1 %v5858_v56 }
 0x941   :  { %2722 = vmatpush1.bf16.msra.mxu0 %v5859_v37  ;;  %2763 = vmatpush1.bf16.msra.mxu1 %v5860_v50 }
 0x942   :  { %2723 = vmatprep.subr.bf16.mxu0 %v5861_v31  ;;  %2764 = vmatprep.subr.bf16.mxu1 %v5862_v53 }
 0x945   :  { %2724 = vmatpush1.bf16.msra.mxu0 %v5863_v19  ;;  %2765 = vmatpush1.bf16.msra.mxu1 %v5864_v22 }
 0x946   :  { %2725 = vmatprep.subr.bf16.mxu0 %v5865_v28  ;;  %2766 = vmatprep.subr.bf16.mxu1 %v5866_v16 }
 0x949   :  { %2726 = vmatpush1.bf16.msra.mxu0 %v5867_v63  ;;  %2767 = vmatpush1.bf16.msra.mxu1 %v5868_v29 }
 0x99f   :  { %v2485_v23 = vpop.f32.mrb[52].mxu0  ;;  %v2526_v52 = vpop.f32.mrb[52].mxu1 }
 0x9a0   :  { %v2615_v4 = vadd.f32 %v2485_v23, %v5681_v9  ;;  %v2487_v10 = vpop.f32.mrb[53].mxu0  ;;  %v2528_v55 = vpop.f32.mrb[53].mxu1  ;;  %v2617_v48 = vadd.f32 %v2526_v52, %v5869_v30 }
 0x9a1   :  { %v2616_v57 = vadd.f32 %v2487_v10, %v5682_v12  ;;  %v2489_v13 = vpop.f32.mrb[54].mxu0  ;;  %v2530_v18 = vpop.f32.mrb[54].mxu1  ;;  %v2618_v1 = vadd.f32 %v2528_v55, %v5870_v17  ;;  %v2680_v10 = vrot.slane %v4665_v54, 6 }
 0x9a2   :  { %v3008_v15 = vmul.f32 -1.442695, %v2615_v4  ;;  %v2490_v59 = vpop.f32.mrb[55].mxu0  ;;  %v2531_v8 = vpop.f32.mrb[55].mxu1  ;;  %v3010_v62 = vmul.f32 -1.442695, %v2617_v48 }
 0x9a3   :  { %v3009_v51 = vmul.f32 -1.442695, %v2616_v57 }
 0x9a4   :  { %3236 = vpow2.f32 %v3008_v15 }
 0x9a5   :  { %3238 = vpow2.f32 %v3009_v51 }
 0x9a6   :  { %3240 = vtanh.f32 %v2618_v1 }
 0x9a7   :  { %3242 = vpow2.f32 %v3010_v62 }
 0x9ae   :  { %v3237_v45 = vpop.eup %3236 }
 0x9af   :  { %v2628_v60 = vadd.f32 1.0, %v3237_v45  ;;  %v3239_v7 = vpop.eup %3238 }
 0x9b0   :  { %v2629_v47 = vadd.f32 1.0, %v3239_v7  ;;  %v3241_v36 = vpop.eup %3240 }
 0x9b1   :  { %3244 = vrcp.f32 %v2628_v60  ;;  %v3243_v20 = vpop.eup %3242 }
 0x9b2   :  { %3246 = vrcp.f32 %v2629_v47  ;;  %v2630_v6 = vadd.f32 1.0, %v3243_v20 }
 0x9b4   :  { %3248 = vrcp.f32 %v2630_v6 }
 0x9bb   :  { %v3245_v42 = vpop.eup %3244 }
 0x9bc   :  { %v2639_v14 = vmul.f32 %v3245_v42, %v3241_v36  ;;  %v3247_v33 = vpop.eup %3246 }
 0x9bd   :  { %v2638_v34 = vmul.f32 %v3247_v33, %v5871_v27 }
 0x9be   :  { %v3249_v21 = vpop.eup %3248 }
 0x9bf   :  { %v4805_v44 = vadd.f32 %v2639_v14, %v2638_v34 }
 0x9c1   :  { %3250 = vtanh.f32 %v4805_v44 }
 0x9cb   :  { %v3251_v25 = vpop.eup %3250 }
 0x9cc   :  { %v2642_v11 = vmul.f32 %v3251_v25, %v3249_v21 }
 0x9ce   :  { %v2643_v43 = vpack.c.bf16 %v2642_v11, %v2642_v11 }
 0x9d0   :  { %v2689_v3 = vrot.slane %v2643_v43, 5 }
 0x9d2   :  { %v2692_v2 = vrot.slane %v2689_v3, 3 }
 0x9d4   :  { %2727 = vmatprep.mubr.bf16.mxu0 %v2692_v2  ;;  %2768 = vmatprep.mubr.bf16.mxu1 %v2692_v2 }
 0x9df   :  { %v2567_v26 = vpop.f32.mrb[56].mxu0  ;;  %v2608_v39 = vpop.f32.mrb[56].mxu1 }
 0x9e0   :  { %v2648_v41 = vrot.slane %v2567_v26, 2  ;;  %v2569_v0 = vpop.f32.mrb[57].mxu0  ;;  %v2610_v38 = vpop.f32.mrb[57].mxu1  ;;  %v2650_v53 = vrot.slane %v2608_v39, 2 }
 0x9e1   :  { %v2649_v40 = vrot.slane %v2569_v0, 2  ;;  %v2571_v58 = vpop.f32.mrb[58].mxu0  ;;  %v2612_v46 = vpop.f32.mrb[58].mxu1  ;;  %v2651_v19 = vrot.slane %v2610_v38, 2  ;;  %v3017_v0 = vld [vmem:[%s4829_s5] ss:$0 sm:$0xff] }
 0x9e2   :  { %v2656_v49 = vadd.f32 %v2648_v41, %v5590_v61  ;;  %v2572_v32 = vpop.f32.mrb[59].mxu0  ;;  %v2613_v56 = vpop.f32.mrb[59].mxu1  ;;  %v2658_v22 = vadd.f32 %v2650_v53, %v5592_v5  ;;  %v3018_v46 = vld [vmem:[#allocation2] ss:$0 sm:$0xff] }
 0x9e3   :  { %v2657_v37 = vadd.f32 %v2649_v40, %v5591_v35  ;;  %v2659_v28 = vadd.f32 %v2651_v19, %v5593_v24 }
 0x9e4   :  { %v3011_v50 = vmul.f32 -1.442695, %v2656_v49  ;;  %v3013_v16 = vmul.f32 -1.442695, %v2658_v22 }
 0x9e5   :  { %v3012_v31 = vmul.f32 -1.442695, %v2657_v37 }
 0x9e6   :  { %3252 = vpow2.f32 %v3011_v50 }
 0x9e7   :  { %3254 = vpow2.f32 %v3012_v31 }
 0x9e8   :  { %3256 = vtanh.f32 %v2659_v28 }
 0x9e9   :  { %3258 = vpow2.f32 %v3013_v16 }
 0x9f0   :  { %v3253_v63 = vpop.eup %3252 }
 0x9f1   :  { %v2669_v29 = vadd.f32 1.0, %v3253_v63  ;;  %v3255_v23 = vpop.eup %3254 }
 0x9f2   :  { %v2670_v61 = vadd.f32 1.0, %v3255_v23  ;;  %v3257_v35 = vpop.eup %3256 }
 0x9f3   :  { %3260 = vrcp.f32 %v2669_v29  ;;  %v3259_v52 = vpop.eup %3258 }
 0x9f4   :  { %3262 = vrcp.f32 %v2670_v61  ;;  %v2671_v13 = vadd.f32 1.0, %v3259_v52 }
 0x9f6   :  { %3264 = vrcp.f32 %v2671_v13 }
 0x9fd   :  { %v3261_v4 = vpop.eup %3260 }
 0x9fe   :  { %v2683_v55 = vmul.f32 %v3261_v4, %v3257_v35  ;;  %v3263_v57 = vpop.eup %3262 }
 0x9ff   :  { %v2682_v5 = vmul.f32 %v3263_v57, %v2680_v10 }
 0xa00   :  { %v3265_v24 = vpop.eup %3264 }
 0xa01   :  { %v2684_v18 = vadd.f32 %v2683_v55, %v2682_v5 }
 0xa03   :  { %3266 = vtanh.f32 %v2684_v18 }
 0xa0d   :  { %v3267_v15 = vpop.eup %3266 }
 0xa0e   :  { %v2686_v59 = vmul.f32 %v3267_v15, %v3265_v24 }
 0xa10   :  { %v2687_v8 = vpack.c.bf16 %v2686_v59, %v2686_v59 }
 0xa12   :  { %v2691_v51 = vrot.slane %v2687_v8, 3 }
 0xa14   :  { %2728 = vmatmul.mubr.bf16.vlgmr.msra.gmra.mrb[60].mxu0 %v2691_v51  ;;  %2769 = vmatmul.mubr.bf16.vlgmr.msra.gmra.mrb[60].mxu1 %v2691_v51 }
 0xae7   :  { %v2729_v48 = vpop.f32.mrb[60].mxu0  ;;  %v2770_v1 = vpop.f32.mrb[60].mxu1 }
 0xae8   :  { %v2777_v62 = vadd.f32 %v2729_v48, %v5681_v9  ;;  %v2731_v45 = vpop.f32.mrb[61].mxu0  ;;  %v2772_v54 = vpop.f32.mrb[61].mxu1  ;;  %v2779_v33 = vadd.f32 %v2770_v1, %v5869_v30 }
 0xae9   :  { %v2778_v60 = vadd.f32 %v2731_v45, %v5682_v12  ;;  %v2733_v7 = vpop.f32.mrb[62].mxu0  ;;  %v2774_v47 = vpop.f32.mrb[62].mxu1  ;;  %v2780_v6 = vadd.f32 %v2772_v54, %v5870_v17 }
 0xaea   :  { %v3014_v36 = vmul.f32 -1.442695, %v2777_v62  ;;  %v2734_v20 = vpop.f32.mrb[63].mxu0  ;;  %v2775_v42 = vpop.f32.mrb[63].mxu1  ;;  %v3016_v27 = vmul.f32 -1.442695, %v2779_v33 }
 0xaeb   :  { %v3015_v14 = vmul.f32 -1.442695, %v2778_v60 }
 0xaec   :  { %3268 = vpow2.f32 %v3014_v36 }
 0xaed   :  { %3270 = vpow2.f32 %v3015_v14 }
 0xaee   :  { %3272 = vtanh.f32 %v2780_v6 }
 0xaef   :  { %3274 = vpow2.f32 %v3016_v27 }
 0xaf6   :  { %v3269_v34 = vpop.eup %3268 }
 0xaf7   :  { %v2790_v21 = vadd.f32 1.0, %v3269_v34  ;;  %v3271_v9 = vpop.eup %3270 }
 0xaf8   :  { %v2791_v12 = vadd.f32 1.0, %v3271_v9  ;;  %v3273_v25 = vpop.eup %3272 }
 0xaf9   :  { %3276 = vrcp.f32 %v2790_v21  ;;  %v3275_v11 = vpop.eup %3274 }
 0xafa   :  { %3278 = vrcp.f32 %v2791_v12  ;;  %v2792_v26 = vadd.f32 1.0, %v3275_v11 }
 0xafc   :  { %3280 = vrcp.f32 %v2792_v26 }
 0xb03   :  { %v3277_v43 = vpop.eup %3276 }
 0xb04   :  { %v2801_v3 = vmul.f32 %v3277_v43, %v3273_v25  ;;  %v3279_v2 = vpop.eup %3278 }
 0xb05   :  { %v2800_v39 = vmul.f32 %v3279_v2, %v4805_v44 }
 0xb06   :  { %v3281_v17 = vpop.eup %3280 }
 0xb07   :  { %v2802_v30 = vadd.f32 %v2801_v3, %v2800_v39 }
 0xb09   :  { %3282 = vtanh.f32 %v2802_v30 }
 0xb13   :  { %v3283_v41 = vpop.eup %3282 }
 0xb14   :  { %v2804_v38 = vmul.f32 %v3283_v41, %v3281_v17 }
 0xb16   :  { %v2812_v40 = vmul.f32 %v3017_v0, %v2804_v38 }
 0xb18   :  { %v2814_v58 = vsel %vm2813_vm2, %v2812_v40, 0.0 }
 0xb19   :  { %2815 = vadd.xlane.f32.xlu0 %v2814_v58 }
 0xba6   :  { %v2816_v49 = vpop.xlane.xlu0 %2815 }
 0xba7   :  { %v2824_v32 = vadd.f32 %v3018_v46, %v2816_v49 }
 0xba9   :  { %2826 = vst.msk [vmem:[%s4831_s7] sm:$0x3] %vm2825_vm3, %v2824_v32 }
 0xbaa   :  { %2831 = vsyncpa [#allocation4], 1 }

</bundles_post_ra>
